<compile_context>
chip_gen: v5e
topology: v5e:2x2
jax: 0.10.0
libtpu: 0.0.40
codegen_flags: <defaults>
</compile_context>

<pallas_src>
import math
import functools

import jax
import jax.numpy as jnp
from jax import lax
from jax.experimental import pallas as pl
from jax.experimental.pallas import tpu as pltpu


LN_EPS = 1e-5
BN_EPS = 1e-5

# Order of the (pre-processed) parameter refs passed to the kernel.
KERNEL_PARAM_NAMES = [
    "ln1_g", "ln1_b", "ff1_w1", "ff1_b1", "ff1_w2", "ff1_b2",
    "ln2_g", "ln2_b", "wqkv", "bqkv", "wo3", "bo",
    "ln3_g", "ln3_b", "pw1_wa", "pw1_ba", "pw1_wb", "pw1_bb", "dw_w", "dw_b",
    "bn_s", "bn_t", "pw2_w", "pw2_b",
    "ln4_g", "ln4_b", "ff2_w1", "ff2_b1", "ff2_w2", "ff2_b2",
    "ln5_g", "ln5_b",
]
NUM_PARAMS = len(KERNEL_PARAM_NAMES)


def _layer_norm(x, g, b):
    # two-pass (centered) variance for numerical robustness
    m = jnp.mean(x, axis=-1, keepdims=True)
    c = x - m
    var = jnp.mean(c * c, axis=-1, keepdims=True)
    return c * lax.rsqrt(var + LN_EPS) * g + b


def _swish(x):
    return x * jax.nn.sigmoid(x)


def _conformer_kernel(*refs, L, D, K, n_head, seq_chunk, kv_chunk, use_bf16_exp):
    # refs = (x_ref, *param_refs, out_ref, xs, xn_scr, k_scr, v_scr)
    x_ref = refs[0]
    p = {name: refs[1 + i] for i, name in enumerate(KERNEL_PARAM_NAMES)}
    out_ref = refs[1 + NUM_PARAMS]
    xs, xn_scr, k_scr, v_scr = refs[2 + NUM_PARAMS:]

    hd = D // n_head
    n_seq = L // seq_chunk
    n_kv = L // kv_chunk
    bf16 = jnp.bfloat16
    f32 = jnp.float32

    def matmul(a, w_ref, b_ref=None):
        # bf16 MXU matmul with f32 accumulation
        o = jnp.dot(a.astype(bf16), w_ref[...], preferred_element_type=f32)
        if b_ref is not None:
            o = o + b_ref[...]
        return o

    # Residual stream lives in a VMEM scratch (f32) so sections can process it in tiles.
    xs[...] = x_ref[0].astype(f32)

    # ---------------- FF modules (half residual), tiled along the sequence ----------
    def ff_module(lng, lnb, w1, b1, w2, b2):
        def body(i, carry):
            start = pl.multiple_of(i * seq_chunk, seq_chunk)
            r = xs[pl.ds(start, seq_chunk), :]                      # (seq_chunk, D)
            h = _layer_norm(r, lng[...], lnb[...])
            h = _swish(matmul(h, w1, b1))                           # (seq_chunk, H)
            h = matmul(h, w2, b2)                                   # (seq_chunk, D)
            xs[pl.ds(start, seq_chunk), :] = r + 0.5 * h
            return carry
        lax.fori_loop(0, n_seq, body, 0)

    ff_module(p["ln1_g"], p["ln1_b"],
              p["ff1_w1"], p["ff1_b1"], p["ff1_w2"], p["ff1_b2"])

    # ---------------- MHA module (residual): fori over heads, flash over KV ----------
    xn_scr[...] = _layer_norm(xs[...], p["ln2_g"][...], p["ln2_b"][...]).astype(bf16)

    def head_body(hh, carry):
        wqkv = p["wqkv"][hh]                                        # (D, 3*hd) bf16
        bqkv = p["bqkv"][hh]                                        # (1, 3*hd) f32
        qkv = jnp.dot(xn_scr[...], wqkv, preferred_element_type=f32) + bqkv
        q_bf = qkv[:, :hd].astype(bf16)        # 1/sqrt(hd) already folded into wqkv/bqkv
        k_scr[...] = qkv[:, hd:2 * hd]
        v_scr[...] = qkv[:, 2 * hd:3 * hd]

        def kv_body(kc, st):
            m_i, l_i, acc = st
            kstart = pl.multiple_of(kc * kv_chunk, kv_chunk)
            k_c = k_scr[pl.ds(kstart, kv_chunk), :].astype(bf16)    # (kv_chunk, hd)
            v_c = v_scr[pl.ds(kstart, kv_chunk), :].astype(bf16)
            s = lax.dot_general(q_bf, k_c, (((1,), (1,)), ((), ())),
                                preferred_element_type=f32)         # (L, kv_chunk)
            m_new = jnp.maximum(m_i, jnp.max(s, axis=-1, keepdims=True))
            alpha = jnp.exp(m_i - m_new)
            if use_bf16_exp:
                e = jnp.exp((s - m_new).astype(bf16))               # bf16 EUP (v6e/v7x)
            else:
                e = jnp.exp(s - m_new)
            l_new = alpha * l_i + jnp.sum(e.astype(f32), axis=-1, keepdims=True)
            acc_new = alpha * acc + jnp.dot(e.astype(bf16), v_c,
                                            preferred_element_type=f32)
            return m_new, l_new, acc_new

        init = (jnp.full((L, 1), -jnp.inf, f32),
                jnp.zeros((L, 1), f32),
                jnp.zeros((L, hd), f32))
        _, l_i, acc = lax.fori_loop(0, n_kv, kv_body, init)
        oh = acc * pl.reciprocal(l_i, approx=True)                  # normalize (L, hd)
        # output projection folded into the head loop -> lane-dense (L, D) accumulation
        xs[...] = xs[...] + jnp.dot(oh.astype(bf16), p["wo3"][hh],
                                    preferred_element_type=f32)
        return carry

    lax.fori_loop(0, n_head, head_body, 0)
    xs[...] = xs[...] + p["bo"][...]

    # ---------------- Conv module (residual) -----------------------------------------
    xn = _layer_norm(xs[...], p["ln3_g"][...], p["ln3_b"][...])
    xb = xn.astype(bf16)
    ga = jnp.dot(xb, p["pw1_wa"][...], preferred_element_type=f32) + p["pw1_ba"][...]
    gb = jnp.dot(xb, p["pw1_wb"][...], preferred_element_type=f32) + p["pw1_bb"][...]
    h = ga * jax.nn.sigmoid(gb)                 # GLU from split weights (no lane slicing)

    # depthwise conv along the sequence ('same' padding, odd K) via sublane roll + mask
    pad = (K - 1) // 2
    row = lax.broadcasted_iota(jnp.int32, (L, D), 0)
    dw = p["dw_w"][...]                                             # (K, D) f32 taps
    conv = jnp.zeros((L, D), f32)
    for kk in range(K):                                             # K is small & static
        shift = pad - kk                         # conv[i] += h[i - shift] * dw[kk]
        if shift == 0:
            tap = h
        elif shift > 0:                          # single-sided edge mask per tap
            tap = jnp.where(row >= shift, pltpu.roll(h, shift, axis=0), 0.0)
        else:
            tap = jnp.where(row < L + shift, pltpu.roll(h, shift % L, axis=0), 0.0)
        conv = conv + tap * dw[kk:kk + 1, :]
    conv = conv + p["dw_b"][...]
    conv = conv * p["bn_s"][...] + p["bn_t"][...]   # BatchNorm1d (eval) folded scale/shift
    conv = _swish(conv)
    conv = jnp.dot(conv.astype(bf16), p["pw2_w"][...],
                   preferred_element_type=f32) + p["pw2_b"][...]
    xs[...] = xs[...] + conv

    # ---------------- FF module 2 (half residual) ------------------------------------
    ff_module(p["ln4_g"], p["ln4_b"],
              p["ff2_w1"], p["ff2_b1"], p["ff2_w2"], p["ff2_b2"])

    # ---------------- Final LayerNorm --------------------------------------------------
    out_ref[0] = _layer_norm(xs[...], p["ln5_g"][...],
                             p["ln5_b"][...]).astype(out_ref.dtype)


def _prepare_params(params, n_head):
    """Cast matmul weights to bf16, fuse per-head QKV (scale folded into Q),
    split GLU weights, fold BatchNorm into a scale/shift."""
    D = params["wq"].shape[0]
    hd = D // n_head
    scale = 1.0 / math.sqrt(hd)
    bf = lambda a: a.astype(jnp.bfloat16)
    f = lambda a: a.astype(jnp.float32)

    def head_cols(w):   # (D, D) -> (n_head, D, hd): columns grouped by head
        return w.reshape(D, n_head, hd).transpose(1, 0, 2)

    def head_bias(b):   # (1, D) -> (n_head, 1, hd)
        return b.reshape(n_head, hd)[:, None, :]

    q = {}
    q["ln1_g"], q["ln1_b"] = f(params["ln1_g"]), f(params["ln1_b"])
    q["ff1_w1"], q["ff1_b1"] = bf(params["ff1_w1"]), f(params["ff1_b1"])
    q["ff1_w2"], q["ff1_b2"] = bf(params["ff1_w2"]), f(params["ff1_b2"])
    q["ln2_g"], q["ln2_b"] = f(params["ln2_g"]), f(params["ln2_b"])
    # Fused per-head QKV projection weights (n_head, D, 3*hd); 1/sqrt(hd) folded into Q.
    q["wqkv"] = bf(jnp.concatenate(
        [head_cols(params["wq"] * scale), head_cols(params["wk"]),
         head_cols(params["wv"])], axis=-1))
    q["bqkv"] = f(jnp.concatenate(
        [head_bias(params["bq"] * scale), head_bias(params["bk"]),
         head_bias(params["bv"])], axis=-1))
    q["wo3"] = bf(params["wo"].reshape(n_head, hd, D))   # rows grouped by head
    q["bo"] = f(params["bo"])
    q["ln3_g"], q["ln3_b"] = f(params["ln3_g"]), f(params["ln3_b"])
    q["pw1_wa"], q["pw1_ba"] = bf(params["pw1_w"][:, :D]), f(params["pw1_b"][:, :D])
    q["pw1_wb"], q["pw1_bb"] = bf(params["pw1_w"][:, D:]), f(params["pw1_b"][:, D:])
    q["dw_w"], q["dw_b"] = f(params["dw_w"]), f(params["dw_b"])
    bn_s = params["bn_g"] * lax.rsqrt(params["bn_v"] + BN_EPS)
    q["bn_s"] = f(bn_s)
    q["bn_t"] = f(params["bn_b"] - params["bn_m"] * bn_s)
    q["pw2_w"], q["pw2_b"] = bf(params["pw2_w"]), f(params["pw2_b"])
    q["ln4_g"], q["ln4_b"] = f(params["ln4_g"]), f(params["ln4_b"])
    q["ff2_w1"], q["ff2_b1"] = bf(params["ff2_w1"]), f(params["ff2_b1"])
    q["ff2_w2"], q["ff2_b2"] = bf(params["ff2_w2"]), f(params["ff2_b2"])
    q["ln5_g"], q["ln5_b"] = f(params["ln5_g"]), f(params["ln5_b"])
    return [q[n] for n in KERNEL_PARAM_NAMES]


def _pick_chunk(n, target):
    """Largest divisor of n that is <= target."""
    c = min(n, max(1, int(target)))
    while n % c:
        c -= 1
    return c


def conformer_forward(x, params, *, n_head, kernel_size,
                      seq_chunk=None, kv_chunk=None):
    B, L, D = x.shape
    K = kernel_size
    assert D % n_head == 0
    hd = D // n_head
    pad = (K - 1) // 2
    assert L > pad, "sequence must be longer than half the depthwise kernel"
    if seq_chunk is None:
        seq_chunk = _pick_chunk(L, 256)
    if kv_chunk is None:
        kv_chunk = _pick_chunk(L, 512)
    assert seq_chunk > 0 and L % seq_chunk == 0
    assert kv_chunk > 0 and L % kv_chunk == 0

    plist = _prepare_params(params, n_head)

    # ---- TPU-generation-aware settings ------------------------------------------------
    try:
        vmem_cap = int(pltpu.get_tpu_info().vmem_capacity_bytes)
    except Exception:
        vmem_cap = 64 * 1024 * 1024
    # ~96 MiB on v5e/v6e (128 MiB physical), ~48 MiB on v7x (64 MiB physical).
    vmem_limit = max(32 * 1024 * 1024, int(vmem_cap) * 3 // 4)
    try:
        kind = jax.devices()[0].device_kind.lower()
        use_bf16_exp = not any(v in kind for v in ("v2", "v3", "v4", "v5"))
    except Exception:
        use_bf16_exp = False

    # x / out are pipelined over the batch grid; weights are whole-array VMEM residents
    # (their block index never changes, so no double-buffering is needed).
    in_specs = [pl.BlockSpec((1, L, D), lambda b: (b, 0, 0))]
    in_specs += [pl.BlockSpec(memory_space=pltpu.MemorySpace.VMEM) for _ in plist]
    out_spec = pl.BlockSpec((1, L, D), lambda b: (b, 0, 0))

    kernel = functools.partial(
        _conformer_kernel, L=L, D=D, K=K, n_head=n_head,
        seq_chunk=seq_chunk, kv_chunk=kv_chunk, use_bf16_exp=use_bf16_exp)

    # Advisory cost estimate for XLA scheduling around the custom call.
    H1 = params["ff1_w1"].shape[1]
    H2 = params["ff2_w1"].shape[1]
    flops = B * (4 * L * D * (H1 + H2) + 14 * L * D * D + 4 * L * L * D + 2 * L * D * K)
    transcendentals = B * (n_head * L * L + L * (H1 + H2 + 3 * D))
    param_bytes = sum(int(a.size) * a.dtype.itemsize for a in plist)
    io_bytes = 2 * B * L * D * x.dtype.itemsize
    cost = pl.CostEstimate(flops=int(flops),
                           transcendentals=int(transcendentals),
                           bytes_accessed=int(param_bytes + io_bytes))

    return pl.pallas_call(
        kernel,
        out_shape=jax.ShapeDtypeStruct((B, L, D), jnp.float32),
        grid=(B,),
        in_specs=in_specs,
        out_specs=out_spec,
        scratch_shapes=[
            pltpu.VMEM((L, D), jnp.float32),     # residual stream
            pltpu.VMEM((L, D), jnp.bfloat16),    # LN2(x) feeding the QKV projections
            pltpu.VMEM((L, hd), jnp.float32),    # per-head K (chunk-sliced by the KV loop)
            pltpu.VMEM((L, hd), jnp.float32),    # per-head V
        ],
        compiler_params=pltpu.CompilerParams(
            dimension_semantics=("parallel",),
            vmem_limit_bytes=int(vmem_limit)),
        cost_estimate=cost,
    )(x, *plist)


# --------------------- plain-JAX f32 reference (for checking) ---------------------
def conformer_reference(x, p, *, n_head, kernel_size):
    def one(xb):
        L, D = xb.shape
        hd = D // n_head
        K = kernel_size
        x = xb
        h = _layer_norm(x, p["ln1_g"], p["ln1_b"])
        h = _swish(h @ p["ff1_w1"] + p["ff1_b1"]) @ p["ff1_w2"] + p["ff1_b2"]
        x = x + 0.5 * h
        xn = _layer_norm(x, p["ln2_g"], p["ln2_b"])
        q = xn @ p["wq"] + p["bq"]
        k = xn @ p["wk"] + p["bk"]
        v = xn @ p["wv"] + p["bv"]
        outs = []
        for hh in range(n_head):
            lo, hi = hh * hd, (hh + 1) * hd
            s = q[:, lo:hi] @ k[:, lo:hi].T / math.sqrt(hd)
            a = jax.nn.softmax(s, axis=-1)
            outs.append(a @ v[:, lo:hi])
        x = x + (jnp.concatenate(outs, -1) @ p["wo"] + p["bo"])
        xn = _layer_norm(x, p["ln3_g"], p["ln3_b"])
        h = xn @ p["pw1_w"] + p["pw1_b"]
        h = h[:, :D] * jax.nn.sigmoid(h[:, D:])
        pad = (K - 1) // 2
        hp = jnp.pad(h, ((pad, pad), (0, 0)))
        conv = sum(hp[kk:kk + L, :] * p["dw_w"][kk:kk + 1, :] for kk in range(K)) + p["dw_b"]
        conv = (conv - p["bn_m"]) * lax.rsqrt(p["bn_v"] + BN_EPS) * p["bn_g"] + p["bn_b"]
        conv = _swish(conv) @ p["pw2_w"] + p["pw2_b"]
        x = x + conv
        h = _layer_norm(x, p["ln4_g"], p["ln4_b"])
        h = _swish(h @ p["ff2_w1"] + p["ff2_b1"]) @ p["ff2_w2"] + p["ff2_b2"]
        x = x + 0.5 * h
        return _layer_norm(x, p["ln5_g"], p["ln5_b"])
    return jax.vmap(one)(x)


def init_params(key, d_model, ff1_h, ff2_h, kernel_size):
    D = d_model
    keys = iter(jax.random.split(key, 16))

    def dense(fan_in, shape):
        return (jax.random.normal(next(keys), shape, jnp.float32)
                * (1.0 / math.sqrt(fan_in)))

    ones = lambda s: jnp.ones(s, jnp.float32)
    zeros = lambda s: jnp.zeros(s, jnp.float32)

    p = {}
    p["ln1_g"], p["ln1_b"] = ones((1, D)), zeros((1, D))
    p["ff1_w1"], p["ff1_b1"] = dense(D, (D, ff1_h)), zeros((1, ff1_h))
    p["ff1_w2"], p["ff1_b2"] = dense(ff1_h, (ff1_h, D)), zeros((1, D))
    p["ln2_g"], p["ln2_b"] = ones((1, D)), zeros((1, D))
    p["wq"], p["bq"] = dense(D, (D, D)), zeros((1, D))
    p["wk"], p["bk"] = dense(D, (D, D)), zeros((1, D))
    p["wv"], p["bv"] = dense(D, (D, D)), zeros((1, D))
    p["wo"], p["bo"] = dense(D, (D, D)), zeros((1, D))
    p["ln3_g"], p["ln3_b"] = ones((1, D)), zeros((1, D))
    p["pw1_w"], p["pw1_b"] = dense(D, (D, 2 * D)), zeros((1, 2 * D))
    p["dw_w"], p["dw_b"] = dense(kernel_size, (kernel_size, D)), zeros((1, D))
    p["bn_g"], p["bn_b"] = ones((1, D)), zeros((1, D))
    p["bn_m"], p["bn_v"] = zeros((1, D)), ones((1, D))
    p["pw2_w"], p["pw2_b"] = dense(D, (D, D)), zeros((1, D))
    p["ln4_g"], p["ln4_b"] = ones((1, D)), zeros((1, D))
    p["ff2_w1"], p["ff2_b1"] = dense(D, (D, ff2_h)), zeros((1, ff2_h))
    p["ff2_w2"], p["ff2_b2"] = dense(ff2_h, (ff2_h, D)), zeros((1, D))
    p["ln5_g"], p["ln5_b"] = ones((1, D)), zeros((1, D))
    return p


if __name__ == "__main__":
    # Small shapes consistent with Conformer forward ([B, L, D]); the chunk sizes are
    # chosen so the FF sequence-tile loop and the online-softmax KV loop trip > once.
    B, L, D = 2, 16, 128
    n_head = 4
    ff1_h = ff2_h = 256
    kernel_size = 3

    key = jax.random.PRNGKey(0)
    kx, kp = jax.random.split(key)
    x = jax.random.normal(kx, (B, L, D), jnp.float32)
    params = init_params(kp, D, ff1_h, ff2_h, kernel_size)

    out = conformer_forward(x, params, n_head=n_head, kernel_size=kernel_size,
                            seq_chunk=8, kv_chunk=8)
    out = jax.block_until_ready(out)

    ref = conformer_reference(x, params, n_head=n_head, kernel_size=kernel_size)
    assert out.shape == (B, L, D)
    # Kernel runs matmuls in bf16 (f32 accumulation), uses an approx reciprocal and
    # (on v6e/v7x) bf16 exp in the softmax, so compare with a correspondingly loose tol.
    assert jnp.allclose(out, ref, rtol=5e-2, atol=6e-2), "mismatch vs JAX reference"

    print("KERNEL_OK")
</pallas_src>

<mosaic_0001>
module attributes {stable_mosaic.version = 11 : i64} {
  func.func @_conformer_kernel(%arg0: i32, %arg1: memref<1x16x128xf32, #tpu.memory_space<vmem>>, %arg2: memref<1x128xf32, #tpu.memory_space<vmem>>, %arg3: memref<1x128xf32, #tpu.memory_space<vmem>>, %arg4: memref<128x256xbf16, #tpu.memory_space<vmem>>, %arg5: memref<1x256xf32, #tpu.memory_space<vmem>>, %arg6: memref<256x128xbf16, #tpu.memory_space<vmem>>, %arg7: memref<1x128xf32, #tpu.memory_space<vmem>>, %arg8: memref<1x128xf32, #tpu.memory_space<vmem>>, %arg9: memref<1x128xf32, #tpu.memory_space<vmem>>, %arg10: memref<4x128x96xbf16, #tpu.memory_space<vmem>>, %arg11: memref<4x1x96xf32, #tpu.memory_space<vmem>>, %arg12: memref<4x32x128xbf16, #tpu.memory_space<vmem>>, %arg13: memref<1x128xf32, #tpu.memory_space<vmem>>, %arg14: memref<1x128xf32, #tpu.memory_space<vmem>>, %arg15: memref<1x128xf32, #tpu.memory_space<vmem>>, %arg16: memref<128x128xbf16, #tpu.memory_space<vmem>>, %arg17: memref<1x128xf32, #tpu.memory_space<vmem>>, %arg18: memref<128x128xbf16, #tpu.memory_space<vmem>>, %arg19: memref<1x128xf32, #tpu.memory_space<vmem>>, %arg20: memref<3x128xf32, #tpu.memory_space<vmem>>, %arg21: memref<1x128xf32, #tpu.memory_space<vmem>>, %arg22: memref<1x128xf32, #tpu.memory_space<vmem>>, %arg23: memref<1x128xf32, #tpu.memory_space<vmem>>, %arg24: memref<128x128xbf16, #tpu.memory_space<vmem>>, %arg25: memref<1x128xf32, #tpu.memory_space<vmem>>, %arg26: memref<1x128xf32, #tpu.memory_space<vmem>>, %arg27: memref<1x128xf32, #tpu.memory_space<vmem>>, %arg28: memref<128x256xbf16, #tpu.memory_space<vmem>>, %arg29: memref<1x256xf32, #tpu.memory_space<vmem>>, %arg30: memref<256x128xbf16, #tpu.memory_space<vmem>>, %arg31: memref<1x128xf32, #tpu.memory_space<vmem>>, %arg32: memref<1x128xf32, #tpu.memory_space<vmem>>, %arg33: memref<1x128xf32, #tpu.memory_space<vmem>>, %arg34: memref<1x16x128xf32, #tpu.memory_space<vmem>>, %arg35: memref<16x128xf32, #tpu.memory_space<vmem>>, %arg36: memref<16x128xbf16, #tpu.memory_space<vmem>>, %arg37: memref<16x32xf32, #tpu.memory_space<vmem>>, %arg38: memref<16x32xf32, #tpu.memory_space<vmem>>) attributes {dimension_semantics = [#tpu.dimension_semantics<parallel>], iteration_bounds = array<i64: 2>, scalar_prefetch = 0 : i64, scratch_operands = 4 : i64, tpu.core_type = #tpu.core_type<tc>, window_params = [{transform_indices = @transform_0, window_bounds = array<i64: 1, 16, 128>}, {pipeline_mode = #tpu.pipeline_mode<synchronous>, transform_indices = @transform_1, window_bounds = array<i64: 1, 128>}, {pipeline_mode = #tpu.pipeline_mode<synchronous>, transform_indices = @transform_2, window_bounds = array<i64: 1, 128>}, {pipeline_mode = #tpu.pipeline_mode<synchronous>, transform_indices = @transform_3, window_bounds = array<i64: 128, 256>}, {pipeline_mode = #tpu.pipeline_mode<synchronous>, transform_indices = @transform_4, window_bounds = array<i64: 1, 256>}, {pipeline_mode = #tpu.pipeline_mode<synchronous>, transform_indices = @transform_5, window_bounds = array<i64: 256, 128>}, {pipeline_mode = #tpu.pipeline_mode<synchronous>, transform_indices = @transform_6, window_bounds = array<i64: 1, 128>}, {pipeline_mode = #tpu.pipeline_mode<synchronous>, transform_indices = @transform_7, window_bounds = array<i64: 1, 128>}, {pipeline_mode = #tpu.pipeline_mode<synchronous>, transform_indices = @transform_8, window_bounds = array<i64: 1, 128>}, {pipeline_mode = #tpu.pipeline_mode<synchronous>, transform_indices = @transform_9, window_bounds = array<i64: 4, 128, 96>}, {pipeline_mode = #tpu.pipeline_mode<synchronous>, transform_indices = @transform_10, window_bounds = array<i64: 4, 1, 96>}, {pipeline_mode = #tpu.pipeline_mode<synchronous>, transform_indices = @transform_11, window_bounds = array<i64: 4, 32, 128>}, {pipeline_mode = #tpu.pipeline_mode<synchronous>, transform_indices = @transform_12, window_bounds = array<i64: 1, 128>}, {pipeline_mode = #tpu.pipeline_mode<synchronous>, transform_indices = @transform_13, window_bounds = array<i64: 1, 128>}, {pipeline_mode = #tpu.pipeline_mode<synchronous>, transform_indices = @transform_14, window_bounds = array<i64: 1, 128>}, {pipeline_mode = #tpu.pipeline_mode<synchronous>, transform_indices = @transform_15, window_bounds = array<i64: 128, 128>}, {pipeline_mode = #tpu.pipeline_mode<synchronous>, transform_indices = @transform_16, window_bounds = array<i64: 1, 128>}, {pipeline_mode = #tpu.pipeline_mode<synchronous>, transform_indices = @transform_17, window_bounds = array<i64: 128, 128>}, {pipeline_mode = #tpu.pipeline_mode<synchronous>, transform_indices = @transform_18, window_bounds = array<i64: 1, 128>}, {pipeline_mode = #tpu.pipeline_mode<synchronous>, transform_indices = @transform_19, window_bounds = array<i64: 3, 128>}, {pipeline_mode = #tpu.pipeline_mode<synchronous>, transform_indices = @transform_20, window_bounds = array<i64: 1, 128>}, {pipeline_mode = #tpu.pipeline_mode<synchronous>, transform_indices = @transform_21, window_bounds = array<i64: 1, 128>}, {pipeline_mode = #tpu.pipeline_mode<synchronous>, transform_indices = @transform_22, window_bounds = array<i64: 1, 128>}, {pipeline_mode = #tpu.pipeline_mode<synchronous>, transform_indices = @transform_23, window_bounds = array<i64: 128, 128>}, {pipeline_mode = #tpu.pipeline_mode<synchronous>, transform_indices = @transform_24, window_bounds = array<i64: 1, 128>}, {pipeline_mode = #tpu.pipeline_mode<synchronous>, transform_indices = @transform_25, window_bounds = array<i64: 1, 128>}, {pipeline_mode = #tpu.pipeline_mode<synchronous>, transform_indices = @transform_26, window_bounds = array<i64: 1, 128>}, {pipeline_mode = #tpu.pipeline_mode<synchronous>, transform_indices = @transform_27, window_bounds = array<i64: 128, 256>}, {pipeline_mode = #tpu.pipeline_mode<synchronous>, transform_indices = @transform_28, window_bounds = array<i64: 1, 256>}, {pipeline_mode = #tpu.pipeline_mode<synchronous>, transform_indices = @transform_29, window_bounds = array<i64: 256, 128>}, {pipeline_mode = #tpu.pipeline_mode<synchronous>, transform_indices = @transform_30, window_bounds = array<i64: 1, 128>}, {pipeline_mode = #tpu.pipeline_mode<synchronous>, transform_indices = @transform_31, window_bounds = array<i64: 1, 128>}, {pipeline_mode = #tpu.pipeline_mode<synchronous>, transform_indices = @transform_32, window_bounds = array<i64: 1, 128>}, {transform_indices = @transform_33, window_bounds = array<i64: 1, 16, 128>}]} {
    %c0 = arith.constant 0 : index
    %c0_0 = arith.constant 0 : index
    %c0_1 = arith.constant 0 : index
    %0 = vector.load %arg1[%c0, %c0_0, %c0_1] : memref<1x16x128xf32, #tpu.memory_space<vmem>>, vector<1x16x128xf32>
    %1 = vector.shape_cast %0 : vector<1x16x128xf32> to vector<16x128xf32>
    %c0_2 = arith.constant 0 : index
    %c0_3 = arith.constant 0 : index
    %2 = vector.load %arg35[%c0_2, %c0_3] : memref<16x128xf32, #tpu.memory_space<vmem>>, vector<16x128xf32>
    tpu.vector_store %arg35[%c0_2, %c0_3], %1 {strides = array<i32>} : memref<16x128xf32, #tpu.memory_space<vmem>>, vector<16x128xf32>,
    %c0_i32 = arith.constant 0 : i32
    %c2_i32 = arith.constant 2 : i32
    %3 = arith.addi %c0_i32, %c2_i32 : i32
    %c1_i32 = arith.constant 1 : i32
    scf.for %arg39 = %c0_i32 to %3 step %c1_i32  : i32 {
      %c8_i32 = arith.constant 8 : i32
      %151 = arith.muli %arg39, %c8_i32 : i32
      %152 = tpu.assume_multiple %151, 8 : i32
      %153 = arith.index_cast %152 : i32 to index
      %c0_90 = arith.constant 0 : index
      %154 = vector.load %arg35[%153, %c0_90] : memref<16x128xf32, #tpu.memory_space<vmem>>, vector<8x128xf32>
      %c0_91 = arith.constant 0 : index
      %c0_92 = arith.constant 0 : index
      %155 = vector.load %arg2[%c0_91, %c0_92] : memref<1x128xf32, #tpu.memory_space<vmem>>, vector<1x128xf32>
      %c0_93 = arith.constant 0 : index
      %c0_94 = arith.constant 0 : index
      %156 = vector.load %arg3[%c0_93, %c0_94] : memref<1x128xf32, #tpu.memory_space<vmem>>, vector<1x128xf32>
      %cst_95 = arith.constant dense<0.000000e+00> : vector<8xf32>
      %157 = vector.multi_reduction <add>, %154, %cst_95 [1] : vector<8x128xf32> to vector<8xf32>
      %158 = vector.shape_cast %157 : vector<8xf32> to vector<8x1xf32>
      %cst_96 = arith.constant 1.280000e+02 : f32
      %159 = vector.broadcast %cst_96 : f32 to vector<8x1xf32>
      %160 = arith.divf %158, %159 : vector<8x1xf32>
      %161 = vector.broadcast %160 : vector<8x1xf32> to vector<8x128xf32>
      %162 = arith.subf %154, %161 : vector<8x128xf32>
      %163 = arith.mulf %162, %162 : vector<8x128xf32>
      %cst_97 = arith.constant dense<0.000000e+00> : vector<8xf32>
      %164 = vector.multi_reduction <add>, %163, %cst_97 [1] : vector<8x128xf32> to vector<8xf32>
      %165 = vector.shape_cast %164 : vector<8xf32> to vector<8x1xf32>
      %cst_98 = arith.constant 1.280000e+02 : f32
      %166 = vector.broadcast %cst_98 : f32 to vector<8x1xf32>
      %167 = arith.divf %165, %166 : vector<8x1xf32>
      %cst_99 = arith.constant 9.99999974E-6 : f32
      %168 = vector.broadcast %cst_99 : f32 to vector<8x1xf32>
      %169 = arith.addf %167, %168 : vector<8x1xf32>
      %170 = math.rsqrt %169 : vector<8x1xf32>
      %171 = vector.broadcast %170 : vector<8x1xf32> to vector<8x128xf32>
      %172 = arith.mulf %162, %171 : vector<8x128xf32>
      %173 = vector.broadcast %155 : vector<1x128xf32> to vector<8x128xf32>
      %174 = arith.mulf %172, %173 : vector<8x128xf32>
      %175 = vector.broadcast %156 : vector<1x128xf32> to vector<8x128xf32>
      %176 = arith.addf %174, %175 : vector<8x128xf32>
      %177 = arith.truncf %176 : vector<8x128xf32> to vector<8x128xbf16>
      %c0_100 = arith.constant 0 : index
      %c0_101 = arith.constant 0 : index
      %178 = vector.load %arg4[%c0_100, %c0_101] : memref<128x256xbf16, #tpu.memory_space<vmem>>, vector<128x256xbf16>
      %cst_102 = arith.constant dense<0.000000e+00> : vector<8x256xf32>
      %179 = tpu.matmul %177, %178, %cst_102 {dimension_numbers = #tpu.dot_dimension_numbers<[1], [0], [0], [1], [0, 0, 1, 1], [], []>} : vector<8x128xbf16>, vector<128x256xbf16>, vector<8x256xf32> -> vector<8x256xf32>
      %c0_103 = arith.constant 0 : index
      %c0_104 = arith.constant 0 : index
      %180 = vector.load %arg5[%c0_103, %c0_104] : memref<1x256xf32, #tpu.memory_space<vmem>>, vector<1x256xf32>
      %181 = vector.broadcast %180 : vector<1x256xf32> to vector<8x256xf32>
      %182 = arith.addf %179, %181 : vector<8x256xf32>
      %183 = arith.negf %182 : vector<8x256xf32>
      %184 = math.exp %183 : vector<8x256xf32>
      %cst_105 = arith.constant 1.000000e+00 : f32
      %185 = vector.broadcast %cst_105 : f32 to vector<8x256xf32>
      %186 = arith.addf %185, %184 : vector<8x256xf32>
      %187 = arith.divf %185, %186 : vector<8x256xf32>
      %188 = arith.mulf %182, %187 : vector<8x256xf32>
      %189 = arith.truncf %188 : vector<8x256xf32> to vector<8x256xbf16>
      %c0_106 = arith.constant 0 : index
      %c0_107 = arith.constant 0 : index
      %190 = vector.load %arg6[%c0_106, %c0_107] : memref<256x128xbf16, #tpu.memory_space<vmem>>, vector<256x128xbf16>
      %cst_108 = arith.constant dense<0.000000e+00> : vector<8x128xf32>
      %191 = tpu.matmul %189, %190, %cst_108 {dimension_numbers = #tpu.dot_dimension_numbers<[1], [0], [0], [1], [0, 0, 1, 1], [], []>} : vector<8x256xbf16>, vector<256x128xbf16>, vector<8x128xf32> -> vector<8x128xf32>
      %c0_109 = arith.constant 0 : index
      %c0_110 = arith.constant 0 : index
      %192 = vector.load %arg7[%c0_109, %c0_110] : memref<1x128xf32, #tpu.memory_space<vmem>>, vector<1x128xf32>
      %193 = vector.broadcast %192 : vector<1x128xf32> to vector<8x128xf32>
      %194 = arith.addf %191, %193 : vector<8x128xf32>
      %cst_111 = arith.constant 5.000000e-01 : f32
      %195 = vector.broadcast %cst_111 : f32 to vector<8x128xf32>
      %196 = arith.mulf %195, %194 : vector<8x128xf32>
      %197 = arith.addf %154, %196 : vector<8x128xf32>
      %198 = arith.index_cast %152 : i32 to index
      %c0_112 = arith.constant 0 : index
      %199 = vector.load %arg35[%198, %c0_112] : memref<16x128xf32, #tpu.memory_space<vmem>>, vector<8x128xf32>
      tpu.vector_store %arg35[%198, %c0_112], %197 {strides = array<i32>} : memref<16x128xf32, #tpu.memory_space<vmem>>, vector<8x128xf32>,
    }
    %c2_i32_4 = arith.constant 2 : i32
    %c0_5 = arith.constant 0 : index
    %c0_6 = arith.constant 0 : index
    %4 = vector.load %arg35[%c0_5, %c0_6] : memref<16x128xf32, #tpu.memory_space<vmem>>, vector<16x128xf32>
    %c0_7 = arith.constant 0 : index
    %c0_8 = arith.constant 0 : index
    %5 = vector.load %arg8[%c0_7, %c0_8] : memref<1x128xf32, #tpu.memory_space<vmem>>, vector<1x128xf32>
    %c0_9 = arith.constant 0 : index
    %c0_10 = arith.constant 0 : index
    %6 = vector.load %arg9[%c0_9, %c0_10] : memref<1x128xf32, #tpu.memory_space<vmem>>, vector<1x128xf32>
    %cst = arith.constant dense<0.000000e+00> : vector<16xf32>
    %7 = vector.multi_reduction <add>, %4, %cst [1] : vector<16x128xf32> to vector<16xf32>
    %8 = vector.shape_cast %7 : vector<16xf32> to vector<16x1xf32>
    %cst_11 = arith.constant 1.280000e+02 : f32
    %9 = vector.broadcast %cst_11 : f32 to vector<16x1xf32>
    %10 = arith.divf %8, %9 : vector<16x1xf32>
    %11 = vector.broadcast %10 : vector<16x1xf32> to vector<16x128xf32>
    %12 = arith.subf %4, %11 : vector<16x128xf32>
    %13 = arith.mulf %12, %12 : vector<16x128xf32>
    %cst_12 = arith.constant dense<0.000000e+00> : vector<16xf32>
    %14 = vector.multi_reduction <add>, %13, %cst_12 [1] : vector<16x128xf32> to vector<16xf32>
    %15 = vector.shape_cast %14 : vector<16xf32> to vector<16x1xf32>
    %cst_13 = arith.constant 1.280000e+02 : f32
    %16 = vector.broadcast %cst_13 : f32 to vector<16x1xf32>
    %17 = arith.divf %15, %16 : vector<16x1xf32>
    %cst_14 = arith.constant 9.99999974E-6 : f32
    %18 = vector.broadcast %cst_14 : f32 to vector<16x1xf32>
    %19 = arith.addf %17, %18 : vector<16x1xf32>
    %20 = math.rsqrt %19 : vector<16x1xf32>
    %21 = vector.broadcast %20 : vector<16x1xf32> to vector<16x128xf32>
    %22 = arith.mulf %12, %21 : vector<16x128xf32>
    %23 = vector.broadcast %5 : vector<1x128xf32> to vector<16x128xf32>
    %24 = arith.mulf %22, %23 : vector<16x128xf32>
    %25 = vector.broadcast %6 : vector<1x128xf32> to vector<16x128xf32>
    %26 = arith.addf %24, %25 : vector<16x128xf32>
    %27 = arith.truncf %26 : vector<16x128xf32> to vector<16x128xbf16>
    %c0_15 = arith.constant 0 : index
    %c0_16 = arith.constant 0 : index
    %28 = vector.load %arg36[%c0_15, %c0_16] : memref<16x128xbf16, #tpu.memory_space<vmem>>, vector<16x128xbf16>
    tpu.vector_store %arg36[%c0_15, %c0_16], %27 {strides = array<i32>} : memref<16x128xbf16, #tpu.memory_space<vmem>>, vector<16x128xbf16>,
    %c0_i32_17 = arith.constant 0 : i32
    %c4_i32 = arith.constant 4 : i32
    %29 = arith.addi %c0_i32_17, %c4_i32 : i32
    %c1_i32_18 = arith.constant 1 : i32
    scf.for %arg39 = %c0_i32_17 to %29 step %c1_i32_18  : i32 {
      %151 = arith.index_cast %arg39 : i32 to index
      %c0_90 = arith.constant 0 : index
      %c0_91 = arith.constant 0 : index
      %152 = vector.load %arg10[%151, %c0_90, %c0_91] : memref<4x128x96xbf16, #tpu.memory_space<vmem>>, vector<1x128x96xbf16>
      %153 = vector.shape_cast %152 : vector<1x128x96xbf16> to vector<128x96xbf16>
      %154 = arith.index_cast %arg39 : i32 to index
      %c0_92 = arith.constant 0 : index
      %c0_93 = arith.constant 0 : index
      %155 = vector.load %arg11[%154, %c0_92, %c0_93] : memref<4x1x96xf32, #tpu.memory_space<vmem>>, vector<1x1x96xf32>
      %156 = vector.shape_cast %155 : vector<1x1x96xf32> to vector<1x96xf32>
      %c0_94 = arith.constant 0 : index
      %c0_95 = arith.constant 0 : index
      %157 = vector.load %arg36[%c0_94, %c0_95] : memref<16x128xbf16, #tpu.memory_space<vmem>>, vector<16x128xbf16>
      %cst_96 = arith.constant dense<0.000000e+00> : vector<16x96xf32>
      %158 = tpu.matmul %157, %153, %cst_96 {dimension_numbers = #tpu.dot_dimension_numbers<[1], [0], [0], [1], [0, 0, 1, 1], [], []>} : vector<16x128xbf16>, vector<128x96xbf16>, vector<16x96xf32> -> vector<16x96xf32>
      %159 = vector.broadcast %156 : vector<1x96xf32> to vector<16x96xf32>
      %160 = arith.addf %158, %159 : vector<16x96xf32>
      %161 = vector.extract_strided_slice %160 {offsets = [0, 0], sizes = [16, 32], strides = [1, 1]} : vector<16x96xf32> to vector<16x32xf32>
      %162 = arith.truncf %161 : vector<16x32xf32> to vector<16x32xbf16>
      %163 = vector.extract_strided_slice %160 {offsets = [0, 32], sizes = [16, 32], strides = [1, 1]} : vector<16x96xf32> to vector<16x32xf32>
      %c0_97 = arith.constant 0 : index
      %c0_98 = arith.constant 0 : index
      %164 = vector.load %arg37[%c0_97, %c0_98] : memref<16x32xf32, #tpu.memory_space<vmem>>, vector<16x32xf32>
      tpu.vector_store %arg37[%c0_97, %c0_98], %163 {strides = array<i32>} : memref<16x32xf32, #tpu.memory_space<vmem>>, vector<16x32xf32>,
      %165 = vector.extract_strided_slice %160 {offsets = [0, 64], sizes = [16, 32], strides = [1, 1]} : vector<16x96xf32> to vector<16x32xf32>
      %c0_99 = arith.constant 0 : index
      %c0_100 = arith.constant 0 : index
      %166 = vector.load %arg38[%c0_99, %c0_100] : memref<16x32xf32, #tpu.memory_space<vmem>>, vector<16x32xf32>
      tpu.vector_store %arg38[%c0_99, %c0_100], %165 {strides = array<i32>} : memref<16x32xf32, #tpu.memory_space<vmem>>, vector<16x32xf32>,
      %cst_101 = arith.constant 0xFF800000 : f32
      %167 = vector.broadcast %cst_101 : f32 to vector<16x1xf32>
      %cst_102 = arith.constant 0.000000e+00 : f32
      %168 = vector.broadcast %cst_102 : f32 to vector<16x1xf32>
      %cst_103 = arith.constant 0.000000e+00 : f32
      %169 = vector.broadcast %cst_103 : f32 to vector<16x32xf32>
      %c0_i32_104 = arith.constant 0 : i32
      %c2_i32_105 = arith.constant 2 : i32
      %170 = arith.addi %c0_i32_104, %c2_i32_105 : i32
      %c1_i32_106 = arith.constant 1 : i32
      %171:3 = scf.for %arg40 = %c0_i32_104 to %170 step %c1_i32_106 iter_args(%arg41 = %167, %arg42 = %168, %arg43 = %169) -> (vector<16x1xf32>, vector<16x1xf32>, vector<16x32xf32>)  : i32 {
        %c8_i32 = arith.constant 8 : i32
        %183 = arith.muli %arg40, %c8_i32 : i32
        %184 = tpu.assume_multiple %183, 8 : i32
        %185 = arith.index_cast %184 : i32 to index
        %c0_115 = arith.constant 0 : index
        %186 = vector.load %arg37[%185, %c0_115] : memref<16x32xf32, #tpu.memory_space<vmem>>, vector<8x32xf32>
        %187 = arith.truncf %186 : vector<8x32xf32> to vector<8x32xbf16>
        %188 = arith.index_cast %184 : i32 to index
        %c0_116 = arith.constant 0 : index
        %189 = vector.load %arg38[%188, %c0_116] : memref<16x32xf32, #tpu.memory_space<vmem>>, vector<8x32xf32>
        %190 = arith.truncf %189 : vector<8x32xf32> to vector<8x32xbf16>
        %cst_117 = arith.constant dense<0.000000e+00> : vector<16x8xf32>
        %191 = tpu.matmul %162, %187, %cst_117 {dimension_numbers = #tpu.dot_dimension_numbers<[1], [1], [0], [0], [0, 0, 1, 0], [], []>} : vector<16x32xbf16>, vector<8x32xbf16>, vector<16x8xf32> -> vector<16x8xf32>
        %cst_118 = arith.constant dense<0xFF800000> : vector<16xf32>
        %192 = vector.multi_reduction <maximumf>, %191, %cst_118 [1] : vector<16x8xf32> to vector<16xf32>
        %193 = vector.shape_cast %192 : vector<16xf32> to vector<16x1xf32>
        %194 = arith.maximumf %arg41, %193 : vector<16x1xf32>
        %195 = arith.subf %arg41, %194 : vector<16x1xf32>
        %196 = math.exp %195 : vector<16x1xf32>
        %197 = vector.broadcast %194 : vector<16x1xf32> to vector<16x8xf32>
        %198 = arith.subf %191, %197 : vector<16x8xf32>
        %199 = arith.truncf %198 : vector<16x8xf32> to vector<16x8xbf16>
        %200 = math.exp %199 : vector<16x8xbf16>
        %201 = arith.mulf %196, %arg42 : vector<16x1xf32>
        %202 = arith.extf %200 : vector<16x8xbf16> to vector<16x8xf32>
        %cst_119 = arith.constant dense<0.000000e+00> : vector<16xf32>
        %203 = vector.multi_reduction <add>, %202, %cst_119 [1] : vector<16x8xf32> to vector<16xf32>
        %204 = vector.shape_cast %203 : vector<16xf32> to vector<16x1xf32>
        %205 = arith.addf %201, %204 : vector<16x1xf32>
        %206 = vector.broadcast %196 : vector<16x1xf32> to vector<16x32xf32>
        %207 = arith.mulf %206, %arg43 : vector<16x32xf32>
        %cst_120 = arith.constant dense<0.000000e+00> : vector<16x32xf32>
        %208 = tpu.matmul %200, %190, %cst_120 {dimension_numbers = #tpu.dot_dimension_numbers<[1], [0], [0], [1], [0, 0, 1, 1], [], []>} : vector<16x8xbf16>, vector<8x32xbf16>, vector<16x32xf32> -> vector<16x32xf32>
        %209 = arith.addf %207, %208 : vector<16x32xf32>
        scf.yield %194, %205, %209 : vector<16x1xf32>, vector<16x1xf32>, vector<16x32xf32>
      }
      %c2_i32_107 = arith.constant 2 : i32
      %172 = tpu.reciprocal %171#1 {approx = true} : vector<16x1xf32> -> vector<16x1xf32>
      %173 = vector.broadcast %172 : vector<16x1xf32> to vector<16x32xf32>
      %174 = arith.mulf %171#2, %173 : vector<16x32xf32>
      %c0_108 = arith.constant 0 : index
      %c0_109 = arith.constant 0 : index
      %175 = vector.load %arg35[%c0_108, %c0_109] : memref<16x128xf32, #tpu.memory_space<vmem>>, vector<16x128xf32>
      %176 = arith.truncf %174 : vector<16x32xf32> to vector<16x32xbf16>
      %177 = arith.index_cast %arg39 : i32 to index
      %c0_110 = arith.constant 0 : index
      %c0_111 = arith.constant 0 : index
      %178 = vector.load %arg12[%177, %c0_110, %c0_111] : memref<4x32x128xbf16, #tpu.memory_space<vmem>>, vector<1x32x128xbf16>
      %179 = vector.shape_cast %178 : vector<1x32x128xbf16> to vector<32x128xbf16>
      %cst_112 = arith.constant dense<0.000000e+00> : vector<16x128xf32>
      %180 = tpu.matmul %176, %179, %cst_112 {dimension_numbers = #tpu.dot_dimension_numbers<[1], [0], [0], [1], [0, 0, 1, 1], [], []>} : vector<16x32xbf16>, vector<32x128xbf16>, vector<16x128xf32> -> vector<16x128xf32>
      %181 = arith.addf %175, %180 : vector<16x128xf32>
      %c0_113 = arith.constant 0 : index
      %c0_114 = arith.constant 0 : index
      %182 = vector.load %arg35[%c0_113, %c0_114] : memref<16x128xf32, #tpu.memory_space<vmem>>, vector<16x128xf32>
      tpu.vector_store %arg35[%c0_113, %c0_114], %181 {strides = array<i32>} : memref<16x128xf32, #tpu.memory_space<vmem>>, vector<16x128xf32>,
    }
    %c4_i32_19 = arith.constant 4 : i32
    %c0_20 = arith.constant 0 : index
    %c0_21 = arith.constant 0 : index
    %30 = vector.load %arg35[%c0_20, %c0_21] : memref<16x128xf32, #tpu.memory_space<vmem>>, vector<16x128xf32>
    %c0_22 = arith.constant 0 : index
    %c0_23 = arith.constant 0 : index
    %31 = vector.load %arg13[%c0_22, %c0_23] : memref<1x128xf32, #tpu.memory_space<vmem>>, vector<1x128xf32>
    %32 = vector.broadcast %31 : vector<1x128xf32> to vector<16x128xf32>
    %33 = arith.addf %30, %32 : vector<16x128xf32>
    %c0_24 = arith.constant 0 : index
    %c0_25 = arith.constant 0 : index
    %34 = vector.load %arg35[%c0_24, %c0_25] : memref<16x128xf32, #tpu.memory_space<vmem>>, vector<16x128xf32>
    tpu.vector_store %arg35[%c0_24, %c0_25], %33 {strides = array<i32>} : memref<16x128xf32, #tpu.memory_space<vmem>>, vector<16x128xf32>,
    %c0_26 = arith.constant 0 : index
    %c0_27 = arith.constant 0 : index
    %35 = vector.load %arg35[%c0_26, %c0_27] : memref<16x128xf32, #tpu.memory_space<vmem>>, vector<16x128xf32>
    %c0_28 = arith.constant 0 : index
    %c0_29 = arith.constant 0 : index
    %36 = vector.load %arg14[%c0_28, %c0_29] : memref<1x128xf32, #tpu.memory_space<vmem>>, vector<1x128xf32>
    %c0_30 = arith.constant 0 : index
    %c0_31 = arith.constant 0 : index
    %37 = vector.load %arg15[%c0_30, %c0_31] : memref<1x128xf32, #tpu.memory_space<vmem>>, vector<1x128xf32>
    %cst_32 = arith.constant dense<0.000000e+00> : vector<16xf32>
    %38 = vector.multi_reduction <add>, %35, %cst_32 [1] : vector<16x128xf32> to vector<16xf32>
    %39 = vector.shape_cast %38 : vector<16xf32> to vector<16x1xf32>
    %cst_33 = arith.constant 1.280000e+02 : f32
    %40 = vector.broadcast %cst_33 : f32 to vector<16x1xf32>
    %41 = arith.divf %39, %40 : vector<16x1xf32>
    %42 = vector.broadcast %41 : vector<16x1xf32> to vector<16x128xf32>
    %43 = arith.subf %35, %42 : vector<16x128xf32>
    %44 = arith.mulf %43, %43 : vector<16x128xf32>
    %cst_34 = arith.constant dense<0.000000e+00> : vector<16xf32>
    %45 = vector.multi_reduction <add>, %44, %cst_34 [1] : vector<16x128xf32> to vector<16xf32>
    %46 = vector.shape_cast %45 : vector<16xf32> to vector<16x1xf32>
    %cst_35 = arith.constant 1.280000e+02 : f32
    %47 = vector.broadcast %cst_35 : f32 to vector<16x1xf32>
    %48 = arith.divf %46, %47 : vector<16x1xf32>
    %cst_36 = arith.constant 9.99999974E-6 : f32
    %49 = vector.broadcast %cst_36 : f32 to vector<16x1xf32>
    %50 = arith.addf %48, %49 : vector<16x1xf32>
    %51 = math.rsqrt %50 : vector<16x1xf32>
    %52 = vector.broadcast %51 : vector<16x1xf32> to vector<16x128xf32>
    %53 = arith.mulf %43, %52 : vector<16x128xf32>
    %54 = vector.broadcast %36 : vector<1x128xf32> to vector<16x128xf32>
    %55 = arith.mulf %53, %54 : vector<16x128xf32>
    %56 = vector.broadcast %37 : vector<1x128xf32> to vector<16x128xf32>
    %57 = arith.addf %55, %56 : vector<16x128xf32>
    %58 = arith.truncf %57 : vector<16x128xf32> to vector<16x128xbf16>
    %c0_37 = arith.constant 0 : index
    %c0_38 = arith.constant 0 : index
    %59 = vector.load %arg16[%c0_37, %c0_38] : memref<128x128xbf16, #tpu.memory_space<vmem>>, vector<128x128xbf16>
    %cst_39 = arith.constant dense<0.000000e+00> : vector<16x128xf32>
    %60 = tpu.matmul %58, %59, %cst_39 {dimension_numbers = #tpu.dot_dimension_numbers<[1], [0], [0], [1], [0, 0, 1, 1], [], []>} : vector<16x128xbf16>, vector<128x128xbf16>, vector<16x128xf32> -> vector<16x128xf32>
    %c0_40 = arith.constant 0 : index
    %c0_41 = arith.constant 0 : index
    %61 = vector.load %arg17[%c0_40, %c0_41] : memref<1x128xf32, #tpu.memory_space<vmem>>, vector<1x128xf32>
    %62 = vector.broadcast %61 : vector<1x128xf32> to vector<16x128xf32>
    %63 = arith.addf %60, %62 : vector<16x128xf32>
    %c0_42 = arith.constant 0 : index
    %c0_43 = arith.constant 0 : index
    %64 = vector.load %arg18[%c0_42, %c0_43] : memref<128x128xbf16, #tpu.memory_space<vmem>>, vector<128x128xbf16>
    %cst_44 = arith.constant dense<0.000000e+00> : vector<16x128xf32>
    %65 = tpu.matmul %58, %64, %cst_44 {dimension_numbers = #tpu.dot_dimension_numbers<[1], [0], [0], [1], [0, 0, 1, 1], [], []>} : vector<16x128xbf16>, vector<128x128xbf16>, vector<16x128xf32> -> vector<16x128xf32>
    %c0_45 = arith.constant 0 : index
    %c0_46 = arith.constant 0 : index
    %66 = vector.load %arg19[%c0_45, %c0_46] : memref<1x128xf32, #tpu.memory_space<vmem>>, vector<1x128xf32>
    %67 = vector.broadcast %66 : vector<1x128xf32> to vector<16x128xf32>
    %68 = arith.addf %65, %67 : vector<16x128xf32>
    %69 = arith.negf %68 : vector<16x128xf32>
    %70 = math.exp %69 : vector<16x128xf32>
    %cst_47 = arith.constant 1.000000e+00 : f32
    %71 = vector.broadcast %cst_47 : f32 to vector<16x128xf32>
    %72 = arith.addf %71, %70 : vector<16x128xf32>
    %73 = arith.divf %71, %72 : vector<16x128xf32>
    %74 = arith.mulf %63, %73 : vector<16x128xf32>
    %75 = tpu.iota {dimensions = array<i32: 0>} : vector<16x128xi32>
    %c0_48 = arith.constant 0 : index
    %c0_49 = arith.constant 0 : index
    %76 = vector.load %arg20[%c0_48, %c0_49] : memref<3x128xf32, #tpu.memory_space<vmem>>, vector<3x128xf32>
    %cst_50 = arith.constant 0.000000e+00 : f32
    %77 = vector.broadcast %cst_50 : f32 to vector<16x128xf32>
    %c1_i32_51 = arith.constant 1 : i32
    %78 = vector.broadcast %c1_i32_51 : i32 to vector<16x128xi32>
    %79 = arith.cmpi sge, %75, %78 : vector<16x128xi32>
    %c1_i32_52 = arith.constant 1 : i32
    %80 = tpu.dynamic_rotate %74 by %c1_i32_52 dim 0 : vector<16x128xf32>, i32 -> vector<16x128xf32>
    %cst_53 = arith.constant 0.000000e+00 : f32
    %81 = vector.broadcast %cst_53 : f32 to vector<16x128xf32>
    %82 = arith.select %79, %80, %81 : vector<16x128xi1>, vector<16x128xf32>
    %83 = vector.extract_strided_slice %76 {offsets = [0, 0], sizes = [1, 128], strides = [1, 1]} : vector<3x128xf32> to vector<1x128xf32>
    %84 = vector.broadcast %83 : vector<1x128xf32> to vector<16x128xf32>
    %85 = arith.mulf %82, %84 : vector<16x128xf32>
    %86 = arith.addf %77, %85 : vector<16x128xf32>
    %87 = vector.extract_strided_slice %76 {offsets = [1, 0], sizes = [1, 128], strides = [1, 1]} : vector<3x128xf32> to vector<1x128xf32>
    %88 = vector.broadcast %87 : vector<1x128xf32> to vector<16x128xf32>
    %89 = arith.mulf %74, %88 : vector<16x128xf32>
    %90 = arith.addf %86, %89 : vector<16x128xf32>
    %c15_i32 = arith.constant 15 : i32
    %91 = vector.broadcast %c15_i32 : i32 to vector<16x128xi32>
    %92 = arith.cmpi slt, %75, %91 : vector<16x128xi32>
    %c15_i32_54 = arith.constant 15 : i32
    %93 = tpu.dynamic_rotate %74 by %c15_i32_54 dim 0 : vector<16x128xf32>, i32 -> vector<16x128xf32>
    %cst_55 = arith.constant 0.000000e+00 : f32
    %94 = vector.broadcast %cst_55 : f32 to vector<16x128xf32>
    %95 = arith.select %92, %93, %94 : vector<16x128xi1>, vector<16x128xf32>
    %96 = vector.extract_strided_slice %76 {offsets = [2, 0], sizes = [1, 128], strides = [1, 1]} : vector<3x128xf32> to vector<1x128xf32>
    %97 = vector.broadcast %96 : vector<1x128xf32> to vector<16x128xf32>
    %98 = arith.mulf %95, %97 : vector<16x128xf32>
    %99 = arith.addf %90, %98 : vector<16x128xf32>
    %c0_56 = arith.constant 0 : index
    %c0_57 = arith.constant 0 : index
    %100 = vector.load %arg21[%c0_56, %c0_57] : memref<1x128xf32, #tpu.memory_space<vmem>>, vector<1x128xf32>
    %101 = vector.broadcast %100 : vector<1x128xf32> to vector<16x128xf32>
    %102 = arith.addf %99, %101 : vector<16x128xf32>
    %c0_58 = arith.constant 0 : index
    %c0_59 = arith.constant 0 : index
    %103 = vector.load %arg22[%c0_58, %c0_59] : memref<1x128xf32, #tpu.memory_space<vmem>>, vector<1x128xf32>
    %104 = vector.broadcast %103 : vector<1x128xf32> to vector<16x128xf32>
    %105 = arith.mulf %102, %104 : vector<16x128xf32>
    %c0_60 = arith.constant 0 : index
    %c0_61 = arith.constant 0 : index
    %106 = vector.load %arg23[%c0_60, %c0_61] : memref<1x128xf32, #tpu.memory_space<vmem>>, vector<1x128xf32>
    %107 = vector.broadcast %106 : vector<1x128xf32> to vector<16x128xf32>
    %108 = arith.addf %105, %107 : vector<16x128xf32>
    %109 = arith.negf %108 : vector<16x128xf32>
    %110 = math.exp %109 : vector<16x128xf32>
    %cst_62 = arith.constant 1.000000e+00 : f32
    %111 = vector.broadcast %cst_62 : f32 to vector<16x128xf32>
    %112 = arith.addf %111, %110 : vector<16x128xf32>
    %113 = arith.divf %111, %112 : vector<16x128xf32>
    %114 = arith.mulf %108, %113 : vector<16x128xf32>
    %115 = arith.truncf %114 : vector<16x128xf32> to vector<16x128xbf16>
    %c0_63 = arith.constant 0 : index
    %c0_64 = arith.constant 0 : index
    %116 = vector.load %arg24[%c0_63, %c0_64] : memref<128x128xbf16, #tpu.memory_space<vmem>>, vector<128x128xbf16>
    %cst_65 = arith.constant dense<0.000000e+00> : vector<16x128xf32>
    %117 = tpu.matmul %115, %116, %cst_65 {dimension_numbers = #tpu.dot_dimension_numbers<[1], [0], [0], [1], [0, 0, 1, 1], [], []>} : vector<16x128xbf16>, vector<128x128xbf16>, vector<16x128xf32> -> vector<16x128xf32>
    %c0_66 = arith.constant 0 : index
    %c0_67 = arith.constant 0 : index
    %118 = vector.load %arg25[%c0_66, %c0_67] : memref<1x128xf32, #tpu.memory_space<vmem>>, vector<1x128xf32>
    %119 = vector.broadcast %118 : vector<1x128xf32> to vector<16x128xf32>
    %120 = arith.addf %117, %119 : vector<16x128xf32>
    %c0_68 = arith.constant 0 : index
    %c0_69 = arith.constant 0 : index
    %121 = vector.load %arg35[%c0_68, %c0_69] : memref<16x128xf32, #tpu.memory_space<vmem>>, vector<16x128xf32>
    %122 = arith.addf %121, %120 : vector<16x128xf32>
    %c0_70 = arith.constant 0 : index
    %c0_71 = arith.constant 0 : index
    %123 = vector.load %arg35[%c0_70, %c0_71] : memref<16x128xf32, #tpu.memory_space<vmem>>, vector<16x128xf32>
    tpu.vector_store %arg35[%c0_70, %c0_71], %122 {strides = array<i32>} : memref<16x128xf32, #tpu.memory_space<vmem>>, vector<16x128xf32>,
    %c0_i32_72 = arith.constant 0 : i32
    %c2_i32_73 = arith.constant 2 : i32
    %124 = arith.addi %c0_i32_72, %c2_i32_73 : i32
    %c1_i32_74 = arith.constant 1 : i32
    scf.for %arg39 = %c0_i32_72 to %124 step %c1_i32_74  : i32 {
      %c8_i32 = arith.constant 8 : i32
      %151 = arith.muli %arg39, %c8_i32 : i32
      %152 = tpu.assume_multiple %151, 8 : i32
      %153 = arith.index_cast %152 : i32 to index
      %c0_90 = arith.constant 0 : index
      %154 = vector.load %arg35[%153, %c0_90] : memref<16x128xf32, #tpu.memory_space<vmem>>, vector<8x128xf32>
      %c0_91 = arith.constant 0 : index
      %c0_92 = arith.constant 0 : index
      %155 = vector.load %arg26[%c0_91, %c0_92] : memref<1x128xf32, #tpu.memory_space<vmem>>, vector<1x128xf32>
      %c0_93 = arith.constant 0 : index
      %c0_94 = arith.constant 0 : index
      %156 = vector.load %arg27[%c0_93, %c0_94] : memref<1x128xf32, #tpu.memory_space<vmem>>, vector<1x128xf32>
      %cst_95 = arith.constant dense<0.000000e+00> : vector<8xf32>
      %157 = vector.multi_reduction <add>, %154, %cst_95 [1] : vector<8x128xf32> to vector<8xf32>
      %158 = vector.shape_cast %157 : vector<8xf32> to vector<8x1xf32>
      %cst_96 = arith.constant 1.280000e+02 : f32
      %159 = vector.broadcast %cst_96 : f32 to vector<8x1xf32>
      %160 = arith.divf %158, %159 : vector<8x1xf32>
      %161 = vector.broadcast %160 : vector<8x1xf32> to vector<8x128xf32>
      %162 = arith.subf %154, %161 : vector<8x128xf32>
      %163 = arith.mulf %162, %162 : vector<8x128xf32>
      %cst_97 = arith.constant dense<0.000000e+00> : vector<8xf32>
      %164 = vector.multi_reduction <add>, %163, %cst_97 [1] : vector<8x128xf32> to vector<8xf32>
      %165 = vector.shape_cast %164 : vector<8xf32> to vector<8x1xf32>
      %cst_98 = arith.constant 1.280000e+02 : f32
      %166 = vector.broadcast %cst_98 : f32 to vector<8x1xf32>
      %167 = arith.divf %165, %166 : vector<8x1xf32>
      %cst_99 = arith.constant 9.99999974E-6 : f32
      %168 = vector.broadcast %cst_99 : f32 to vector<8x1xf32>
      %169 = arith.addf %167, %168 : vector<8x1xf32>
      %170 = math.rsqrt %169 : vector<8x1xf32>
      %171 = vector.broadcast %170 : vector<8x1xf32> to vector<8x128xf32>
      %172 = arith.mulf %162, %171 : vector<8x128xf32>
      %173 = vector.broadcast %155 : vector<1x128xf32> to vector<8x128xf32>
      %174 = arith.mulf %172, %173 : vector<8x128xf32>
      %175 = vector.broadcast %156 : vector<1x128xf32> to vector<8x128xf32>
      %176 = arith.addf %174, %175 : vector<8x128xf32>
      %177 = arith.truncf %176 : vector<8x128xf32> to vector<8x128xbf16>
      %c0_100 = arith.constant 0 : index
      %c0_101 = arith.constant 0 : index
      %178 = vector.load %arg28[%c0_100, %c0_101] : memref<128x256xbf16, #tpu.memory_space<vmem>>, vector<128x256xbf16>
      %cst_102 = arith.constant dense<0.000000e+00> : vector<8x256xf32>
      %179 = tpu.matmul %177, %178, %cst_102 {dimension_numbers = #tpu.dot_dimension_numbers<[1], [0], [0], [1], [0, 0, 1, 1], [], []>} : vector<8x128xbf16>, vector<128x256xbf16>, vector<8x256xf32> -> vector<8x256xf32>
      %c0_103 = arith.constant 0 : index
      %c0_104 = arith.constant 0 : index
      %180 = vector.load %arg29[%c0_103, %c0_104] : memref<1x256xf32, #tpu.memory_space<vmem>>, vector<1x256xf32>
      %181 = vector.broadcast %180 : vector<1x256xf32> to vector<8x256xf32>
      %182 = arith.addf %179, %181 : vector<8x256xf32>
      %183 = arith.negf %182 : vector<8x256xf32>
      %184 = math.exp %183 : vector<8x256xf32>
      %cst_105 = arith.constant 1.000000e+00 : f32
      %185 = vector.broadcast %cst_105 : f32 to vector<8x256xf32>
      %186 = arith.addf %185, %184 : vector<8x256xf32>
      %187 = arith.divf %185, %186 : vector<8x256xf32>
      %188 = arith.mulf %182, %187 : vector<8x256xf32>
      %189 = arith.truncf %188 : vector<8x256xf32> to vector<8x256xbf16>
      %c0_106 = arith.constant 0 : index
      %c0_107 = arith.constant 0 : index
      %190 = vector.load %arg30[%c0_106, %c0_107] : memref<256x128xbf16, #tpu.memory_space<vmem>>, vector<256x128xbf16>
      %cst_108 = arith.constant dense<0.000000e+00> : vector<8x128xf32>
      %191 = tpu.matmul %189, %190, %cst_108 {dimension_numbers = #tpu.dot_dimension_numbers<[1], [0], [0], [1], [0, 0, 1, 1], [], []>} : vector<8x256xbf16>, vector<256x128xbf16>, vector<8x128xf32> -> vector<8x128xf32>
      %c0_109 = arith.constant 0 : index
      %c0_110 = arith.constant 0 : index
      %192 = vector.load %arg31[%c0_109, %c0_110] : memref<1x128xf32, #tpu.memory_space<vmem>>, vector<1x128xf32>
      %193 = vector.broadcast %192 : vector<1x128xf32> to vector<8x128xf32>
      %194 = arith.addf %191, %193 : vector<8x128xf32>
      %cst_111 = arith.constant 5.000000e-01 : f32
      %195 = vector.broadcast %cst_111 : f32 to vector<8x128xf32>
      %196 = arith.mulf %195, %194 : vector<8x128xf32>
      %197 = arith.addf %154, %196 : vector<8x128xf32>
      %198 = arith.index_cast %152 : i32 to index
      %c0_112 = arith.constant 0 : index
      %199 = vector.load %arg35[%198, %c0_112] : memref<16x128xf32, #tpu.memory_space<vmem>>, vector<8x128xf32>
      tpu.vector_store %arg35[%198, %c0_112], %197 {strides = array<i32>} : memref<16x128xf32, #tpu.memory_space<vmem>>, vector<8x128xf32>,
    }
    %c2_i32_75 = arith.constant 2 : i32
    %c0_76 = arith.constant 0 : index
    %c0_77 = arith.constant 0 : index
    %125 = vector.load %arg35[%c0_76, %c0_77] : memref<16x128xf32, #tpu.memory_space<vmem>>, vector<16x128xf32>
    %c0_78 = arith.constant 0 : index
    %c0_79 = arith.constant 0 : index
    %126 = vector.load %arg32[%c0_78, %c0_79] : memref<1x128xf32, #tpu.memory_space<vmem>>, vector<1x128xf32>
    %c0_80 = arith.constant 0 : index
    %c0_81 = arith.constant 0 : index
    %127 = vector.load %arg33[%c0_80, %c0_81] : memref<1x128xf32, #tpu.memory_space<vmem>>, vector<1x128xf32>
    %cst_82 = arith.constant dense<0.000000e+00> : vector<16xf32>
    %128 = vector.multi_reduction <add>, %125, %cst_82 [1] : vector<16x128xf32> to vector<16xf32>
    %129 = vector.shape_cast %128 : vector<16xf32> to vector<16x1xf32>
    %cst_83 = arith.constant 1.280000e+02 : f32
    %130 = vector.broadcast %cst_83 : f32 to vector<16x1xf32>
    %131 = arith.divf %129, %130 : vector<16x1xf32>
    %132 = vector.broadcast %131 : vector<16x1xf32> to vector<16x128xf32>
    %133 = arith.subf %125, %132 : vector<16x128xf32>
    %134 = arith.mulf %133, %133 : vector<16x128xf32>
    %cst_84 = arith.constant dense<0.000000e+00> : vector<16xf32>
    %135 = vector.multi_reduction <add>, %134, %cst_84 [1] : vector<16x128xf32> to vector<16xf32>
    %136 = vector.shape_cast %135 : vector<16xf32> to vector<16x1xf32>
    %cst_85 = arith.constant 1.280000e+02 : f32
    %137 = vector.broadcast %cst_85 : f32 to vector<16x1xf32>
    %138 = arith.divf %136, %137 : vector<16x1xf32>
    %cst_86 = arith.constant 9.99999974E-6 : f32
    %139 = vector.broadcast %cst_86 : f32 to vector<16x1xf32>
    %140 = arith.addf %138, %139 : vector<16x1xf32>
    %141 = math.rsqrt %140 : vector<16x1xf32>
    %142 = vector.broadcast %141 : vector<16x1xf32> to vector<16x128xf32>
    %143 = arith.mulf %133, %142 : vector<16x128xf32>
    %144 = vector.broadcast %126 : vector<1x128xf32> to vector<16x128xf32>
    %145 = arith.mulf %143, %144 : vector<16x128xf32>
    %146 = vector.broadcast %127 : vector<1x128xf32> to vector<16x128xf32>
    %147 = arith.addf %145, %146 : vector<16x128xf32>
    %c0_87 = arith.constant 0 : index
    %c0_88 = arith.constant 0 : index
    %c0_89 = arith.constant 0 : index
    %148 = vector.load %arg34[%c0_87, %c0_88, %c0_89] : memref<1x16x128xf32, #tpu.memory_space<vmem>>, vector<1x16x128xf32>
    %149 = vector.shape_cast %148 : vector<1x16x128xf32> to vector<16x128xf32>
    %150 = vector.shape_cast %147 : vector<16x128xf32> to vector<1x16x128xf32>
    tpu.vector_store %arg34[%c0_87, %c0_88, %c0_89], %150 {strides = array<i32>} : memref<1x16x128xf32, #tpu.memory_space<vmem>>, vector<1x16x128xf32>,
    return
  }
  func.func @transform_0(%arg0: i32) -> (i32, i32, i32) {
    %c0_i32 = arith.constant 0 : i32
    %c0_i32_0 = arith.constant 0 : i32
    %c0_i32_1 = arith.constant 0 : i32
    return %arg0, %c0_i32, %c0_i32_0 : i32, i32, i32
  }
  func.func @transform_1(%arg0: i32) -> (i32, i32) {
    %c0_i32 = arith.constant 0 : i32
    %c0_i32_0 = arith.constant 0 : i32
    %c0_i32_1 = arith.constant 0 : i32
    return %c0_i32, %c0_i32_0 : i32, i32
  }
  func.func @transform_2(%arg0: i32) -> (i32, i32) {
    %c0_i32 = arith.constant 0 : i32
    %c0_i32_0 = arith.constant 0 : i32
    %c0_i32_1 = arith.constant 0 : i32
    return %c0_i32, %c0_i32_0 : i32, i32
  }
  func.func @transform_3(%arg0: i32) -> (i32, i32) {
    %c0_i32 = arith.constant 0 : i32
    %c0_i32_0 = arith.constant 0 : i32
    %c0_i32_1 = arith.constant 0 : i32
    return %c0_i32, %c0_i32_0 : i32, i32
  }
  func.func @transform_4(%arg0: i32) -> (i32, i32) {
    %c0_i32 = arith.constant 0 : i32
    %c0_i32_0 = arith.constant 0 : i32
    %c0_i32_1 = arith.constant 0 : i32
    return %c0_i32, %c0_i32_0 : i32, i32
  }
  func.func @transform_5(%arg0: i32) -> (i32, i32) {
    %c0_i32 = arith.constant 0 : i32
    %c0_i32_0 = arith.constant 0 : i32
    %c0_i32_1 = arith.constant 0 : i32
    return %c0_i32, %c0_i32_0 : i32, i32
  }
  func.func @transform_6(%arg0: i32) -> (i32, i32) {
    %c0_i32 = arith.constant 0 : i32
    %c0_i32_0 = arith.constant 0 : i32
    %c0_i32_1 = arith.constant 0 : i32
    return %c0_i32, %c0_i32_0 : i32, i32
  }
  func.func @transform_7(%arg0: i32) -> (i32, i32) {
    %c0_i32 = arith.constant 0 : i32
    %c0_i32_0 = arith.constant 0 : i32
    %c0_i32_1 = arith.constant 0 : i32
    return %c0_i32, %c0_i32_0 : i32, i32
  }
  func.func @transform_8(%arg0: i32) -> (i32, i32) {
    %c0_i32 = arith.constant 0 : i32
    %c0_i32_0 = arith.constant 0 : i32
    %c0_i32_1 = arith.constant 0 : i32
    return %c0_i32, %c0_i32_0 : i32, i32
  }
  func.func @transform_9(%arg0: i32) -> (i32, i32, i32) {
    %c0_i32 = arith.constant 0 : i32
    %c0_i32_0 = arith.constant 0 : i32
    %c0_i32_1 = arith.constant 0 : i32
    %c0_i32_2 = arith.constant 0 : i32
    return %c0_i32, %c0_i32_0, %c0_i32_1 : i32, i32, i32
  }
  func.func @transform_10(%arg0: i32) -> (i32, i32, i32) {
    %c0_i32 = arith.constant 0 : i32
    %c0_i32_0 = arith.constant 0 : i32
    %c0_i32_1 = arith.constant 0 : i32
    %c0_i32_2 = arith.constant 0 : i32
    return %c0_i32, %c0_i32_0, %c0_i32_1 : i32, i32, i32
  }
  func.func @transform_11(%arg0: i32) -> (i32, i32, i32) {
    %c0_i32 = arith.constant 0 : i32
    %c0_i32_0 = arith.constant 0 : i32
    %c0_i32_1 = arith.constant 0 : i32
    %c0_i32_2 = arith.constant 0 : i32
    return %c0_i32, %c0_i32_0, %c0_i32_1 : i32, i32, i32
  }
  func.func @transform_12(%arg0: i32) -> (i32, i32) {
    %c0_i32 = arith.constant 0 : i32
    %c0_i32_0 = arith.constant 0 : i32
    %c0_i32_1 = arith.constant 0 : i32
    return %c0_i32, %c0_i32_0 : i32, i32
  }
  func.func @transform_13(%arg0: i32) -> (i32, i32) {
    %c0_i32 = arith.constant 0 : i32
    %c0_i32_0 = arith.constant 0 : i32
    %c0_i32_1 = arith.constant 0 : i32
    return %c0_i32, %c0_i32_0 : i32, i32
  }
  func.func @transform_14(%arg0: i32) -> (i32, i32) {
    %c0_i32 = arith.constant 0 : i32
    %c0_i32_0 = arith.constant 0 : i32
    %c0_i32_1 = arith.constant 0 : i32
    return %c0_i32, %c0_i32_0 : i32, i32
  }
  func.func @transform_15(%arg0: i32) -> (i32, i32) {
    %c0_i32 = arith.constant 0 : i32
    %c0_i32_0 = arith.constant 0 : i32
    %c0_i32_1 = arith.constant 0 : i32
    return %c0_i32, %c0_i32_0 : i32, i32
  }
  func.func @transform_16(%arg0: i32) -> (i32, i32) {
    %c0_i32 = arith.constant 0 : i32
    %c0_i32_0 = arith.constant 0 : i32
    %c0_i32_1 = arith.constant 0 : i32
    return %c0_i32, %c0_i32_0 : i32, i32
  }
  func.func @transform_17(%arg0: i32) -> (i32, i32) {
    %c0_i32 = arith.constant 0 : i32
    %c0_i32_0 = arith.constant 0 : i32
    %c0_i32_1 = arith.constant 0 : i32
    return %c0_i32, %c0_i32_0 : i32, i32
  }
  func.func @transform_18(%arg0: i32) -> (i32, i32) {
    %c0_i32 = arith.constant 0 : i32
    %c0_i32_0 = arith.constant 0 : i32
    %c0_i32_1 = arith.constant 0 : i32
    return %c0_i32, %c0_i32_0 : i32, i32
  }
  func.func @transform_19(%arg0: i32) -> (i32, i32) {
    %c0_i32 = arith.constant 0 : i32
    %c0_i32_0 = arith.constant 0 : i32
    %c0_i32_1 = arith.constant 0 : i32
    return %c0_i32, %c0_i32_0 : i32, i32
  }
  func.func @transform_20(%arg0: i32) -> (i32, i32) {
    %c0_i32 = arith.constant 0 : i32
    %c0_i32_0 = arith.constant 0 : i32
    %c0_i32_1 = arith.constant 0 : i32
    return %c0_i32, %c0_i32_0 : i32, i32
  }
  func.func @transform_21(%arg0: i32) -> (i32, i32) {
    %c0_i32 = arith.constant 0 : i32
    %c0_i32_0 = arith.constant 0 : i32
    %c0_i32_1 = arith.constant 0 : i32
    return %c0_i32, %c0_i32_0 : i32, i32
  }
  func.func @transform_22(%arg0: i32) -> (i32, i32) {
    %c0_i32 = arith.constant 0 : i32
    %c0_i32_0 = arith.constant 0 : i32
    %c0_i32_1 = arith.constant 0 : i32
    return %c0_i32, %c0_i32_0 : i32, i32
  }
  func.func @transform_23(%arg0: i32) -> (i32, i32) {
    %c0_i32 = arith.constant 0 : i32
    %c0_i32_0 = arith.constant 0 : i32
    %c0_i32_1 = arith.constant 0 : i32
    return %c0_i32, %c0_i32_0 : i32, i32
  }
  func.func @transform_24(%arg0: i32) -> (i32, i32) {
    %c0_i32 = arith.constant 0 : i32
    %c0_i32_0 = arith.constant 0 : i32
    %c0_i32_1 = arith.constant 0 : i32
    return %c0_i32, %c0_i32_0 : i32, i32
  }
  func.func @transform_25(%arg0: i32) -> (i32, i32) {
    %c0_i32 = arith.constant 0 : i32
    %c0_i32_0 = arith.constant 0 : i32
    %c0_i32_1 = arith.constant 0 : i32
    return %c0_i32, %c0_i32_0 : i32, i32
  }
  func.func @transform_26(%arg0: i32) -> (i32, i32) {
    %c0_i32 = arith.constant 0 : i32
    %c0_i32_0 = arith.constant 0 : i32
    %c0_i32_1 = arith.constant 0 : i32
    return %c0_i32, %c0_i32_0 : i32, i32
  }
  func.func @transform_27(%arg0: i32) -> (i32, i32) {
    %c0_i32 = arith.constant 0 : i32
    %c0_i32_0 = arith.constant 0 : i32
    %c0_i32_1 = arith.constant 0 : i32
    return %c0_i32, %c0_i32_0 : i32, i32
  }
  func.func @transform_28(%arg0: i32) -> (i32, i32) {
    %c0_i32 = arith.constant 0 : i32
    %c0_i32_0 = arith.constant 0 : i32
    %c0_i32_1 = arith.constant 0 : i32
    return %c0_i32, %c0_i32_0 : i32, i32
  }
  func.func @transform_29(%arg0: i32) -> (i32, i32) {
    %c0_i32 = arith.constant 0 : i32
    %c0_i32_0 = arith.constant 0 : i32
    %c0_i32_1 = arith.constant 0 : i32
    return %c0_i32, %c0_i32_0 : i32, i32
  }
  func.func @transform_30(%arg0: i32) -> (i32, i32) {
    %c0_i32 = arith.constant 0 : i32
    %c0_i32_0 = arith.constant 0 : i32
    %c0_i32_1 = arith.constant 0 : i32
    return %c0_i32, %c0_i32_0 : i32, i32
  }
  func.func @transform_31(%arg0: i32) -> (i32, i32) {
    %c0_i32 = arith.constant 0 : i32
    %c0_i32_0 = arith.constant 0 : i32
    %c0_i32_1 = arith.constant 0 : i32
    return %c0_i32, %c0_i32_0 : i32, i32
  }
  func.func @transform_32(%arg0: i32) -> (i32, i32) {
    %c0_i32 = arith.constant 0 : i32
    %c0_i32_0 = arith.constant 0 : i32
    %c0_i32_1 = arith.constant 0 : i32
    return %c0_i32, %c0_i32_0 : i32, i32
  }
  func.func @transform_33(%arg0: i32) -> (i32, i32, i32) {
    %c0_i32 = arith.constant 0 : i32
    %c0_i32_0 = arith.constant 0 : i32
    %c0_i32_1 = arith.constant 0 : i32
    return %arg0, %c0_i32, %c0_i32_0 : i32, i32, i32
  }
}

</mosaic_0001>

<bundles_post_ra>
// kernel: tpu_custom_call.1
= control target key start
LH: loop header
LB: loop body
LE: loop exit
PB: predicated region body
PF: predicated region fallthrough
CT: control target
= control target key end

     0   :  { %s4591_s6 = smov 1   ;;  %s4592_s10 = smov 2   ;;  %s5386_s0 = inlined_call_operand.smem [shape: u32[34], index: -1, kind: input, shape index: {}] }
   0x1   :  { %s4653_s5 = sld [smem:[%s5386_s0]]   ;;  %s4593_s14 = smov 3  }
   0x2   :  { %s4658_s9 = sld [smem:[%s5386_s0 + %s4591_s6]]   ;;  %s4594_s18 = smov 4  }
   0x3   :  { %s4663_s13 = sld [smem:[%s5386_s0 + %s4592_s10]]   ;;  %s4595_s22 = smov 5  }
   0x4   :  { %s4668_s17 = sld [smem:[%s5386_s0 + %s4593_s14]]   ;;  %s4596_s26 = smov 6  }
   0x5   :  { %s4673_s21 = sld [smem:[%s5386_s0 + %s4594_s18]]   ;;  %s4597_s30 = smov 7  }
   0x6   :  { %s4678_s25 = sld [smem:[%s5386_s0 + %s4595_s22]]   ;;  %s4598_s4 = smov 8  }
   0x7   :  { %s4683_s29 = sld [smem:[%s5386_s0 + %s4596_s26]]   ;;  %s4599_s10 = smov 9  }
   0x8   :  { %5398 = sst [smem:[#allocation36_spill]] %s4658_s9  ;;  %s4600_s15 = smov 10  }
   0x9   :  { %s4688_s3 = sld [smem:[%s5386_s0 + %s4597_s30]]   ;;  %s4601_s20 = smov 11  }
   0xa   :  { %s4693_s8 = sld [smem:[%s5386_s0 + %s4598_s4]]   ;;  %s4602_s26 = smov 12  }
   0xb   :  { %s4698_s14 = sld [smem:[%s5386_s0 + %s4599_s10]]   ;;  %s4603_s1 = smov 13  }
   0xc   :  { %5399 = sst [smem:[#allocation37_spill]] %s4678_s25  ;;  %s4604_s7 = smov 14  }
   0xd   :  { %s4703_s19 = sld [smem:[%s5386_s0 + %s4600_s15]]   ;;  %s4605_s15 = smov 15  }
   0xe   :  { %s4708_s24 = sld [smem:[%s5386_s0 + %s4601_s20]]   ;;  %s4606_s22 = smov 16  }
   0xf   :  { %5400 = sst [smem:[#allocation38_spill]] %s4688_s3  ;;  %s4607_s28 = smov 17  }
  0x10   :  { %5401 = sst [smem:[#allocation39_spill]] %s4693_s8 }
  0x11   :  { %5402 = sst [smem:[#allocation40_spill]] %s4698_s14 }
  0x12   :  { %s4713_s30 = sld [smem:[%s5386_s0 + %s4602_s26]]  }
  0x13   :  { %5403 = sst [smem:[#allocation41_spill]] %s4703_s19 }
  0x14   :  { %5404 = sst [smem:[#allocation42_spill]] %s4708_s24 }
  0x15   :  { %s4718_s6 = sld [smem:[%s5386_s0 + %s4603_s1]]  }
  0x16   :  { %s4723_s12 = sld [smem:[%s5386_s0 + %s4604_s7]]   ;;  %s4608_s7 = smov 18  }
  0x17   :  { %s4728_s20 = sld [smem:[%s5386_s0 + %s4605_s15]]   ;;  %s4609_s15 = smov 19  }
  0x18   :  { %5405 = sst [smem:[#allocation43_spill]] %s4713_s30 }
  0x19   :  { %s4733_s27 = sld [smem:[%s5386_s0 + %s4606_s22]]   ;;  %s4610_s22 = smov 20  }
  0x1a   :  { %s4738_s4 = sld [smem:[%s5386_s0 + %s4607_s28]]   ;;  %s4611_s28 = smov 21  }
  0x1b   :  { %5406 = sst [smem:[#allocation44_spill]] %s4718_s6 }
  0x1c   :  { %5407 = sst [smem:[#allocation45_spill]] %s4723_s12 }
  0x1d   :  { %s4743_s30 = sld [smem:[%s5386_s0 + %s4608_s7]]   ;;  %s4612_s7 = smov 22  }
  0x1e   :  { %s4748_s24 = sld [smem:[%s5386_s0 + %s4609_s15]]   ;;  %s4613_s15 = smov 23  }
  0x1f   :  { %5408 = sst [smem:[#allocation46_spill]] %s4733_s27 }
  0x20   :  { %5409 = sst [smem:[#allocation47_spill]] %s4738_s4 }
  0x21   :  { %s4753_s27 = sld [smem:[%s5386_s0 + %s4610_s22]]   ;;  %s4614_s22 = smov 24  }
  0x22   :  { %s4758_s14 = sld [smem:[%s5386_s0 + %s4611_s28]]   ;;  %s4615_s28 = smov 25  }
  0x23   :  { %5410 = sst [smem:[#allocation48_spill]] %s4743_s30 }
  0x24   :  { %5411 = sst [smem:[#allocation49_spill]] %s4748_s24 }
  0x25   :  { %s4763_s30 = sld [smem:[%s5386_s0 + %s4612_s7]]   ;;  %s4616_s7 = smov 26  }
  0x26   :  { %s4768_s24 = sld [smem:[%s5386_s0 + %s4613_s15]]   ;;  %s4617_s15 = smov 27  }
  0x27   :  { %5412 = sst [smem:[#allocation50_spill]] %s4753_s27 }
  0x28   :  { %5413 = sst [smem:[#allocation51_spill]] %s4758_s14 }
  0x29   :  { %s4773_s27 = sld [smem:[%s5386_s0 + %s4614_s22]]   ;;  %s4618_s22 = smov 28  }
  0x2a   :  { %s4778_s14 = sld [smem:[%s5386_s0 + %s4615_s28]]   ;;  %s4619_s28 = smov 29  }
  0x2b   :  { %5414 = sst [smem:[#allocation52_spill]] %s4763_s30 }
  0x2c   :  { %s4783_s30 = sld [smem:[%s5386_s0 + %s4616_s7]]   ;;  %s4620_s7 = smov 30  }
  0x2d   :  { %s4788_s19 = sld [smem:[%s5386_s0 + %s4617_s15]]   ;;  %s4621_s15 = smov 31  }
  0x2f   :  { %5415 = sst [smem:[#allocation53_spill]] %s4773_s27 }
  0x30   :  { %5416 = sst [smem:[#allocation54_spill]] %s4778_s14 }
  0x31   :  { %s4793_s27 = sld [smem:[%s5386_s0 + %s4618_s22]]   ;;  %s4622_s22 = smov 32  }
  0x32   :  { %5417 = sst [smem:[#allocation55_spill]] %s4783_s30 }
  0x33   :  { %5418 = sst [smem:[#allocation56_spill]] %s4788_s19 }
  0x34   :  { %s4798_s14 = sld [smem:[%s5386_s0 + %s4619_s28]]   ;;  %s4623_s28 = smov 33  }
  0x35   :  { %s4803_s30 = sld [smem:[%s5386_s0 + %s4620_s7]]  }
  0x36   :  { %s4808_s19 = sld [smem:[%s5386_s0 + %s4621_s15]]  }
  0x37   :  { %5419 = sst [smem:[#allocation57_spill]] %s4793_s27 }
  0x38   :  { %s4813_s27 = sld [smem:[%s5386_s0 + %s4622_s22]]  }
  0x39   :  { %s4818_s25 = sld [smem:[%s5386_s0 + %s4623_s28]]  }
  0x3b   :  { %5420 = sst [smem:[#allocation58_spill]] %s4803_s30 }
  0x3c   :  { %5421 = sst [smem:[#allocation59_spill]] %s4808_s19 }
  0x3e   :  { %5422 = sst [smem:[#allocation60_spill]] %s4813_s27 }
  0x3f   :  { %5423 = sst [smem:[#allocation61_spill]] %s4818_s25 }
  0x40   :  { %72 = vsyncpa [#allocation7], 0 }
  0x41   :  { %74 = vsyncpa [#allocation7 + $0x1], 0 }
  0x42   :  { %75 = vsyncpa [#allocation10], 0 }
  0x43   :  { %76 = vsyncpa [#allocation13], 0 }
  0x44   :  { %77 = vsyncpa [#allocation16], 0 }
  0x45   :  { %78 = vsyncpa [#allocation19], 0 }
  0x46   :  { %79 = vsyncpa [#allocation22], 0 }
  0x47   :  { %80 = vsyncpa [#allocation25], 0 }
  0x48   :  { %81 = vsyncpa [#allocation8], 0 }
  0x49   :  { %83 = vsyncpa [#allocation8 + $0x1], 0  ;;  %s4820_s7 = smov 0   ;;  %s4822_s10 = smov 0  }
  0x4a   :  { %s4824_s11 = smov 0   ;;  %s4826_s15 = smov 0  }
  0x4b LB: > { %s5424_s12 = sld [smem:[#allocation45_spill]]  ;;  %s4844_s16 = sadd.s32 4294967295, %s4549_s15   ;;  %s4541_s10 = sphi %s4822_s10, %s5482_s10   ;;  %s4537_s7 = sphi %s4820_s7, %s5481_s7   ;;  %s4549_s15 = sphi %s4826_s15, %s5484_s15   ;;  %s4545_s11 = sphi %s4824_s11, %s5483_s11  }
  0x4c   : > { %s5425_s8 = sld [smem:[#allocation39_spill]]  ;;  %p3099_p0 = scmp.ge.s32.totalorder %s4549_s15, 1 }
  0x4d   : > { %s5426_s6 = sld [smem:[#allocation44_spill]]  ;;  %p5397_p1 = scmp.eq.s32.totalorder %s4844_s16, 0 }
  0x4e   : > { %s5427_s4 = sld [smem:[#allocation47_spill]]  ;;  %p818_p2 = scmp.lt.s32.totalorder %s4549_s15, 3 }
  0x4f   : > { %s5428_s3 = sld [smem:[#allocation38_spill]]  ;;  %s4624_s22 = smov [#allocation9]  }
  0x50   : > { %s5429_s9 = sld [smem:[#allocation36_spill]]  ;;  %p4849_p3 = pnand %p3099_p0, %p818_p2 }
  0x51   : > { %s832_s23 = sshll.u32 %s4624_s22, 4  ;;  %s857_s26 = sshll.u32 %s4673_s21, 4  ;;  %s833_s23 = int_to_ptr.vmem [resolvable:$true] %s832_s23  ;;  %s4857_s26 = int_to_ptr.hbm [resolvable:$true] %s857_s26 }
  0x52   : > { %p3710_p5 = pneg %p4849_p3  ;;  %s4625_s1 = smov [#allocation12]  }
  0x53   : > { %s4865_s2 = sshll.u32 %s4625_s1, 4 }
  0x54   : > { %p4861_p6 = pnand %p3710_p5, %p5397_p1  ;;  %5432 = sst [smem:[#allocation62_spill]] %s4865_s2 }
  0x55   : > { %s884_s22 = sshll.u32 %s5428_s3, 4  ;;  %s4869_s22 = int_to_ptr.hbm [resolvable:$true] %s884_s22 }
  0x56   : > { %s830_s0 = sshll.u32 %s5429_s9, 4  ;;  %p4874_p8 = pneg %p4861_p6  ;;  %s4841_s0 = int_to_ptr.hbm [resolvable:$true] %s830_s0 }
  0x57   : > { %s4029_s25 = sshra.s32 %s4841_s0, 4  ;;  %s4036_s1 = scalar_lea.hbm %s5429_s9, 1  ;;  %s4030_s25 = int_to_ptr.hbm [resolvable:$true] %s4029_s25 }
  0x58   : > { %s4031_s27 = scalar_lea.hbm %s4030_s25, 1  ;;  %p4037_p11 = scmp.lt.s32.totalorder %s4030_s25, %s5429_s9 }
  0x59   : > { %p4032_p7 = scmp.ne.s32.totalorder %s4030_s25, %s4031_s27  ;;  %p4038_p12 = scmp.lt.s32.totalorder %s4036_s1, %s4031_s27 }
  0x5b   : > { %p4034_p9 = pnand %p4874_p8, %p4032_p7  ;;  %p4039_p13 = por %p4038_p12, %p4037_p11 }
  0x5d   : > { %p4035_p10 = pneg %p4034_p9 }
  0x5f   : > { %p4040_p0 = pnand %p4039_p13, %p4035_p10 }
  0x61   : > { %4043 = shalt.err (!%p4040_p0)
}
  0x62   : > { %3713 = dma.hbm_to_vmem [thread:$0]  (!%p4861_p6), %s4841_s0, 16, %s833_s23, [#allocation10]  }
  0x63   : > { %s4059_s2 = sshra.s32 %s4857_s26, 4  ;;  %s4066_s25 = scalar_lea.hbm %s4673_s21, 2  ;;  %s4060_s2 = int_to_ptr.hbm [resolvable:$true] %s4059_s2 }
  0x64   : > { %s4061_s30 = scalar_lea.hbm %s4060_s2, 2  ;;  %p4067_p9 = scmp.lt.s32.totalorder %s4060_s2, %s4673_s21 }
  0x65   : > { %p4062_p2 = scmp.ne.s32.totalorder %s4060_s2, %s4061_s30  ;;  %p4068_p11 = scmp.lt.s32.totalorder %s4066_s25, %s4061_s30 }
  0x67   : > { %p4064_p5 = pnand %p4062_p2, %p4874_p8  ;;  %p4069_p10 = por %p4068_p11, %p4067_p9 }
  0x69   : > { %p4065_p7 = pneg %p4064_p5 }
  0x6b   : > { %p4070_p12 = pnand %p4069_p10, %p4065_p7 }
  0x6d   : > { %4073 = shalt.err (!%p4070_p12)
}
  0x6e   : > { %s5434_s27 = sld [smem:[#allocation62_spill]]  ;;  %s920_s0 = sshll.u32 %s5426_s6, 4  ;;  %s4896_s0 = int_to_ptr.hbm [resolvable:$true] %s920_s0 }
  0x6f   : > { %s4626_s23 = smov [#allocation15]   ;;  %s4089_s30 = sshra.s32 %s4869_s22, 4  ;;  %s4090_s30 = int_to_ptr.hbm [resolvable:$true] %s4089_s30 }
  0x70   : > { %s886_s9 = sshll.u32 %s4626_s23, 4  ;;  %s4091_s2 = scalar_lea.hbm %s4090_s30, 1  ;;  %s887_s9 = int_to_ptr.vmem [resolvable:$true] %s886_s9 }
  0x71   : > { %p4092_p13 = scmp.ne.s32.totalorder %s4090_s30, %s4091_s2  ;;  %s4096_s25 = scalar_lea.hbm %s5428_s3, 1 }
  0x72   : > { %p4097_p5 = scmp.lt.s32.totalorder %s4090_s30, %s5428_s3  ;;  %p4098_p7 = scmp.lt.s32.totalorder %s4096_s25, %s4091_s2 }
  0x73   : > { %p4094_p0 = pnand %p4092_p13, %p4874_p8 }
  0x74   : > { %s5435_s1 = int_to_ptr.vmem [resolvable:$true] %s5434_s27  ;;  %p4099_p9 = por %p4098_p7, %p4097_p5 }
  0x75   : > { %3719 = dma.hbm_to_vmem [thread:$0]  (!%p4861_p6), %s4857_s26, 32, %s5435_s1, [#allocation13]  }
  0x76   : > { %p4095_p2 = pneg %p4094_p0 }
  0x78   : > { %p4100_p11 = pnand %p4099_p9, %p4095_p2 }
  0x7a   : > { %4103 = shalt.err (!%p4100_p11)
}
  0x7b   : > { %3725 = dma.hbm_to_vmem [thread:$0]  (!%p4861_p6), %s4869_s22, 16, %s887_s9, [#allocation16]  }
  0x7c   : > { %s4627_s26 = smov [#allocation18]   ;;  %s943_s1 = sshll.u32 %s4728_s20, 4  ;;  %s4907_s1 = int_to_ptr.hbm [resolvable:$true] %s943_s1 }
  0x7d   : > { %s922_s27 = sshll.u32 %s4627_s26, 4  ;;  %s4119_s23 = sshra.s32 %s4896_s0, 4  ;;  %s923_s27 = int_to_ptr.vmem [resolvable:$true] %s922_s27  ;;  %s4120_s23 = int_to_ptr.hbm [resolvable:$true] %s4119_s23 }
  0x7e   : > { %s4121_s30 = scalar_lea.hbm %s4120_s23, 1  ;;  %s4126_s2 = scalar_lea.hbm %s5426_s6, 1 }
  0x7f   : > { %p4122_p10 = scmp.ne.s32.totalorder %s4120_s23, %s4121_s30  ;;  %p4127_p0 = scmp.lt.s32.totalorder %s4120_s23, %s5426_s6 }
  0x80   : > { %p4128_p2 = scmp.lt.s32.totalorder %s4126_s2, %s4121_s30 }
  0x81   : > { %p4124_p12 = pnand %p4122_p10, %p4874_p8 }
  0x82   : > { %p4129_p5 = por %p4128_p2, %p4127_p0 }
  0x83   : > { %p4125_p13 = pneg %p4124_p12 }
  0x85   : > { %p4130_p7 = pnand %p4129_p5, %p4125_p13 }
  0x87   : > { %4133 = shalt.err (!%p4130_p7)
}
  0x88   : > { %3731 = dma.hbm_to_vmem [thread:$0]  (!%p4861_p6), %s4896_s0, 16, %s923_s27, [#allocation19]  }
  0x89   : > { %s4628_s9 = smov [#allocation21]   ;;  %s989_s25 = sshll.u32 %s4768_s24, 4  ;;  %s990_s25 = int_to_ptr.hbm [resolvable:$true] %s989_s25 }
  0x8a   : > { %s945_s22 = sshll.u32 %s4628_s9, 4  ;;  %s4149_s26 = sshra.s32 %s4907_s1, 4  ;;  %s946_s22 = int_to_ptr.vmem [resolvable:$true] %s945_s22  ;;  %s4150_s26 = int_to_ptr.hbm [resolvable:$true] %s4149_s26 }
  0x8b   : > { %s4151_s23 = scalar_lea.hbm %s4150_s26, 64  ;;  %s4156_s30 = scalar_lea.hbm %s4728_s20, 64 }
  0x8c   : > { %p4152_p9 = scmp.ne.s32.totalorder %s4150_s26, %s4151_s23  ;;  %p4157_p12 = scmp.lt.s32.totalorder %s4150_s26, %s4728_s20 }
  0x8d   : > { %p4158_p13 = scmp.lt.s32.totalorder %s4156_s30, %s4151_s23 }
  0x8e   : > { %p4154_p11 = pnand %p4152_p9, %p4874_p8 }
  0x8f   : > { %p4159_p0 = por %p4158_p13, %p4157_p12 }
  0x90   : > { %p4155_p10 = pneg %p4154_p11 }
  0x92   : > { %p4160_p2 = pnand %p4159_p0, %p4155_p10 }
  0x94   : > { %4163 = shalt.err (!%p4160_p2)
}
  0x95   : > { %s4629_s2 = smov 64   ;;  %s4630_s0 = smov 4  }
  0x96   : > { %3737 = dma.hbm_to_vmem [thread:$0]  (!%p4861_p6), %s4907_s1, 1024, %s946_s22, [#allocation22], %s4629_s2, %s4629_s2, %s4630_s0  }
  0x97   : > { %s4631_s27 = smov [#allocation24]   ;;  %s842_s26 = sshll.u32 %s4663_s13, 4  ;;  %s4930_s26 = int_to_ptr.hbm [resolvable:$true] %s842_s26 }
  0x98   : > { %s991_s9 = sshll.u32 %s4631_s27, 4  ;;  %s4179_s23 = sshra.s32 %s990_s25, 4  ;;  %s992_s9 = int_to_ptr.vmem [resolvable:$true] %s991_s9  ;;  %s4180_s23 = int_to_ptr.hbm [resolvable:$true] %s4179_s23 }
  0x99   : > { %s4181_s30 = scalar_lea.hbm %s4180_s23, 64  ;;  %s4186_s3 = scalar_lea.hbm %s4768_s24, 64 }
  0x9a   : > { %p4182_p5 = scmp.ne.s32.totalorder %s4180_s23, %s4181_s30  ;;  %p4187_p11 = scmp.lt.s32.totalorder %s4180_s23, %s4768_s24 }
  0x9b   : > { %p4188_p10 = scmp.lt.s32.totalorder %s4186_s3, %s4181_s30 }
  0x9c   : > { %p4184_p7 = pnand %p4182_p5, %p4874_p8 }
  0x9d   : > { %p4189_p12 = por %p4188_p10, %p4187_p11 }
  0x9e   : > { %p4185_p9 = pneg %p4184_p7 }
  0xa0   : > { %p4190_p13 = pnand %p4189_p12, %p4185_p9 }
  0xa2   : > { %4193 = shalt.err (!%p4190_p13)
}
  0xa3   : > { %3743 = dma.hbm_to_vmem [thread:$0]  (!%p4861_p6), %s990_s25, 1024, %s992_s9, [#allocation25], %s4629_s2, %s4629_s2, %s4630_s0  }
  0xa4   : > { %s872_s1 = sshll.u32 %s4683_s29, 4  ;;  %s4632_s22 = smov [#allocation11]   ;;  %s4942_s1 = int_to_ptr.hbm [resolvable:$true] %s872_s1 }
  0xa5   : > { %s844_s27 = sshll.u32 %s4632_s22, 4  ;;  %s4209_s3 = sshra.s32 %s4930_s26, 4  ;;  %s845_s27 = int_to_ptr.vmem [resolvable:$true] %s844_s27  ;;  %s4210_s3 = int_to_ptr.hbm [resolvable:$true] %s4209_s3 }
  0xa6   : > { %s4211_s23 = scalar_lea.hbm %s4210_s3, 1  ;;  %s4216_s30 = scalar_lea.hbm %s4663_s13, 1 }
  0xa7   : > { %p4212_p0 = scmp.ne.s32.totalorder %s4210_s3, %s4211_s23  ;;  %p4217_p7 = scmp.lt.s32.totalorder %s4210_s3, %s4663_s13 }
  0xa8   : > { %p4218_p9 = scmp.lt.s32.totalorder %s4216_s30, %s4211_s23 }
  0xa9   : > { %p4214_p2 = pnand %p4212_p0, %p4874_p8 }
  0xaa   : > { %p4219_p11 = por %p4218_p9, %p4217_p7 }
  0xab   : > { %p4215_p5 = pneg %p4214_p2 }
  0xad   : > { %p4220_p10 = pnand %p4219_p11, %p4215_p5 }
  0xaf   : > { %4223 = shalt.err (!%p4220_p10)
}
  0xb0   : > { %3716 = dma.hbm_to_vmem [thread:$0]  (!%p4861_p6), %s4930_s26, 16, %s845_s27, [#allocation10]  }
  0xb1   : > { %s4633_s25 = smov [#allocation14]   ;;  %s896_s22 = sshll.u32 %s5425_s8, 4  ;;  %s4953_s22 = int_to_ptr.hbm [resolvable:$true] %s896_s22 }
  0xb2   : > { %s874_s9 = sshll.u32 %s4633_s25, 4  ;;  %s4239_s3 = sshra.s32 %s4942_s1, 4  ;;  %s875_s9 = int_to_ptr.vmem [resolvable:$true] %s874_s9  ;;  %s4240_s3 = int_to_ptr.hbm [resolvable:$true] %s4239_s3 }
  0xb3   : > { %s4241_s23 = scalar_lea.hbm %s4240_s3, 1  ;;  %s4246_s30 = scalar_lea.hbm %s4683_s29, 1 }
  0xb4   : > { %p4242_p12 = scmp.ne.s32.totalorder %s4240_s3, %s4241_s23  ;;  %p4247_p2 = scmp.lt.s32.totalorder %s4240_s3, %s4683_s29 }
  0xb5   : > { %p4248_p5 = scmp.lt.s32.totalorder %s4246_s30, %s4241_s23 }
  0xb6   : > { %p4244_p13 = pnand %p4242_p12, %p4874_p8 }
  0xb7   : > { %p4249_p7 = por %p4248_p5, %p4247_p2 }
  0xb8   : > { %p4245_p0 = pneg %p4244_p13 }
  0xba   : > { %p4250_p9 = pnand %p4249_p7, %p4245_p0 }
  0xbc   : > { %4253 = shalt.err (!%p4250_p9)
}
  0xbd   : > { %3722 = dma.hbm_to_vmem [thread:$0]  (!%p4861_p6), %s4942_s1, 16, %s875_s9, [#allocation13]  }
  0xbe   : > { %s932_s26 = sshll.u32 %s5424_s12, 4  ;;  %s4634_s27 = smov [#allocation17]   ;;  %s4964_s26 = int_to_ptr.hbm [resolvable:$true] %s932_s26 }
  0xbf   : > { %s898_s25 = sshll.u32 %s4634_s27, 4  ;;  %s4269_s3 = sshra.s32 %s4953_s22, 4  ;;  %s899_s25 = int_to_ptr.vmem [resolvable:$true] %s898_s25  ;;  %s4270_s3 = int_to_ptr.hbm [resolvable:$true] %s4269_s3 }
  0xc0   : > { %s4271_s23 = scalar_lea.hbm %s4270_s3, 1  ;;  %s4276_s30 = scalar_lea.hbm %s5425_s8, 1 }
  0xc1   : > { %p4272_p11 = scmp.ne.s32.totalorder %s4270_s3, %s4271_s23  ;;  %p4277_p13 = scmp.lt.s32.totalorder %s4270_s3, %s5425_s8 }
  0xc2   : > { %p4278_p0 = scmp.lt.s32.totalorder %s4276_s30, %s4271_s23 }
  0xc3   : > { %p4274_p10 = pnand %p4272_p11, %p4874_p8 }
  0xc4   : > { %p4279_p2 = por %p4278_p0, %p4277_p13 }
  0xc5   : > { %p4275_p12 = pneg %p4274_p10 }
  0xc7   : > { %p4280_p5 = pnand %p4279_p2, %p4275_p12 }
  0xc9   : > { %4283 = shalt.err (!%p4280_p5)
}
  0xca   : > { %3728 = dma.hbm_to_vmem [thread:$0]  (!%p4861_p6), %s4953_s22, 16, %s899_s25, [#allocation16]  }
  0xcb   : > { %s4635_s1 = smov [#allocation20]   ;;  %s960_s27 = sshll.u32 %s5427_s4, 4  ;;  %s4975_s27 = int_to_ptr.hbm [resolvable:$true] %s960_s27 }
  0xcc   : > { %s934_s9 = sshll.u32 %s4635_s1, 4  ;;  %s4299_s3 = sshra.s32 %s4964_s26, 4  ;;  %s935_s9 = int_to_ptr.vmem [resolvable:$true] %s934_s9  ;;  %s4300_s3 = int_to_ptr.hbm [resolvable:$true] %s4299_s3 }
  0xcd   : > { %s4301_s23 = scalar_lea.hbm %s4300_s3, 1  ;;  %s4306_s30 = scalar_lea.hbm %s5424_s12, 1 }
  0xce   : > { %p4302_p7 = scmp.ne.s32.totalorder %s4300_s3, %s4301_s23  ;;  %p4307_p10 = scmp.lt.s32.totalorder %s4300_s3, %s5424_s12 }
  0xcf   : > { %p4308_p12 = scmp.lt.s32.totalorder %s4306_s30, %s4301_s23 }
  0xd0   : > { %p4304_p9 = pnand %p4302_p7, %p4874_p8 }
  0xd1   : > { %p4309_p13 = por %p4308_p12, %p4307_p10 }
  0xd2   : > { %p4305_p11 = pneg %p4304_p9 }
  0xd4   : > { %p4310_p0 = pnand %p4309_p13, %p4305_p11 }
  0xd6   : > { %4313 = shalt.err (!%p4310_p0)
}
  0xd7   : > { %3734 = dma.hbm_to_vmem [thread:$0]  (!%p4861_p6), %s4964_s26, 16, %s935_s9, [#allocation19]  }
  0xd8   : > { %s1018_s22 = sshll.u32 %s4798_s14, 4  ;;  %s4636_s25 = smov [#allocation23]   ;;  %s4986_s22 = int_to_ptr.hbm [resolvable:$true] %s1018_s22 }
  0xd9   : > { %s962_s1 = sshll.u32 %s4636_s25, 4  ;;  %s4329_s3 = sshra.s32 %s4975_s27, 4  ;;  %s963_s1 = int_to_ptr.vmem [resolvable:$true] %s962_s1  ;;  %s4330_s3 = int_to_ptr.hbm [resolvable:$true] %s4329_s3 }
  0xda   : > { %s4331_s23 = scalar_lea.hbm %s4330_s3, 64  ;;  %s4336_s30 = scalar_lea.hbm %s5427_s4, 64 }
  0xdb   : > { %p4332_p2 = scmp.ne.s32.totalorder %s4330_s3, %s4331_s23  ;;  %p4337_p9 = scmp.lt.s32.totalorder %s4330_s3, %s5427_s4 }
  0xdc   : > { %p4338_p11 = scmp.lt.s32.totalorder %s4336_s30, %s4331_s23 }
  0xdd   : > { %p4334_p5 = pnand %p4332_p2, %p4874_p8 }
  0xde   : > { %p4339_p10 = por %p4338_p11, %p4337_p9 }
  0xdf   : > { %p4335_p7 = pneg %p4334_p5 }
  0xe1   : > { %p4340_p12 = pnand %p4339_p10, %p4335_p7 }
  0xe3   : > { %4343 = shalt.err (!%p4340_p12)
}
  0xe4   : > { %3740 = dma.hbm_to_vmem [thread:$0]  (!%p4861_p6), %s4975_s27, 1024, %s963_s1, [#allocation22], %s4629_s2, %s4629_s2, %s4630_s0  }
  0xe5   : > { %s4637_s26 = smov [#allocation26]   ;;  %s4359_s25 = sshra.s32 %s4986_s22, 4  ;;  %s4360_s25 = int_to_ptr.hbm [resolvable:$true] %s4359_s25 }
  0xe6   : > { %s1020_s9 = sshll.u32 %s4637_s26, 4  ;;  %s4361_s3 = scalar_lea.hbm %s4360_s25, 128  ;;  %s1021_s9 = int_to_ptr.vmem [resolvable:$true] %s1020_s9 }
  0xe7   : > { %p4362_p13 = scmp.ne.s32.totalorder %s4360_s25, %s4361_s3  ;;  %s4366_s23 = scalar_lea.hbm %s4798_s14, 128 }
  0xe8   : > { %p4367_p5 = scmp.lt.s32.totalorder %s4360_s25, %s4798_s14  ;;  %p4368_p7 = scmp.lt.s32.totalorder %s4366_s23, %s4361_s3 }
  0xe9   : > { %p4364_p0 = pnand %p4362_p13, %p4874_p8 }
  0xea   : > { %p4369_p9 = por %p4368_p7, %p4367_p5 }
  0xeb   : > { %p4365_p2 = pneg %p4364_p0 }
  0xed   : > { %p4370_p11 = pnand %p4369_p9, %p4365_p2 }
  0xef   : > { %4373 = shalt.err (!%p4370_p11)
}
  0xf0   : > { %3746 = dma.hbm_to_vmem [thread:$0]  (!%p4861_p6), %s4986_s22, 2048, %s1021_s9, [#allocation25], %s4629_s2, %s4629_s2, %s4630_s0  }
  0xf1   : > { %s3098_s19 = sadd.s32 4294967294, %s4549_s15   ;;  %s5012_s28 = sadd.s32 1, %s4549_s15  }
  0xf2   : > { %s93_s27 = ssub.s32 %s4549_s15, %s5012_s28  ;;  %s96_s1 = sadd.s32 1, %s4545_s11 }
  0xf3   : > { %p94_p8 = scmp.eq.s32.totalorder %s93_s27, 0  ;;  %p103_p10 = scmp.ne.s32.totalorder %s4545_s11, %s4541_s10 }
  0xf4   : > { %p104_p12 = scmp.eq.s32.totalorder %s4549_s15, 0  ;;  %p109_p13 = scmp.ne.s32.totalorder %s4541_s10, %s4537_s7 }
  0xf5   : > { %s5023_s30 = scalar_select %p94_p8, %s4545_s11, %s96_s1  }
  0xf6   : > { %p5025_p0 = por %p104_p12, %p103_p10  ;;  %p5031_p6 = por %p5397_p1, %p109_p13 }
  0xf7   : > { %p805_p2 = scmp.eq.s32.totalorder %s4844_s16, 1  ;;  %p811_p5 = scmp.eq.s32.totalorder %s3098_s19, 1 }
  0xf8   : > { %p3767_p7 = scmp.lt.s32.totalorder %s4549_s15, 2  ;;  %s1043_s0 = sand.u32 1, %s4545_s11  }
  0xf9   : > { %p5038_p9 = por %p805_p2, %p103_p10  ;;  %p5042_p11 = por %p811_p5, %p109_p13 }
  0xfa   : > { %s3113_s25 = sshll.u32 %s1043_s0, 4  ;;  %s3550_s3 = sshll.u32 %s4549_s15, 4 }
  0xfb   : > { %s5439_s9 = scalar_select %p5042_p11, 1, 0 }
  0xfc   : > { %s1052_s23 = scalar_lea.hbm %s4653_s5, %s3550_s3  ;;  %s1047_s27 = scalar_lea.vmem [#allocation6], %s3113_s25 }
  0xfd   : > { %s1055_s1 = sshll.u32 %s1047_s27, 4  ;;  %s1053_s4 = sshll.u32 %s1052_s23, 4  ;;  %s1056_s1 = int_to_ptr.vmem [resolvable:$true] %s1055_s1  ;;  %s1054_s4 = int_to_ptr.hbm [resolvable:$true] %s1053_s4 }
  0xfe   : > { %p5050_p8 = pnand %p3767_p7, %p5025_p0  ;;  %s1044_s6 = scalar_lea.sflag [#allocation7], %s1043_s0 }
  0xff   : > { %s4389_s8 = sshra.s32 %s1054_s4, 4  ;;  %s4396_s25 = scalar_lea.hbm %s4653_s5, 32  ;;  %s4390_s8 = int_to_ptr.hbm [resolvable:$true] %s4389_s8 }
 0x100   : > { %s4391_s12 = scalar_lea.hbm %s4390_s8, 16  ;;  %p4393_p12 = pneg %p5050_p8 }
 0x101   : > { %p4392_p10 = scmp.ne.s32.totalorder %s4390_s8, %s4391_s12  ;;  %p4397_p5 = scmp.lt.s32.totalorder %s4390_s8, %s4653_s5 }
 0x102   : > { %p4398_p4 = scmp.lt.s32.totalorder %s4396_s25, %s4391_s12 }
 0x103   : > { %p4394_p13 = pnand %p4393_p12, %p4392_p10 }
 0x104   : > { %p4399_p1 = por %p4398_p4, %p4397_p5 }
 0x105   : > { %p4395_p2 = pneg %p4394_p13 }
 0x107   : > { %p4400_p11 = pnand %p4399_p1, %p4395_p2 }
 0x109   : > { %4403 = shalt.err (!%p4400_p11)
}
 0x10a   : > { %s4638_s26 = smov 128   ;;  %s4639_s3 = smov 8  }
 0x10b   : > { %3750 = dma.hbm_to_vmem [thread:$0]  (!%p5050_p8), %s1054_s4, 256, %s1056_s1, %s1044_s6, %s4638_s26, %s4638_s26, %s4639_s3  }
 0x10c   : > { %1067 = sbr.rel (%p4849_p3) target bundleno = 3511 (0xdb7), region = 152  ;;  %s5063_s0 = sand.u32 (!%p4849_p3), 1, %s4541_s10  }
 0x10d   : > { %s3117_s23 = sshll.u32 (!%p4849_p3), %s5063_s0, 4  ;;  %s1070_s8 = scalar_lea.sflag (!%p4849_p3), [#allocation7], %s5063_s0 }
 0x10e   : > { %s1073_s12 = scalar_lea.vmem (!%p4849_p3), [#allocation6], %s3117_s23 }
 0x111   : > { %4504 = dma.done.wait (%p5031_p6), %s1070_s8, 256  }
 0x112   : > { %4506 = vsyncadd (%p5031_p6), %s1070_s8, 4294967040  ;;  %p5441_p1 = scmp.eq.s32.totalorder %s4844_s16, 0 }
 0x114   : > { %4508 = dma.done.wait (%p5441_p1), [#allocation10], 32   ;;  %p5442_p4 = pmov %p5441_p1 }
 0x115   : > { %p5443_p3 = pmov %p5441_p1 }
 0x116   : > { %4510 = vsyncadd (%p5442_p4), [#allocation10], 4294967264 }
 0x117   : > { %4512 = dma.done.wait (%p5443_p3), [#allocation13], 48   ;;  %p5444_p0 = pmov %p5441_p1 }
 0x119   : > { %4514 = vsyncadd (%p5444_p0), [#allocation13], 4294967248  ;;  %p5445_p7 = pmov %p5444_p0 }
 0x11a   : > { %p5446_p11 = pmov %p5444_p0 }
 0x11b   : > { %4516 = dma.done.wait (%p5445_p7), [#allocation16], 32  }
 0x11c   : > { %4518 = vsyncadd (%p5446_p11), [#allocation16], 4294967264  ;;  %p5447_p6 = pmov %p5444_p0 }
 0x11d   : > { %p5448_p8 = pmov %p5444_p0 }
 0x11e   : > { %4520 = dma.done.wait (%p5447_p6), [#allocation19], 32  }
 0x11f   : > { %4522 = vsyncadd (%p5448_p8), [#allocation19], 4294967264  ;;  %p5449_p10 = pmov %p5444_p0 }
 0x120   : > { %p5450_p12 = pmov %p5444_p0 }
 0x121   : > { %4524 = dma.done.wait (%p5449_p10), [#allocation22], 2048  }
 0x122   : > { %4526 = vsyncadd (%p5450_p12), [#allocation22], 4294965248  ;;  %p5451_p13 = pmov %p5444_p0 }
 0x123   : > { %p5452_p2 = pmov %p5444_p0 }
 0x124   : > { %4528 = dma.done.wait (%p5451_p13), [#allocation25], 3072  }
 0x125   : > { %4530 = vsyncadd (%p5452_p2), [#allocation25], 4294964224  ;;  %v1218_v0 = vld [vmem:[%s1073_s12] sm:$0xff]  ;;  %v1219_v1 = vld [vmem:[%s1073_s12 + $0x8] sm:$0xff]  ;;  %s5095_s6 = scalar_lea.vmem [#allocation27], %s3117_s23  ;;  %s5097_s4 = smov 0  }
 0x126   : > { %1220 = vst [vmem:[#allocation2] sm:$0xff] %v1218_v0 }
 0x127   : > { %1221 = vst [vmem:[#allocation2 + $0x8] sm:$0xff] %v1219_v1 }
 0x128 LB: >> { %s3131_s18 = sshll.u32 %s4553_s4, 3  ;;  %v4640_v3 = vmov 128.0   ;;  %v3190_v4 = vld [vmem:[%s4668_s17 + $0x70] sm:$0xf]  ;;  %v3566_v5 = vld [vmem:[%s4668_s17 + $0x74] sm:$0xf0]  ;;  %s4553_s4 = sphi %s5097_s4, %s1227_s4  }
 0x129   : >> { %s5103_s2 = scalar_lea.vmem [#allocation2], %s3131_s18  ;;  %3950 = vrcp.f32 %v4640_v3  ;;  %v3565_v6 = vld [vmem:[%s4668_s17 + $0x74] sm:$0xf]  ;;  %v3191_v7 = vor.u32 %v3566_v5, %v3190_v4  ;;  %v3192_v8 = vld [vmem:[%s4668_s17 + $0x78] sm:$0xf0]  ;;  %s5453_s27 = sld [smem:[#allocation37_spill]] }
 0x12a   : >> { %v3195_v9 = vor.u32 %v3565_v6, %v3192_v8  ;;  %v3182_v20 = vld [vmem:[%s4668_s17 + $0x60] sm:$0xf]  ;;  %v3564_v21 = vld [vmem:[%s4668_s17 + $0x64] sm:$0xf0]  ;;  %v3563_v22 = vld [vmem:[%s4668_s17 + $0x64] sm:$0xf] }
 0x12b   : >> { %1371 = vmatpush.bf16.msra.mxu0 %v3191_v7  ;;  %v3183_v23 = vor.u32 %v3564_v21, %v3182_v20  ;;  %v3184_v24 = vld [vmem:[%s4668_s17 + $0x68] sm:$0xf0]  ;;  %v3174_v26 = vld [vmem:[%s4668_s17 + $0x50] sm:$0xf]  ;;  %v3562_v27 = vld [vmem:[%s4668_s17 + $0x54] sm:$0xf0] }
 0x12c   : >> { %1384 = vmatpush.bf16.msra.mxu1 %v3195_v9  ;;  %v3187_v25 = vor.u32 %v3563_v22, %v3184_v24  ;;  %v3561_v28 = vld [vmem:[%s4668_s17 + $0x54] sm:$0xf]  ;;  %v3175_v29 = vor.u32 %v3562_v27, %v3174_v26  ;;  %v3176_v30 = vld [vmem:[%s4668_s17 + $0x58] sm:$0xf0]  ;;  %v3166_v32 = vld [vmem:[%s4668_s17 + $0x40] sm:$0xf] }
 0x12d   : >> { %v3179_v31 = vor.u32 %v3561_v28, %v3176_v30  ;;  %v3560_v33 = vld [vmem:[%s4668_s17 + $0x44] sm:$0xf0]  ;;  %v3559_v34 = vld [vmem:[%s4668_s17 + $0x44] sm:$0xf]  ;;  %v3168_v36 = vld [vmem:[%s4668_s17 + $0x48] sm:$0xf0] }
 0x12e   : >> { %v5106_v2 = vld [vmem:[%s5103_s2] sm:$0xff]  ;;  %v3167_v35 = vor.u32 %v3560_v33, %v3166_v32  ;;  %v3171_v37 = vor.u32 %v3559_v34, %v3168_v36  ;;  %v3158_v38 = vld [vmem:[%s4668_s17 + $0x30] sm:$0xf]  ;;  %v3558_v39 = vld [vmem:[%s4668_s17 + $0x34] sm:$0xf0]  ;;  %s1227_s4 = sadd.s32 1, %s4553_s4  }
 0x12f   : >> { %1233 = vadd.xlane.f32.xlu0 %v5106_v2  ;;  %v3951_v10 = vpop.eup %3950  ;;  %1372 = vmatpush.bf16.msra.mxu0 %v3183_v23  ;;  %v3557_v40 = vld [vmem:[%s4668_s17 + $0x34] sm:$0xf]  ;;  %v3159_v41 = vor.u32 %v3558_v39, %v3158_v38  ;;  %v3160_v42 = vld [vmem:[%s4668_s17 + $0x38] sm:$0xf0]  ;;  %v3150_v44 = vld [vmem:[%s4668_s17 + $0x20] sm:$0xf] }
 0x130   : >> { %v1236_v11 = vmul.f32 128.0, %v3951_v10  ;;  %vm1240_vm0 = vweird.f32 %v3951_v10  ;;  %1385 = vmatpush.bf16.msra.mxu1 %v3187_v25  ;;  %v3163_v43 = vor.u32 %v3557_v40, %v3160_v42  ;;  %v3556_v45 = vld [vmem:[%s4668_s17 + $0x24] sm:$0xf0]  ;;  %v3555_v46 = vld [vmem:[%s4668_s17 + $0x24] sm:$0xf]  ;;  %v3581_v20 = vld [vmem:[%s5453_s27 + $0x70] sm:$0xff] }
 0x131   : >> { %v3151_v47 = vor.u32 %v3556_v45, %v3150_v44  ;;  %v3152_v48 = vld [vmem:[%s4668_s17 + $0x28] sm:$0xf0]  ;;  %v3142_v50 = vld [vmem:[%s4668_s17 + $0x10] sm:$0xf]  ;;  %v3554_v51 = vld [vmem:[%s4668_s17 + $0x14] sm:$0xf0] }
 0x132   : >> { %v1237_v12 = vsub.f32 1.0, %v1236_v11  ;;  %v3155_v49 = vor.u32 %v3555_v46, %v3152_v48  ;;  %v3553_v52 = vld [vmem:[%s4668_s17 + $0x14] sm:$0xf]  ;;  %v3143_v53 = vor.u32 %v3554_v51, %v3142_v50  ;;  %v3144_v54 = vld [vmem:[%s4668_s17 + $0x18] sm:$0xf0]  ;;  %v3580_v21 = vld [vmem:[%s5453_s27 + $0x68] sm:$0xff] }
 0x133   : >> { %1373 = vmatpush.bf16.msra.mxu0 %v3175_v29  ;;  %v3134_v55 = vld [vmem:[%s4668_s17] sm:$0xf]  ;;  %v3552_v56 = vld [vmem:[%s4668_s17 + $0x4] sm:$0xf0]  ;;  %v3147_v57 = vor.u32 %v3553_v52, %v3144_v54  ;;  %v3551_v58 = vld [vmem:[%s4668_s17 + $0x4] sm:$0xf] }
 0x134   : >> { %v1238_v13 = vmul.f32 %v3951_v10, %v1237_v12  ;;  %1386 = vmatpush.bf16.msra.mxu1 %v3179_v31  ;;  %v3136_v59 = vld [vmem:[%s4668_s17 + $0x8] sm:$0xf0]  ;;  %v3135_v60 = vor.u32 %v3552_v56, %v3134_v55  ;;  %v3947_v8 = vld [vmem:[#allocation9] ss:$0 sm:$0xff]  ;;  %v3948_v11 = vld [vmem:[#allocation11] ss:$0 sm:$0xff] }
 0x135   : >> { %v3139_v61 = vor.u32 %v3551_v58, %v3136_v59  ;;  %v3571_v22 = vld [vmem:[%s5453_s27 + $0x20] sm:$0xff]  ;;  %v3570_v24 = vld [vmem:[%s5453_s27 + $0x18] sm:$0xff]  ;;  %v3569_v26 = vld [vmem:[%s5453_s27 + $0x10] sm:$0xff]  ;;  %p1224_p5 = scmp.ge.s32.totalorder %s1227_s4, 2  }
 0x136   : >> { %v1239_v14 = vadd.f32 %v3951_v10, %v1238_v13  ;;  %v3579_v23 = vld [vmem:[%s5453_s27 + $0x60] sm:$0xff]  ;;  %v3578_v25 = vld [vmem:[%s5453_s27 + $0x58] sm:$0xff]  ;;  %v3577_v27 = vld [vmem:[%s5453_s27 + $0x50] sm:$0xff]  ;;  %s5176_s1 = smov (%p1224_p5), 0  }
 0x137   : >> { %1374 = vmatpush.bf16.msra.mxu0 %v3167_v35  ;;  %v3568_v28 = vld [vmem:[%s5453_s27 + $0x8] sm:$0xff]  ;;  %v1285_v30 = vld [vmem:[#allocation12] sm:$0x3]  ;;  %v3567_v33 = vld [vmem:[%s5453_s27] sm:$0xff] }
 0x138   : >> { %v5113_v15 = vsel %vm1240_vm0, %v3951_v10, %v1239_v14  ;;  %1387 = vmatpush.bf16.msra.mxu1 %v3171_v37  ;;  %v3576_v29 = vld [vmem:[%s5453_s27 + $0x48] sm:$0xff]  ;;  %v1287_v31 = vperm.slane %v1285_v30, 0  ;;  %v1288_v32 = vperm.slane %v1285_v30, 1  ;;  %v3575_v34 = vld [vmem:[%s5453_s27 + $0x40] sm:$0xff] }
 0x13b   : >> { %1375 = vmatpush.bf16.msra.mxu0 %v3159_v41 }
 0x13c   : >> { %1388 = vmatpush.bf16.msra.mxu1 %v3163_v43 }
 0x13f   : >> { %1376 = vmatpush.bf16.msra.mxu0 %v3151_v47 }
 0x140   : >> { %1389 = vmatpush.bf16.msra.mxu1 %v3155_v49 }
 0x143   : >> { %1377 = vmatpush.bf16.msra.mxu0 %v3143_v53 }
 0x144   : >> { %1390 = vmatpush.bf16.msra.mxu1 %v3147_v57 }
 0x147   : >> { %1378 = vmatpush.bf16.msra.mxu0 %v3135_v60 }
 0x148   : >> { %1391 = vmatpush.bf16.msra.mxu1 %v3139_v61 }
 0x1a2   : >> { %v1234_v16 = vpop.xlane.xlu0 %1233 }
 0x1a3   : >> { %v1242_v17 = vmul.f32 %v5113_v15, %v1234_v16  ;;  %v3574_v16 = vld [vmem:[%s5453_s27 + $0x38] sm:$0xff] }
 0x1a4   : >> { %1571 = vmatpush.bf16.msra.mxu2 %v3574_v16 }
 0x1a5   : >> { %v5117_v18 = vsub.f32 %v5106_v2, %v1242_v17  ;;  %v3582_v17 = vld [vmem:[%s5453_s27 + $0x78] sm:$0xff] }
 0x1a6   : >> { %1584 = vmatpush.bf16.msra.mxu3 %v3582_v17 }
 0x1a7   : >> { %v1244_v19 = vmul.f32 %v5117_v18, %v5117_v18 }
 0x1a9   : >> { %1245 = vadd.xlane.f32.xlu0 %v1244_v19  ;;  %v3573_v19 = vld [vmem:[%s5453_s27 + $0x30] sm:$0xff] }
 0x1aa   : >> { %1572 = vmatpush.bf16.msra.mxu2 %v3573_v19  ;;  %1585 = vmatpush.bf16.msra.mxu3 %v3581_v20 }
 0x1ae   : >> { %1586 = vmatpush.bf16.msra.mxu3 %v3580_v21 }
 0x1b2   : >> { %1587 = vmatpush.bf16.msra.mxu3 %v3579_v23 }
 0x1b6   : >> { %1588 = vmatpush.bf16.msra.mxu3 %v3578_v25 }
 0x1ba   : >> { %1589 = vmatpush.bf16.msra.mxu3 %v3577_v27 }
 0x1be   : >> { %1590 = vmatpush.bf16.msra.mxu3 %v3576_v29 }
 0x1c2   : >> { %1591 = vmatpush.bf16.msra.mxu3 %v3575_v34 }
 0x21c   : >> { %v1246_v62 = vpop.xlane.xlu0 %1245 }
 0x21d   : >> { %v1247_v63 = vmul.f32 %v1246_v62, %v5113_v15 }
 0x21f   : >> { %v1248_v0 = vadd.f32 1e-05, %v1247_v63 }
 0x221   : >> { %3952 = vrsqrt.f32 %v1248_v0  ;;  %vm1255_vm2 = vweird.f32 %v1248_v0 }
 0x227   : >> { %v3953_v1 = vpop.eup %3952 }
 0x228   : >> { %v1250_v3 = vmul.f32 %v3953_v1, %v1248_v0  ;;  %vm1256_vm1 = vweird.f32 %v3953_v1 }
 0x229   : >> { %vm1257_vm3 = vmor %vm1255_vm2, %vm1256_vm1 }
 0x22a   : >> { %v1251_v4 = vmul.f32 %v3953_v1, %v1250_v3 }
 0x22c   : >> { %v1252_v5 = vmul.f32 0.5, %v1251_v4 }
 0x22e   : >> { %v1253_v6 = vsub.f32 1.5, %v1252_v5 }
 0x230   : >> { %v1254_v7 = vmul.f32 %v3953_v1, %v1253_v6 }
 0x232   : >> { %v1258_v9 = vsel %vm1257_vm3, %v3953_v1, %v1254_v7 }
 0x233   : >> { %v1259_v10 = vmul.f32 %v1258_v9, %v5117_v18  ;;  %v3572_v18 = vld [vmem:[%s5453_s27 + $0x28] sm:$0xff] }
 0x234   : >> { %1573 = vmatpush.bf16.msra.mxu2 %v3572_v18 }
 0x235   : >> { %v1263_v12 = vmul.f32 %v3947_v8, %v1259_v10  ;;  %v3949_v8 = vld [vmem:[#allocation14] ss:$0 sm:$0xff] }
 0x237   : >> { %v1267_v13 = vadd.f32 %v3948_v11, %v1263_v12 }
 0x238   : >> { %1574 = vmatpush.bf16.msra.mxu2 %v3571_v22 }
 0x239   : >> { %v1268_v14 = vpack.c.bf16 %v1267_v13, %v1267_v13 }
 0x23b   : >> { %1379 = vmatmul.bf16.vlgmr.msra.gmra.mxu0 %v1268_v14  ;;  %1392 = vmatmul.bf16.vlgmr.msra.gmra.mxu1 %v1268_v14 }
 0x23c   : >> { %1575 = vmatpush.bf16.msra.mxu2 %v3570_v24 }
 0x240   : >> { %1576 = vmatpush.bf16.msra.mxu2 %v3569_v26 }
 0x244   : >> { %1577 = vmatpush.bf16.msra.mxu2 %v3568_v28 }
 0x248   : >> { %1578 = vmatpush.bf16.msra.mxu2 %v3567_v33 }
 0x2b8   : >> { %v1380_v35 = vpop.f32.mrf.mxu0  ;;  %v1393_v36 = vpop.f32.mrf.mxu1 }
 0x2b9   : >> { %v1381_v37 = vadd.f32 %v1380_v35, %v1287_v31  ;;  %v1394_v38 = vadd.f32 %v1393_v36, %v1288_v32 }
 0x2bb   : >> { %v3196_v39 = vmul.f32 -1.442695, %v1381_v37  ;;  %v3197_v40 = vmul.f32 -1.442695, %v1394_v38 }
 0x2bd   : >> { %3954 = vpow2.f32 %v3196_v39 }
 0x2be   : >> { %3956 = vpow2.f32 %v3197_v40 }
 0x2c0   : >> { %v1382_v41 = vpop.f32.mrf.mxu0  ;;  %v1395_v42 = vpop.f32.mrf.mxu1 }
 0x2c3   : >> { %v3955_v43 = vpop.eup %3954 }
 0x2c4   : >> { %v3957_v44 = vpop.eup %3956  ;;  %v1403_v45 = vadd.f32 1.0, %v3955_v43 }
 0x2c5   : >> { %v1404_v46 = vadd.f32 1.0, %v3957_v44 }
 0x2c6   : >> { %3958 = vrcp.f32 %v1403_v45  ;;  %v1416_v52 = vand.u32 2147483648, %v1403_v45  ;;  %v1414_v55 = vand.u32 2147483647, %v1403_v45  ;;  %vm1410_vm6 = vweird.f32 %v1403_v45 }
 0x2c7   : >> { %3960 = vrcp.f32 %v1404_v46  ;;  %v1431_v56 = vand.u32 2147483648, %v1404_v46  ;;  %v1429_v58 = vand.u32 2147483647, %v1404_v46  ;;  %vm1425_vm8 = vweird.f32 %v1404_v46 }
 0x2c8   : >> { %v1417_v60 = vor.u32 1.1754944e-38, %v1416_v52  ;;  %vm1415_vm9 = vcmp.eq.f32.partialorder %v1414_v55, 8.507059e+37 }
 0x2c9   : >> { %v1432_v63 = vor.u32 1.1754944e-38, %v1431_v56  ;;  %vm1430_vm11 = vcmp.eq.f32.partialorder %v1429_v58, 8.507059e+37 }
 0x2cc   : >> { %v3959_v47 = vpop.eup %3958 }
 0x2cd   : >> { %v3961_v48 = vpop.eup %3960  ;;  %v1406_v49 = vmul.f32 %v3959_v47, %v1403_v45  ;;  %vm1411_vm4 = vweird.f32 %v3959_v47  ;;  %v3962_v45 = vld [vmem:[#allocation15] ss:$0 sm:$0xff] (%p1224_p5) }
 0x2ce   : >> { %v1421_v50 = vmul.f32 %v3961_v48, %v1404_v46  ;;  %vm1426_vm5 = vweird.f32 %v3961_v48  ;;  %vm1412_vm7 = vmor %vm1410_vm6, %vm1411_vm4 }
 0x2cf   : >> { %v1407_v51 = vsub.f32 1.0, %v1406_v49  ;;  %vm1427_vm10 = vmor %vm1425_vm8, %vm1426_vm5  ;;  %v3963_v49 = vld [vmem:[#allocation17] ss:$0 sm:$0xff] (%p1224_p5) }
 0x2d0   : >> { %v1422_v53 = vsub.f32 1.0, %v1421_v50 }
 0x2d1   : >> { %v1408_v54 = vmul.f32 %v3959_v47, %v1407_v51 }
 0x2d2   : >> { %v1423_v57 = vmul.f32 %v3961_v48, %v1422_v53 }
 0x2d3   : >> { %v1409_v59 = vadd.f32 %v3959_v47, %v1408_v54 }
 0x2d4   : >> { %v1424_v61 = vadd.f32 %v3961_v48, %v1423_v57 }
 0x2d5   : >> { %v1413_v62 = vsel %vm1412_vm7, %v3959_v47, %v1409_v59 }
 0x2d6   : >> { %v1418_v0 = vsel %vm1415_vm9, %v1417_v60, %v1413_v62  ;;  %v1428_v1 = vsel %vm1427_vm10, %v3961_v48, %v1424_v61 }
 0x2d7   : >> { %v1435_v3 = vmul.f32 %v1418_v0, %v1381_v37  ;;  %v1433_v4 = vsel %vm1430_vm11, %v1432_v63, %v1428_v1 }
 0x2d8   : >> { %v1436_v5 = vmul.f32 %v1433_v4, %v1394_v38 }
 0x2d9   : >> { %v1437_v6 = vpack.c.bf16 %v1435_v3, %v1435_v3 }
 0x2da   : >> { %v1438_v7 = vpack.c.bf16 %v1436_v5, %v1436_v5 }
 0x2db   : >> { %1579 = vmatmul.bf16.vlgmr.msra.gmra.mxu2 %v1437_v6 }
 0x2dc   : >> { %1592 = vmatmul.bf16.vlgmr.msra.gmra.mxu3 %v1438_v7 }
 0x35e   : >> { %v1580_v9 = vpop.f32.mrf.mxu2 }
 0x35f   : >> { %v1581_v10 = vadd.f32 %v3949_v8, %v1580_v9  ;;  %v1593_v11 = vpop.f32.mrf.mxu3 }
 0x361   : >> { %v1594_v12 = vadd.f32 %v1593_v11, %v1581_v10 }
 0x363   : >> { %v1597_v13 = vmul.f32 0.5, %v1594_v12  ;;  %1226 = sbr.rel (!%p1224_p5) target bundleno = 296 (0x128), region = 313 }
 0x365   : >> { %v1598_v14 = vadd.f32 %v1597_v13, %v5106_v2 }
 0x366   : >> { %v1582_v16 = vpop.f32.mrf.mxu2 }
 0x367   : >> { %1599 = vst [vmem:[%s5103_s2] sm:$0xff] %v1598_v14  ;;  %v1595_v17 = vpop.f32.mrf.mxu3 }
 0x36e   : > { %v1600_v19 = vld [vmem:[#allocation2] sm:$0xff]  ;;  %v1601_v20 = vld [vmem:[#allocation2 + $0x8] sm:$0xff] }
 0x36f   : > { %1604 = vadd.xlane.f32.xlu0 %v1600_v19 }
 0x377   : > { %1606 = vadd.xlane.f32.xlu0 %v1601_v20 }
 0x3e2   : > { %v1605_v18 = vpop.xlane.xlu0 %1604 }
 0x3e3   : > { %v1615_v21 = vmul.f32 %v1605_v18, %v5113_v15 }
 0x3e5   : > { %v1617_v22 = vsub.f32 %v1600_v19, %v1615_v21 }
 0x3e7   : > { %v1619_v23 = vmul.f32 %v1617_v22, %v1617_v22 }
 0x3e9   : > { %1621 = vadd.xlane.f32.xlu1 %v1619_v23 }
 0x3ea   : > { %v1607_v2 = vpop.xlane.xlu0 %1606 }
 0x3eb   : > { %v1616_v24 = vmul.f32 %v1607_v2, %v5113_v15 }
 0x3ed   : > { %v1618_v25 = vsub.f32 %v1601_v20, %v1616_v24 }
 0x3ef   : > { %v1620_v26 = vmul.f32 %v1618_v25, %v1618_v25 }
 0x3f1   : > { %1623 = vadd.xlane.f32.xlu1 %v1620_v26 }
 0x45c   : > { %v1622_v27 = vpop.xlane.xlu1 %1621 }
 0x45d   : > { %v1625_v28 = vmul.f32 %v1622_v27, %v5113_v15 }
 0x45f   : > { %v1627_v29 = vadd.f32 1e-05, %v1625_v28 }
 0x461   : > { %3964 = vrsqrt.f32 %v1627_v29  ;;  %vm1635_vm13 = vweird.f32 %v1627_v29 }
 0x464   : > { %v1624_v30 = vpop.xlane.xlu1 %1623 }
 0x465   : > { %v1626_v31 = vmul.f32 %v1624_v30, %v5113_v15 }
 0x467   : > { %v3965_v32 = vpop.eup %3964  ;;  %v1628_v33 = vadd.f32 1e-05, %v1626_v31 }
 0x468   : > { %v1630_v34 = vmul.f32 %v3965_v32, %v1627_v29  ;;  %vm1636_vm12 = vweird.f32 %v3965_v32 }
 0x469   : > { %3966 = vrsqrt.f32 %v1628_v33  ;;  %vm1637_vm14 = vmor %vm1635_vm13, %vm1636_vm12  ;;  %vm1645_vm0 = vweird.f32 %v1628_v33 }
 0x46a   : > { %v1631_v35 = vmul.f32 %v3965_v32, %v1630_v34 }
 0x46c   : > { %v1632_v36 = vmul.f32 0.5, %v1631_v35 }
 0x46e   : > { %v1633_v37 = vsub.f32 1.5, %v1632_v36 }
 0x46f   : > { %v3967_v38 = vpop.eup %3966 }
 0x470   : > { %v1634_v39 = vmul.f32 %v3965_v32, %v1633_v37  ;;  %v1640_v40 = vmul.f32 %v3967_v38, %v1628_v33  ;;  %vm1646_vm15 = vweird.f32 %v3967_v38 }
 0x471   : > { %vm1647_vm1 = vmor %vm1645_vm0, %vm1646_vm15 }
 0x472   : > { %v1641_v41 = vmul.f32 %v3967_v38, %v1640_v40  ;;  %v1638_v42 = vsel %vm1637_vm14, %v3965_v32, %v1634_v39 }
 0x473   : > { %v1649_v46 = vmul.f32 %v1638_v42, %v1617_v22 }
 0x474   : > { %v1642_v43 = vmul.f32 0.5, %v1641_v41 }
 0x475   : > { %v1654_v50 = vmul.f32 %v3962_v45, %v1649_v46 }
 0x476   : > { %v1643_v44 = vsub.f32 1.5, %v1642_v43 }
 0x477   : > { %v1659_v53 = vadd.f32 %v3963_v49, %v1654_v50 }
 0x478   : > { %v1644_v47 = vmul.f32 %v3967_v38, %v1643_v44 }
 0x47a   : > { %v1648_v48 = vsel %vm1647_vm1, %v3967_v38, %v1644_v47 }
 0x47b   : > { %v1650_v51 = vmul.f32 %v1648_v48, %v1618_v25 }
 0x47d   : > { %v1655_v52 = vmul.f32 %v3962_v45, %v1650_v51 }
 0x47f   : > { %v1660_v54 = vadd.f32 %v3963_v49, %v1655_v52 }
 0x481   : > { %v3656_v55 = vpack.c.bf16 %v1660_v54, %v1659_v53 }
 0x483   : > { %3657 = vst [vmem:[#allocation3] sm:$0xff] %v3656_v55  }
 0x484 LB: >> { %s5454_s19 = sld [smem:[#allocation41_spill]]  ;;  %s3583_s26 = sshll.u32 %s4557_s1, 6  ;;  %vm1774_vm2 = vcmask 261120   ;;  %v5199_v12 = vmov 0.0   ;;  %v5201_v13 = vmov 0.0   ;;  %v5203_v14 = vmov 0.0   ;;  %s4557_s1 = sphi %s5176_s1, %s1670_s1  }
 0x485   : >> { %s5455_s25 = sld [smem:[#allocation40_spill]]  ;;  %s4641_s8 = smov 64   ;;  %v5205_v16 = vmov 0.0   ;;  %v5207_v17 = vmov -inf   ;;  %v5209_v19 = vmov -inf  }
 0x486   : >> { %s4642_s12 = smov 96   ;;  %s5211_s4 = smov 0  }
 0x48a   : >> { %s1690_s3 = scalar_lea.vmem %s5454_s19, %s4557_s1  ;;  %v3592_v0 = vld [vmem:[#allocation3] sm:$0xff] }
 0x48b   : >> { %s1673_s23 = scalar_lea.vmem %s5455_s25, %s3583_s26  ;;  %v3968_v1 = vld [vmem:[%s1690_s3] ss:$0 sm:$0xff] }
 0x48c   : >> { %v3591_v56 = vld [vmem:[%s1673_s23 + $0x38] sm:$0xff]  ;;  %v3590_v57 = vld [vmem:[%s1673_s23 + $0x30] sm:$0xff]  ;;  %v3589_v58 = vld [vmem:[%s1673_s23 + $0x28] sm:$0xff] }
 0x48d   : >> { %1751 = vmatpush.bf16.msra.mxu0 %v3591_v56  ;;  %v3588_v59 = vld [vmem:[%s1673_s23 + $0x20] sm:$0xff]  ;;  %v3587_v60 = vld [vmem:[%s1673_s23 + $0x18] sm:$0xff]  ;;  %v3586_v61 = vld [vmem:[%s1673_s23 + $0x10] sm:$0xff] }
 0x48e   : >> { %v3585_v62 = vld [vmem:[%s1673_s23 + $0x8] sm:$0xff]  ;;  %v3584_v63 = vld [vmem:[%s1673_s23] sm:$0xff] }
 0x491   : >> { %1752 = vmatpush.bf16.msra.mxu0 %v3590_v57 }
 0x495   : >> { %1753 = vmatpush.bf16.msra.mxu0 %v3589_v58 }
 0x499   : >> { %1754 = vmatpush.bf16.msra.mxu0 %v3588_v59 }
 0x49d   : >> { %1755 = vmatpush.bf16.msra.mxu0 %v3587_v60 }
 0x4a1   : >> { %1756 = vmatpush.bf16.msra.mxu0 %v3586_v61 }
 0x4a5   : >> { %1757 = vmatpush.bf16.msra.mxu0 %v3585_v62 }
 0x4a9   : >> { %1758 = vmatpush.bf16.msra.mxu0 %v3584_v63 }
 0x4ac   : >> { %1759 = vmatmul.bf16.vlgmr.msra.gmra.mxu0 %v3592_v0 }
 0x529   : >> { %v1760_v3 = vpop.f32.mrf.mxu0 }
 0x52a   : >> { %v5185_v4 = vadd.f32 %v3968_v1, %v1760_v3 }
 0x52c   : >> { %1777 = vrot.lane.b32.xlu1 %v5185_v4, %s4641_s8  ;;  %1768 = vrot.lane.b32.xlu0 %v5185_v4, %s4642_s12 }
 0x531   : >> { %v1762_v5 = vpop.f32.mrf.mxu0 }
 0x532   : >> { %v5189_v6 = vadd.f32 %v3968_v1, %v1762_v5 }
 0x534   : >> { %v1765_v7 = vpack.c.bf16 %v5189_v6, %v5185_v4  ;;  %1779 = vrot.lane.b32.xlu1 %v5189_v6, %s4641_s8  ;;  %1770 = vrot.lane.b32.xlu0 %v5189_v6, %s4642_s12 }
 0x59e   : >> { %v1778_v8 = vpop.permute.xlu1 %1777  ;;  %v1769_v9 = vpop.permute.xlu0 %1768 }
 0x59f   : >> { %1783 = vst.msk [vmem:[#allocation5] sm:$0xff] %vm1774_vm2, %v1778_v8 }
 0x5a0   : >> { %1775 = vst.msk [vmem:[#allocation4] sm:$0xff] %vm1774_vm2, %v1769_v9 }
 0x5a6   : >> { %v1780_v10 = vpop.permute.xlu1 %1779  ;;  %v1771_v11 = vpop.permute.xlu0 %1770 }
 0x5a7   : >> { %1784 = vst.msk [vmem:[#allocation5 + $0x8] sm:$0xff] %vm1774_vm2, %v1780_v10 }
 0x5a8   : >> { %1776 = vst.msk [vmem:[#allocation4 + $0x8] sm:$0xff] %vm1774_vm2, %v1771_v11 }
 0x5a9 LB: >>> { %s3300_s18 = sshll.u32 %s4585_s4, 3  ;;  %vm1824_vm3 = vcmask 64512   ;;  %vm1866_vm4 = vcmask 1043456   ;;  %s1790_s4 = sadd.s32 1, %s4585_s4   ;;  %s4585_s4 = sphi %s5211_s4, %s1790_s4   ;;  %v4581_v19 = vphi %v5209_v19, %v5461_v19   ;;  %v4577_v17 = vphi %v5207_v17, %v5460_v17   ;;  %v4573_v16 = vphi %v5205_v16, %v5459_v16   ;;  %v4569_v14 = vphi %v5203_v14, %v5458_v14   ;;  %v4565_v13 = vphi %v5201_v13, %v5457_v13   ;;  %v4561_v12 = vphi %v5199_v12, %v5456_v12  }
 0x5aa   : >>> { %s1798_s2 = scalar_lea.vmem [#allocation4], %s3300_s18  ;;  %s1801_s19 = scalar_lea.vmem [#allocation5], %s3300_s18 }
 0x5ab   : >>> { %p1787_p1 = scmp.ge.s32.totalorder %s1790_s4, 2  }
 0x5ac   : >> { %s5462_s25 = sld [smem:[#allocation42_spill]] (%p1787_p1)  ;;  %s3593_s26 = sshll.u32 (%p1787_p1), %s4557_s1, 4  ;;  %v1890_v11 = vld [vmem:[#allocation2] sm:$0xff] (%p1787_p1)  ;;  %v1891_v4 = vld [vmem:[#allocation2 + $0x8] sm:$0xff] (%p1787_p1) }
 0x5ad   : >> { %s1670_s1 = sadd.s32 (%p1787_p1), 1, %s4557_s1  }
 0x5ae   : >>> { %v1802_v25 = vld [vmem:[%s1801_s19] sm:$0xff]  ;;  %p1667_p4 = scmp.ge.s32.totalorder (%p1787_p1), %s1670_s1, 4  }
 0x5af   : >>> { %v1799_v20 = vld [vmem:[%s1798_s2] sm:$0xff]  ;;  %v1803_v26 = vpack.c.bf16 %v1802_v25, %v1802_v25 }
 0x5b0   : >>> { %v1800_v18 = vpack.c.bf16 %v1799_v20, %v1799_v20 }
 0x5b1   : >>> { %v1868_v27 = vsel %vm1866_vm4, %v1803_v26, 0 }
 0x5b2   : >>> { %v1808_v21 = vsel %vm1774_vm2, %v1800_v18, 0  ;;  %1877 = vmatpush.bf16.msra.mxu1 %v1868_v27  ;;  %s1895_s3 = scalar_lea.vmem (%p1787_p1), %s5462_s25, %s3593_s26 }
 0x5b3   : >>> { %1817 = vmatpush.bf16.xpose.msra.mxu0 %v1808_v21  ;;  %v3595_v0 = vld [vmem:[%s1895_s3 + $0x8] sm:$0xff] (%p1787_p1)  ;;  %v3594_v1 = vld [vmem:[%s1895_s3] sm:$0xff] (%p1787_p1) }
 0x5ba   : >>> { %3301 = vmatmul.msk.bf16.vlgmr.msra.gmra.mxu0 %vm1774_vm2, %v1765_v7 }
 0x5bb   : >> { %1921 = vmatpush.bf16.msra.mxu0 (%p1787_p1), %v3595_v0 }
 0x5bf   : >> { %1922 = vmatpush.bf16.msra.mxu0 (%p1787_p1), %v3594_v1 }
 0x637   : >>> { %v1819_v22 = vpop.f32.mrf.mxu0 }
 0x638   : >>> { %v1825_v23 = vsel %vm1824_vm3, %v1819_v22, -inf }
 0x639   : >>> { %1826 = vmax.xlane.f32.xlu0 %v1825_v23 }
 0x63f   : >>> { %v1821_v2 = vpop.f32.mrf.mxu0 }
 0x640   : >>> { %v1828_v24 = vsel %vm1824_vm3, %v1821_v2, -inf }
 0x641   : >>> { %1829 = vmax.xlane.f32.xlu0 %v1828_v24 }
 0x6ac   : >>> { %v1827_v28 = vpop.xlane.xlu0 %1826 }
 0x6ad   : >>> { %v1831_v29 = vmax.f32 %v4581_v19, %v1827_v28  }
 0x6af   : >>> { %v1833_v30 = vsub.f32 %v4581_v19, %v1831_v29  ;;  %v1839_v33 = vsub.f32 %v1819_v22, %v1831_v29  ;;  %v5461_v19 = vmov %v1831_v29 }
 0x6b1   : >>> { %v1835_v48 = vmul.f32 1.442695, %v1833_v30 }
 0x6b4   : >>> { %v1830_v31 = vpop.xlane.xlu0 %1829 }
 0x6b5   : >>> { %v1832_v32 = vmax.f32 %v4577_v17, %v1830_v31  }
 0x6b7   : >>> { %v1834_v34 = vsub.f32 %v4577_v17, %v1832_v32  ;;  %v1840_v35 = vsub.f32 %v1821_v2, %v1832_v32  ;;  %v5460_v17 = vmov %v1832_v32 }
 0x6b9   : >>> { %v1841_v36 = vpack.c.bf16 %v1840_v35, %v1839_v33  ;;  %v1837_v49 = vmul.f32 1.442695, %v1834_v34 }
 0x6bb   : >>> { %v1842_v37 = vunpack.c.l.bf16 %v1841_v36  ;;  %v1843_v38 = vunpack.c.h.bf16 %v1841_v36 }
 0x6bd   : >>> { %v1844_v39 = vmul.f32 1.442695, %v1842_v37  ;;  %v1846_v40 = vmul.f32 1.442695, %v1843_v38 }
 0x6bf   : >>> { %3969 = vpow2.f32 %v1844_v39 }
 0x6c0   : >>> { %3971 = vpow2.f32 %v1846_v40 }
 0x6c1   : >>> { %3973 = vpow2.f32 %v1835_v48 }
 0x6c2   : >>> { %3975 = vpow2.f32 %v1837_v49 }
 0x6c5   : >>> { %v3970_v41 = vpop.eup %3969 }
 0x6c6   : >>> { %v3972_v42 = vpop.eup %3971 }
 0x6c7   : >>> { %v1848_v43 = vpack.c.bf16 %v3972_v42, %v3970_v41  ;;  %v3974_v50 = vpop.eup %3973 }
 0x6c8   : >>> { %v1849_v51 = vmul.f32 %v4573_v16, %v3974_v50  ;;  %v3976_v54 = vpop.eup %3975  ;;  %v1861_v55 = vmul.f32 %v4565_v13, %v3974_v50 }
 0x6c9   : >>> { %3302 = vmatmul.msk.bf16.vlgmr.msra.gmra.mxu1 %vm1824_vm3, %v1848_v43  ;;  %v1851_v44 = vunpack.c.l.bf16 %v1848_v43  ;;  %v1852_v46 = vunpack.c.h.bf16 %v1848_v43  ;;  %v1850_v57 = vmul.f32 %v4569_v14, %v3976_v54  ;;  %v1862_v61 = vmul.f32 %v4561_v12, %v3976_v54 }
 0x6cb   : >>> { %v1853_v45 = vsel %vm1824_vm3, %v1851_v44, 0.0  ;;  %v1856_v47 = vsel %vm1824_vm3, %v1852_v46, 0.0 }
 0x6cc   : >>> { %1854 = vadd.xlane.f32.xlu1 %v1853_v45 }
 0x6d4   : >>> { %1857 = vadd.xlane.f32.xlu1 %v1856_v47 }
 0x73f   : >>> { %v1855_v52 = vpop.xlane.xlu1 %1854 }
 0x740   : >>> { %v1859_v53 = vadd.f32 %v1855_v52, %v1849_v51  }
 0x742   : >>> { %v5459_v16 = vmov %v1859_v53  ;;  %3977 = vrcp.f32 (%p1787_p1), %v1859_v53 }
 0x746   : >>> { %v1879_v56 = vpop.f32.mrf.mxu1 }
 0x747   : >>> { %v1884_v58 = vadd.f32 %v1879_v56, %v1861_v55   ;;  %v1858_v59 = vpop.xlane.xlu1 %1857 }
 0x748   : >>> { %v1860_v60 = vadd.f32 %v1858_v59, %v1850_v57   ;;  %v3978_v3 = vpop.eup (%p1787_p1), %3977 }
 0x749   : >>> { %v5457_v13 = vmov %v1884_v58  ;;  %v1888_v8 = vmul.f32 (%p1787_p1), %v3978_v3, %v1884_v58 }
 0x74a   : >>> { %v5458_v14 = vmov %v1860_v60  ;;  %3979 = vrcp.f32 (%p1787_p1), %v1860_v60 }
 0x74d   : >> { %1789 = sbr.rel (!%p1787_p1) target bundleno = 1449 (0x5a9), region = 324 }
 0x74e   : >>> { %v1881_v62 = vpop.f32.mrf.mxu1 }
 0x74f   : >>> { %v1885_v63 = vadd.f32 %v1881_v62, %v1862_v61  }
 0x750   : >> { %v3980_v5 = vpop.eup (%p1787_p1), %3979 }
 0x751   : >>> { %v5456_v12 = vmov %v1885_v63  ;;  %v1889_v9 = vmul.f32 (%p1787_p1), %v3980_v5, %v1885_v63 }
 0x752   : > { %s5463_s23 = sld [smem:[#allocation43_spill]] (%p1667_p4)  ;;  %v3603_v27 = vld [vmem:[#allocation21 + $0x38] sm:$0xff] (%p1667_p4)  ;;  %v3602_v29 = vld [vmem:[#allocation21 + $0x30] sm:$0xff] (%p1667_p4)  ;;  %v3601_v31 = vld [vmem:[#allocation21 + $0x28] sm:$0xff] (%p1667_p4)  ;;  %s5289_s25 = smov (%p1667_p4), 0  }
 0x753   : >> { %v1892_v10 = vpack.c.bf16 %v1889_v9, %v1888_v8  ;;  %v3611_v28 = vld [vmem:[#allocation23 + $0x38] sm:$0xff] (%p1667_p4)  ;;  %v3610_v30 = vld [vmem:[#allocation23 + $0x30] sm:$0xff] (%p1667_p4)  ;;  %v3609_v32 = vld [vmem:[#allocation23 + $0x28] sm:$0xff] (%p1667_p4)  ;;  %s5464_s1 = sld [smem:[#allocation48_spill]] (%p1667_p4) }
 0x754   : > { %2148 = vmatpush.bf16.msra.mxu1 (%p1667_p4), %v3611_v28  ;;  %v3600_v33 = vld [vmem:[#allocation21 + $0x20] sm:$0xff] (%p1667_p4)  ;;  %v3599_v35 = vld [vmem:[#allocation21 + $0x18] sm:$0xff] (%p1667_p4)  ;;  %v3598_v37 = vld [vmem:[#allocation21 + $0x10] sm:$0xff] (%p1667_p4)  ;;  %s5465_s8 = sld [smem:[#allocation46_spill]] (%p1667_p4) }
 0x755   : >> { %3313 = vmatmul.msk.bf16.vlgmr.msra.gmra.mxu0 %vm1774_vm2, %v1892_v10  ;;  %v3608_v34 = vld [vmem:[#allocation23 + $0x20] sm:$0xff] (%p1667_p4)  ;;  %v3607_v36 = vld [vmem:[#allocation23 + $0x18] sm:$0xff] (%p1667_p4)  ;;  %v3606_v38 = vld [vmem:[#allocation23 + $0x10] sm:$0xff] (%p1667_p4)  ;;  %s5466_s12 = sld [smem:[#allocation49_spill]] (%p1667_p4) }
 0x756   : > { %2066 = vmatpush.bf16.msra.mxu0 (%p1667_p4), %v3603_v27  ;;  %v3597_v39 = vld [vmem:[#allocation21 + $0x8] sm:$0xff] (%p1667_p4)  ;;  %v3596_v42 = vld [vmem:[#allocation21] sm:$0xff] (%p1667_p4)  ;;  %v3982_v62 = vld [vmem:[#allocation18] ss:$0 sm:$0xff] (%p1667_p4)  ;;  %s5467_s4 = sld [smem:[#allocation50_spill]] (%p1667_p4) }
 0x757   : > { %v3605_v40 = vld [vmem:[#allocation23 + $0x8] sm:$0xff] (%p1667_p4)  ;;  %v3604_v43 = vld [vmem:[#allocation23] sm:$0xff] (%p1667_p4)  ;;  %v3983_v5 = vld [vmem:[#allocation20] ss:$0 sm:$0xff] (%p1667_p4)  ;;  %s5468_s18 = sld [smem:[#allocation51_spill]] (%p1667_p4) }
 0x758   : > { %v3981_v13 = vld [vmem:[%s5463_s23] ss:$0 sm:$0xff] (%p1667_p4)  ;;  %2149 = vmatpush.bf16.msra.mxu1 (%p1667_p4), %v3610_v30  ;;  %s5469_s2 = sld [smem:[#allocation52_spill]] (%p1667_p4) }
 0x759   : > { %v3615_v28 = vld [vmem:[#allocation24 + $0x18] sm:$0xff] (%p1667_p4)  ;;  %s5470_s19 = sld [smem:[#allocation53_spill]] (%p1667_p4) }
 0x75a   : > { %2067 = vmatpush.bf16.msra.mxu0 (%p1667_p4), %v3602_v29 }
 0x75c   : > { %2150 = vmatpush.bf16.msra.mxu1 (%p1667_p4), %v3609_v32  ;;  %v3614_v32 = vld [vmem:[#allocation24 + $0x10] sm:$0xff] (%p1667_p4) }
 0x75e   : > { %2068 = vmatpush.bf16.msra.mxu0 (%p1667_p4), %v3601_v31 }
 0x760   : > { %2151 = vmatpush.bf16.msra.mxu1 (%p1667_p4), %v3608_v34 }
 0x762   : > { %2069 = vmatpush.bf16.msra.mxu0 (%p1667_p4), %v3600_v33 }
 0x764   : > { %2152 = vmatpush.bf16.msra.mxu1 (%p1667_p4), %v3607_v36  ;;  %v2202_v36 = vlaneseq (%p1667_p4) }
 0x766   : > { %2070 = vmatpush.bf16.msra.mxu0 (%p1667_p4), %v3599_v35 }
 0x768   : > { %2153 = vmatpush.bf16.msra.mxu1 (%p1667_p4), %v3606_v38 }
 0x76a   : > { %2071 = vmatpush.bf16.msra.mxu0 (%p1667_p4), %v3598_v37 }
 0x76c   : > { %2154 = vmatpush.bf16.msra.mxu1 (%p1667_p4), %v3605_v40  ;;  %v3984_v40 = vld [vmem:[%s5465_s8] ss:$0 sm:$0xff] (%p1667_p4) }
 0x76e   : > { %2072 = vmatpush.bf16.msra.mxu0 (%p1667_p4), %v3597_v39  ;;  %v3613_v39 = vld [vmem:[#allocation24 + $0x8] sm:$0xff] (%p1667_p4) }
 0x770   : > { %2155 = vmatpush.bf16.msra.mxu1 (%p1667_p4), %v3604_v43 }
 0x772   : > { %2073 = vmatpush.bf16.msra.mxu0 (%p1667_p4), %v3596_v42 }
 0x7d2   : >> { %v1924_v19 = vpop.f32.mrf.mxu0 }
 0x7d3   : >> { %v1929_v20 = vadd.f32 %v1924_v19, %v1890_v11  ;;  %v3985_v19 = vld [vmem:[%s5464_s1] ss:$0 sm:$0xff] (%p1667_p4) }
 0x7d5   : >> { %1931 = vst [vmem:[#allocation2] sm:$0xff] %v1929_v20 }
 0x7d9   : > { %1669 = sbr.rel (!%p1667_p4) target bundleno = 1156 (0x484), region = 335 }
 0x7da   : >> { %v1926_v6 = vpop.f32.mrf.mxu0 }
 0x7db   : >> { %v1930_v7 = vadd.f32 %v1926_v6, %v1891_v4 }
 0x7dc   : > { %v1933_v12 = vld [vmem:[#allocation2] sm:$0xff] (%p1667_p4) }
 0x7dd   : >> { %1932 = vst [vmem:[#allocation2 + $0x8] sm:$0xff] %v1930_v7  ;;  %v5258_v14 = vadd.f32 (%p1667_p4), %v3981_v13, %v1933_v12  ;;  %v3619_v7 = vld [vmem:[#allocation24 + $0x38] sm:$0xff] (%p1667_p4) }
 0x7de   : > { %2366 = vmatpush.bf16.msra.mxu2 %v3619_v7 }
 0x7df   : > { %1947 = vadd.xlane.f32.xlu0 %v5258_v14 }
 0x7e4   : > { %v1934_v16 = vld [vmem:[#allocation2 + $0x8] sm:$0xff] }
 0x7e5   : > { %v5261_v17 = vadd.f32 %v3981_v13, %v1934_v16  ;;  %v3618_v16 = vld [vmem:[#allocation24 + $0x30] sm:$0xff] }
 0x7e6   : > { %2367 = vmatpush.bf16.msra.mxu2 %v3618_v16 }
 0x7e7   : > { %1949 = vadd.xlane.f32.xlu0 %v5261_v17 }
 0x852   : > { %v1948_v18 = vpop.xlane.xlu0 %1947 }
 0x853   : > { %v1951_v21 = vmul.f32 %v1948_v18, %v5113_v15 }
 0x855   : > { %v5266_v22 = vsub.f32 %v5258_v14, %v1951_v21 }
 0x857   : > { %v1955_v23 = vmul.f32 %v5266_v22, %v5266_v22 }
 0x859   : > { %1957 = vadd.xlane.f32.xlu1 %v1955_v23  ;;  %v3617_v23 = vld [vmem:[#allocation24 + $0x28] sm:$0xff] }
 0x85a   : > { %v1950_v2 = vpop.xlane.xlu0 %1949  ;;  %2368 = vmatpush.bf16.msra.mxu2 %v3617_v23 }
 0x85b   : > { %v1952_v24 = vmul.f32 %v1950_v2, %v5113_v15  ;;  %v3616_v2 = vld [vmem:[#allocation24 + $0x20] sm:$0xff] }
 0x85d   : > { %v5272_v25 = vsub.f32 %v5261_v17, %v1952_v24 }
 0x85e   : > { %2369 = vmatpush.bf16.msra.mxu2 %v3616_v2  ;;  %v3987_v2 = vld [vmem:[%s5468_s18] ss:$0 sm:$0xff] }
 0x85f   : > { %v1956_v26 = vmul.f32 %v5272_v25, %v5272_v25 }
 0x861   : > { %1959 = vadd.xlane.f32.xlu1 %v1956_v26 }
 0x862   : > { %2370 = vmatpush.bf16.msra.mxu2 %v3615_v28 }
 0x866   : > { %2371 = vmatpush.bf16.msra.mxu2 %v3614_v32 }
 0x86a   : > { %2372 = vmatpush.bf16.msra.mxu2 %v3613_v39 }
 0x8cc   : > { %v1958_v41 = vpop.xlane.xlu1 %1957 }
 0x8cd   : > { %v1961_v44 = vmul.f32 %v1958_v41, %v5113_v15 }
 0x8cf   : > { %v1963_v45 = vadd.f32 1e-05, %v1961_v44 }
 0x8d1   : > { %3990 = vrsqrt.f32 %v1963_v45  ;;  %vm1971_vm6 = vweird.f32 %v1963_v45 }
 0x8d4   : > { %v1960_v46 = vpop.xlane.xlu1 %1959 }
 0x8d5   : > { %v1962_v47 = vmul.f32 %v1960_v46, %v5113_v15 }
 0x8d7   : > { %v3991_v48 = vpop.eup %3990  ;;  %v1964_v49 = vadd.f32 1e-05, %v1962_v47 }
 0x8d8   : > { %v1966_v50 = vmul.f32 %v3991_v48, %v1963_v45  ;;  %vm1972_vm5 = vweird.f32 %v3991_v48  ;;  %v2203_v45 = vshrl.u32 %v2202_v36, 7 }
 0x8d9   : > { %3992 = vrsqrt.f32 %v1964_v49  ;;  %vm1973_vm7 = vmor %vm1971_vm6, %vm1972_vm5  ;;  %vm1981_vm9 = vweird.f32 %v1964_v49 }
 0x8da   : > { %v1967_v51 = vmul.f32 %v3991_v48, %v1966_v50  ;;  %vm2206_vm3 = vcmp.ge.s32.totalorder %v2203_v45, 1  ;;  %vm2210_vm4 = vcmp.lt.s32.totalorder %v2203_v45, 1  ;;  %vm2229_vm6 = vcmp.lt.s32.totalorder %v2203_v45, 7 }
 0x8dc   : > { %v1968_v52 = vmul.f32 0.5, %v1967_v51 }
 0x8de   : > { %v1969_v53 = vsub.f32 1.5, %v1968_v52 }
 0x8df   : > { %v3993_v54 = vpop.eup %3992 }
 0x8e0   : > { %v1970_v55 = vmul.f32 %v3991_v48, %v1969_v53  ;;  %v1976_v56 = vmul.f32 %v3993_v54, %v1964_v49  ;;  %vm1982_vm8 = vweird.f32 %v3993_v54 }
 0x8e1   : > { %vm1983_vm10 = vmor %vm1981_vm9, %vm1982_vm8 }
 0x8e2   : > { %v1977_v57 = vmul.f32 %v3993_v54, %v1976_v56  ;;  %v1974_v59 = vsel %vm1973_vm7, %v3991_v48, %v1970_v55  ;;  %v3612_v48 = vld [vmem:[#allocation24] sm:$0xff]  ;;  %v2205_v55 = vld [vmem:[%s5466_s12] sm:$0x7] }
 0x8e3   : > { %v1985_v61 = vmul.f32 %v1974_v59, %v5266_v22  ;;  %2373 = vmatpush.bf16.msra.mxu2 %v3612_v48 }
 0x8e4   : > { %v1978_v58 = vmul.f32 0.5, %v1977_v57 }
 0x8e5   : > { %v1990_v3 = vmul.f32 %v3982_v62, %v1985_v61  ;;  %v2220_v61 = vperm.slane %v2205_v55, 1 }
 0x8e6   : > { %v1979_v60 = vsub.f32 1.5, %v1978_v58 }
 0x8e7   : > { %v1995_v9 = vadd.f32 %v3983_v5, %v1990_v3 }
 0x8e8   : > { %v1980_v63 = vmul.f32 %v3993_v54, %v1979_v60 }
 0x8ea   : > { %v1984_v0 = vsel %vm1983_vm10, %v3993_v54, %v1980_v63  ;;  %v2204_v54 = vadd.s32 8, %v2203_v45  ;;  %v2234_v63 = vperm.slane %v2205_v55, 2 }
 0x8eb   : > { %v1986_v1 = vmul.f32 %v1984_v0, %v5272_v25 }
 0x8ec   : > { %vm2226_vm5 = vcmp.lt.s32.totalorder %v2204_v54, 15 }
 0x8ed   : > { %v1991_v8 = vmul.f32 %v3982_v62, %v1986_v1  ;;  %v2215_v62 = vperm.slane %v2205_v55, 0 }
 0x8ef   : > { %v1996_v10 = vadd.f32 %v3983_v5, %v1991_v8 }
 0x8f1   : > { %v1997_v11 = vpack.c.bf16 %v1996_v10, %v1995_v9 }
 0x8f3   : > { %2074 = vmatmul.bf16.vlgmr.msra.gmra.mxu0 %v1997_v11  ;;  %2156 = vmatmul.bf16.vlgmr.msra.gmra.mxu1 %v1997_v11 }
 0x970   : > { %v2157_v20 = vpop.f32.mrf.mxu1  ;;  %v2075_v30 = vpop.f32.mrf.mxu0 }
 0x971   : > { %v2158_v4 = vadd.f32 %v3985_v19, %v2157_v20  ;;  %v2076_v51 = vadd.f32 %v3984_v40, %v2075_v30 }
 0x973   : > { %v3378_v6 = vmul.f32 -1.442695, %v2158_v4 }
 0x975   : > { %3994 = vpow2.f32 %v3378_v6 }
 0x978   : > { %v2159_v12 = vpop.f32.mrf.mxu1  ;;  %v2077_v50 = vpop.f32.mrf.mxu0 }
 0x979   : > { %v2160_v13 = vadd.f32 %v3985_v19, %v2159_v12  ;;  %v2078_v57 = vadd.f32 %v3984_v40, %v2077_v50 }
 0x97b   : > { %v3995_v18 = vpop.eup %3994  ;;  %v3379_v21 = vmul.f32 -1.442695, %v2160_v13 }
 0x97c   : > { %v2168_v22 = vadd.f32 1.0, %v3995_v18  ;;  %v3986_v18 = vld [vmem:[%s5467_s4] ss:$0 sm:$0xff] }
 0x97d   : > { %3996 = vpow2.f32 %v3379_v21 }
 0x97e   : > { %3998 = vrcp.f32 %v2168_v22  ;;  %v2181_v35 = vand.u32 2147483648, %v2168_v22  ;;  %vm2175_vm12 = vweird.f32 %v2168_v22  ;;  %v2179_v37 = vand.u32 2147483647, %v2168_v22 }
 0x980   : > { %v2182_v43 = vor.u32 1.1754944e-38, %v2181_v35  ;;  %vm2180_vm14 = vcmp.eq.f32.partialorder %v2179_v37, 8.507059e+37 }
 0x983   : > { %v3997_v24 = vpop.eup %3996 }
 0x984   : > { %v3999_v25 = vpop.eup %3998  ;;  %v2169_v26 = vadd.f32 1.0, %v3997_v24 }
 0x985   : > { %v2171_v27 = vmul.f32 %v3999_v25, %v2168_v22  ;;  %vm2176_vm11 = vweird.f32 %v3999_v25 }
 0x986   : > { %4000 = vrcp.f32 %v2169_v26  ;;  %vm2177_vm13 = vmor %vm2175_vm12, %vm2176_vm11  ;;  %v2196_v44 = vand.u32 2147483648, %v2169_v26  ;;  %v2194_v47 = vand.u32 2147483647, %v2169_v26  ;;  %vm2190_vm0 = vweird.f32 %v2169_v26 }
 0x987   : > { %v2172_v29 = vsub.f32 1.0, %v2171_v27 }
 0x988   : > { %v2197_v53 = vor.u32 1.1754944e-38, %v2196_v44  ;;  %vm2195_vm2 = vcmp.eq.f32.partialorder %v2194_v47, 8.507059e+37 }
 0x989   : > { %v2173_v31 = vmul.f32 %v3999_v25, %v2172_v29 }
 0x98b   : > { %v2174_v33 = vadd.f32 %v3999_v25, %v2173_v31 }
 0x98c   : > { %v4001_v34 = vpop.eup %4000 }
 0x98d   : > { %v2186_v38 = vmul.f32 %v4001_v34, %v2169_v26  ;;  %v2178_v41 = vsel %vm2177_vm13, %v3999_v25, %v2174_v33  ;;  %vm2191_vm15 = vweird.f32 %v4001_v34  ;;  %v3988_v26 = vld [vmem:[%s5469_s2] ss:$0 sm:$0xff] }
 0x98e   : > { %v2183_v49 = vsel %vm2180_vm14, %v2182_v43, %v2178_v41  ;;  %vm2192_vm1 = vmor %vm2190_vm0, %vm2191_vm15 }
 0x98f   : > { %v2187_v42 = vsub.f32 1.0, %v2186_v38  ;;  %v2200_v56 = vmul.f32 %v2183_v49, %v2076_v51 }
 0x991   : > { %v2188_v46 = vmul.f32 %v4001_v34, %v2187_v42  ;;  %v2208_v0 = vrot.slane %v2200_v56, 7  ;;  %v2227_v3 = vrot.slane %v2200_v56, 1  ;;  %v2221_v12 = vmul.f32 %v2220_v61, %v2200_v56 }
 0x993   : > { %v2189_v52 = vadd.f32 %v4001_v34, %v2188_v46 }
 0x995   : > { %v2193_v58 = vsel %vm2192_vm1, %v4001_v34, %v2189_v52 }
 0x996   : > { %v2198_v59 = vsel %vm2195_vm2, %v2197_v53, %v2193_v58 }
 0x997   : > { %v2201_v60 = vmul.f32 %v2198_v59, %v2078_v57 }
 0x999   : > { %v2209_v1 = vrot.slane %v2201_v60, 7  ;;  %v2228_v5 = vrot.slane %v2201_v60, 1  ;;  %v2222_v10 = vmul.f32 %v2220_v61, %v2201_v60  ;;  %v3989_v61 = vld [vmem:[%s5470_s19] ss:$0 sm:$0xff] }
 0x99b   : > { %v2211_v8 = vsel %vm2210_vm4, %v2208_v0, %v2209_v1  ;;  %v2212_v9 = vsel %vm2210_vm4, %v2209_v1, %v2208_v0  ;;  %v2231_v11 = vsel %vm2229_vm6, %v2228_v5, %v2227_v3  ;;  %v2230_v4 = vsel %vm2229_vm6, %v2227_v3, %v2228_v5 }
 0x99c   : > { %v2213_v19 = vsel %vm2206_vm3, %v2212_v9, 0.0  ;;  %v2217_v20 = vmul.f32 %v2215_v62, %v2211_v8  ;;  %v2233_v6 = vsel %vm2226_vm5, %v2231_v11, 0.0  ;;  %v2235_v22 = vmul.f32 %v2234_v63, %v2230_v4 }
 0x99d   : > { %v2216_v7 = vmul.f32 %v2215_v62, %v2213_v19  ;;  %v2236_v13 = vmul.f32 %v2234_v63, %v2233_v6 }
 0x99e   : > { %v2224_v16 = vadd.f32 %v2222_v10, %v2217_v20 }
 0x99f   : > { %v2223_v21 = vadd.f32 %v2221_v12, %v2216_v7 }
 0x9a0   : > { %v2238_v23 = vadd.f32 %v2236_v13, %v2224_v16 }
 0x9a1   : > { %v2237_v24 = vadd.f32 %v2235_v22, %v2223_v21 }
 0x9a2   : > { %v2244_v25 = vadd.f32 %v3986_v18, %v2238_v23 }
 0x9a3   : > { %v2243_v27 = vadd.f32 %v3986_v18, %v2237_v24 }
 0x9a4   : > { %v2250_v28 = vmul.f32 %v3987_v2, %v2244_v25 }
 0x9a5   : > { %v2249_v29 = vmul.f32 %v3987_v2, %v2243_v27 }
 0x9a6   : > { %v2256_v30 = vadd.f32 %v3988_v26, %v2250_v28 }
 0x9a7   : > { %v2255_v31 = vadd.f32 %v3988_v26, %v2249_v29 }
 0x9a8   : > { %v3381_v32 = vmul.f32 -1.442695, %v2256_v30 }
 0x9a9   : > { %v3380_v33 = vmul.f32 -1.442695, %v2255_v31 }
 0x9aa   : > { %4002 = vpow2.f32 %v3381_v32 }
 0x9ab   : > { %4004 = vpow2.f32 %v3380_v33 }
 0x9b0   : > { %v4003_v34 = vpop.eup %4002 }
 0x9b1   : > { %v4005_v35 = vpop.eup %4004  ;;  %v2264_v36 = vadd.f32 1.0, %v4003_v34 }
 0x9b2   : > { %v2263_v37 = vadd.f32 1.0, %v4005_v35 }
 0x9b3   : > { %4006 = vrcp.f32 %v2264_v36  ;;  %v2291_v44 = vand.u32 2147483648, %v2264_v36  ;;  %v2289_v47 = vand.u32 2147483647, %v2264_v36  ;;  %vm2285_vm9 = vweird.f32 %v2264_v36 }
 0x9b4   : > { %4008 = vrcp.f32 %v2263_v37  ;;  %v2276_v45 = vand.u32 2147483648, %v2263_v37  ;;  %v2274_v49 = vand.u32 2147483647, %v2263_v37  ;;  %vm2270_vm10 = vweird.f32 %v2263_v37 }
 0x9b5   : > { %v2292_v52 = vor.u32 1.1754944e-38, %v2291_v44  ;;  %vm2290_vm13 = vcmp.eq.f32.partialorder %v2289_v47, 8.507059e+37 }
 0x9b6   : > { %v2277_v53 = vor.u32 1.1754944e-38, %v2276_v45  ;;  %vm2275_vm14 = vcmp.eq.f32.partialorder %v2274_v49, 8.507059e+37 }
 0x9b9   : > { %v4007_v38 = vpop.eup %4006 }
 0x9ba   : > { %v4009_v39 = vpop.eup %4008  ;;  %v2281_v40 = vmul.f32 %v4007_v38, %v2264_v36  ;;  %vm2286_vm7 = vweird.f32 %v4007_v38 }
 0x9bb   : > { %v2266_v41 = vmul.f32 %v4009_v39, %v2263_v37  ;;  %vm2271_vm8 = vweird.f32 %v4009_v39  ;;  %vm2287_vm11 = vmor %vm2285_vm9, %vm2286_vm7 }
 0x9bc   : > { %v2282_v42 = vsub.f32 1.0, %v2281_v40  ;;  %vm2272_vm12 = vmor %vm2270_vm10, %vm2271_vm8 }
 0x9bd   : > { %v2267_v43 = vsub.f32 1.0, %v2266_v41 }
 0x9be   : > { %v2283_v46 = vmul.f32 %v4007_v38, %v2282_v42 }
 0x9bf   : > { %v2268_v48 = vmul.f32 %v4009_v39, %v2267_v43 }
 0x9c0   : > { %v2284_v50 = vadd.f32 %v4007_v38, %v2283_v46 }
 0x9c1   : > { %v2269_v51 = vadd.f32 %v4009_v39, %v2268_v48 }
 0x9c2   : > { %v2288_v54 = vsel %vm2287_vm11, %v4007_v38, %v2284_v50 }
 0x9c3   : > { %v2273_v55 = vsel %vm2272_vm12, %v4009_v39, %v2269_v51  ;;  %v2293_v56 = vsel %vm2290_vm13, %v2292_v52, %v2288_v54 }
 0x9c4   : > { %v2278_v57 = vsel %vm2275_vm14, %v2277_v53, %v2273_v55  ;;  %v2296_v58 = vmul.f32 %v2293_v56, %v2256_v30 }
 0x9c5   : > { %v2295_v59 = vmul.f32 %v2278_v57, %v2255_v31 }
 0x9c7   : > { %v2297_v60 = vpack.c.bf16 %v2296_v58, %v2295_v59 }
 0x9c9   : > { %2374 = vmatmul.bf16.vlgmr.msra.gmra.mxu2 %v2297_v60 }
 0xa4c   : > { %v2375_v62 = vpop.f32.mrf.mxu2 }
 0xa4d   : > { %v2376_v63 = vadd.f32 %v3989_v61, %v2375_v62 }
 0xa4f   : > { %v2380_v0 = vadd.f32 %v2376_v63, %v5258_v14 }
 0xa51   : > { %2382 = vst [vmem:[#allocation2] sm:$0xff] %v2380_v0 }
 0xa54   : > { %v2377_v1 = vpop.f32.mrf.mxu2 }
 0xa55   : > { %v2378_v3 = vadd.f32 %v3989_v61, %v2377_v1 }
 0xa57   : > { %v2381_v5 = vadd.f32 %v2378_v3, %v5261_v17 }
 0xa59   : > { %2383 = vst [vmem:[#allocation2 + $0x8] sm:$0xff] %v2381_v5 }
 0xa5a LB: >> { %s5471_s26 = sld [smem:[#allocation56_spill]]  ;;  %s3414_s3 = sshll.u32 %s4589_s25, 3  ;;  %s4589_s25 = sphi %s5289_s25, %s2389_s25  }
 0xa5b   : >> { %s5295_s23 = scalar_lea.vmem [#allocation2], %s3414_s3  ;;  %s5472_s1 = sld [smem:[#allocation54_spill]] }
 0xa5c   : >> { %s5473_s8 = sld [smem:[#allocation55_spill]]  ;;  %s2389_s25 = sadd.s32 1, %s4589_s25  }
 0xa5d   : >> { %s5474_s12 = sld [smem:[#allocation57_spill]]  ;;  %p2386_p3 = scmp.ge.s32.totalorder %s2389_s25, 2  }
 0xa5e   : >> { %s5475_s4 = sld [smem:[#allocation58_spill]]  ;;  %s3652_s25 = sshll.u32 (%p2386_p3), %s4844_s16, 4 }
 0xa5f   : > { %s5476_s18 = sld [smem:[#allocation59_spill]] (%p2386_p3)  ;;  %s2812_s16 = scalar_lea.sflag (%p2386_p3), [#allocation8], %s5063_s0 }
 0xa60   : >> { %v5298_v14 = vld [vmem:[%s5295_s23] sm:$0xff]  ;;  %v3473_v17 = vld [vmem:[%s5471_s26 + $0x70] sm:$0xf]  ;;  %v3635_v8 = vld [vmem:[%s5471_s26 + $0x74] sm:$0xf0]  ;;  %s5477_s2 = sld [smem:[#allocation60_spill]] (%p2386_p3) }
 0xa61   : >> { %2395 = vadd.xlane.f32.xlu0 %v5298_v14  ;;  %v3634_v9 = vld [vmem:[%s5471_s26 + $0x74] sm:$0xf]  ;;  %v3474_v10 = vor.u32 %v3635_v8, %v3473_v17  ;;  %v3475_v11 = vld [vmem:[%s5471_s26 + $0x78] sm:$0xf0]  ;;  %v3465_v12 = vld [vmem:[%s5471_s26 + $0x60] sm:$0xf] }
 0xa62   : >> { %v3478_v19 = vor.u32 %v3634_v9, %v3475_v11  ;;  %v3633_v13 = vld [vmem:[%s5471_s26 + $0x64] sm:$0xf0]  ;;  %v3632_v16 = vld [vmem:[%s5471_s26 + $0x64] sm:$0xf]  ;;  %v3467_v21 = vld [vmem:[%s5471_s26 + $0x68] sm:$0xf0] }
 0xa63   : >> { %2526 = vmatpush.bf16.msra.mxu0 %v3474_v10  ;;  %v3466_v18 = vor.u32 %v3633_v13, %v3465_v12  ;;  %v3470_v22 = vor.u32 %v3632_v16, %v3467_v21  ;;  %v3457_v23 = vld [vmem:[%s5471_s26 + $0x50] sm:$0xf]  ;;  %v3631_v2 = vld [vmem:[%s5471_s26 + $0x54] sm:$0xf0]  ;;  %v3630_v24 = vld [vmem:[%s5471_s26 + $0x54] sm:$0xf] }
 0xa64   : >> { %2539 = vmatpush.bf16.msra.mxu1 %v3478_v19  ;;  %v3458_v25 = vor.u32 %v3631_v2, %v3457_v23  ;;  %v3459_v26 = vld [vmem:[%s5471_s26 + $0x58] sm:$0xf0]  ;;  %v3449_v28 = vld [vmem:[%s5471_s26 + $0x40] sm:$0xf]  ;;  %v3629_v29 = vld [vmem:[%s5471_s26 + $0x44] sm:$0xf0] }
 0xa65   : >> { %v3462_v27 = vor.u32 %v3630_v24, %v3459_v26  ;;  %v3628_v30 = vld [vmem:[%s5471_s26 + $0x44] sm:$0xf]  ;;  %v3450_v31 = vor.u32 %v3629_v29, %v3449_v28  ;;  %v3451_v32 = vld [vmem:[%s5471_s26 + $0x48] sm:$0xf0]  ;;  %v3441_v34 = vld [vmem:[%s5471_s26 + $0x30] sm:$0xf] }
 0xa66   : >> { %v3454_v33 = vor.u32 %v3628_v30, %v3451_v32  ;;  %v3627_v35 = vld [vmem:[%s5471_s26 + $0x34] sm:$0xf0]  ;;  %v3626_v36 = vld [vmem:[%s5471_s26 + $0x34] sm:$0xf]  ;;  %v3443_v38 = vld [vmem:[%s5471_s26 + $0x38] sm:$0xf0] }
 0xa67   : >> { %2527 = vmatpush.bf16.msra.mxu0 %v3466_v18  ;;  %v3442_v37 = vor.u32 %v3627_v35, %v3441_v34  ;;  %v3446_v39 = vor.u32 %v3626_v36, %v3443_v38  ;;  %v3433_v40 = vld [vmem:[%s5471_s26 + $0x20] sm:$0xf]  ;;  %v3625_v41 = vld [vmem:[%s5471_s26 + $0x24] sm:$0xf0]  ;;  %v3624_v42 = vld [vmem:[%s5471_s26 + $0x24] sm:$0xf] }
 0xa68   : >> { %2540 = vmatpush.bf16.msra.mxu1 %v3470_v22  ;;  %v3434_v43 = vor.u32 %v3625_v41, %v3433_v40  ;;  %v3435_v44 = vld [vmem:[%s5471_s26 + $0x28] sm:$0xf0]  ;;  %v3425_v46 = vld [vmem:[%s5471_s26 + $0x10] sm:$0xf]  ;;  %v3623_v47 = vld [vmem:[%s5471_s26 + $0x14] sm:$0xf0] }
 0xa69   : >> { %v3438_v45 = vor.u32 %v3624_v42, %v3435_v44  ;;  %v3622_v48 = vld [vmem:[%s5471_s26 + $0x14] sm:$0xf]  ;;  %v3426_v49 = vor.u32 %v3623_v47, %v3425_v46  ;;  %v3427_v50 = vld [vmem:[%s5471_s26 + $0x18] sm:$0xf0]  ;;  %v3417_v51 = vld [vmem:[%s5471_s26] sm:$0xf] }
 0xa6a   : >> { %v3621_v52 = vld [vmem:[%s5471_s26 + $0x4] sm:$0xf0]  ;;  %v3430_v53 = vor.u32 %v3622_v48, %v3427_v50  ;;  %v3620_v54 = vld [vmem:[%s5471_s26 + $0x4] sm:$0xf]  ;;  %v3419_v55 = vld [vmem:[%s5471_s26 + $0x8] sm:$0xf0] }
 0xa6b   : >> { %2528 = vmatpush.bf16.msra.mxu0 %v3458_v25  ;;  %v3418_v56 = vor.u32 %v3621_v52, %v3417_v51  ;;  %v3422_v57 = vor.u32 %v3620_v54, %v3419_v55  ;;  %v4010_v5 = vld [vmem:[%s5472_s1] ss:$0 sm:$0xff]  ;;  %v3650_v12 = vld [vmem:[#allocation26 + $0x70] sm:$0xff]  ;;  %v3641_v13 = vld [vmem:[#allocation26 + $0x28] sm:$0xff]  ;;  %s5478_s19 = sld [smem:[#allocation61_spill]] (%p2386_p3) }
 0xa6c   : >> { %2541 = vmatpush.bf16.msra.mxu1 %v3462_v27  ;;  %v4011_v9 = vld [vmem:[%s5473_s8] ss:$0 sm:$0xff]  ;;  %v3649_v16 = vld [vmem:[#allocation26 + $0x68] sm:$0xff]  ;;  %v3648_v18 = vld [vmem:[#allocation26 + $0x60] sm:$0xff] }
 0xa6d   : >> { %v3639_v21 = vld [vmem:[#allocation26 + $0x18] sm:$0xff]  ;;  %v3638_v23 = vld [vmem:[#allocation26 + $0x10] sm:$0xff]  ;;  %v3637_v24 = vld [vmem:[#allocation26 + $0x8] sm:$0xff] }
 0xa6e   : >> { %v3647_v22 = vld [vmem:[#allocation26 + $0x58] sm:$0xff]  ;;  %v3646_v2 = vld [vmem:[#allocation26 + $0x50] sm:$0xff]  ;;  %v3645_v25 = vld [vmem:[#allocation26 + $0x48] sm:$0xff] }
 0xa6f   : >> { %2529 = vmatpush.bf16.msra.mxu0 %v3450_v31  ;;  %v2440_v26 = vld [vmem:[%s5474_s12] sm:$0x3]  ;;  %v3636_v29 = vld [vmem:[#allocation26] sm:$0xff] }
 0xa70   : >> { %2542 = vmatpush.bf16.msra.mxu1 %v3454_v33  ;;  %v2442_v27 = vperm.slane %v2440_v26, 0  ;;  %v2443_v28 = vperm.slane %v2440_v26, 1  ;;  %v3644_v30 = vld [vmem:[#allocation26 + $0x40] sm:$0xff] }
 0xa71   : > { %s2823_s3 = scalar_lea.hbm (%p2386_p3), %s5478_s19, %s3652_s25 }
 0xa72   : > { %s2826_s1 = sshll.u32 (%p2386_p3), %s2823_s3, 4  ;;  %s2827_s1 = int_to_ptr.hbm [resolvable:$true] %s2826_s1 }
 0xa73   : >> { %2530 = vmatpush.bf16.msra.mxu0 %v3442_v37  ;;  %s4433_s8 = sshra.s32 (%p2386_p3), %s2827_s1, 4  ;;  %s4434_s8 = int_to_ptr.hbm [resolvable:$true] %s4433_s8 }
 0xa74   : >> { %2543 = vmatpush.bf16.msra.mxu1 %v3446_v39  ;;  %s4435_s12 = scalar_lea.hbm (%p2386_p3), %s4434_s8, 16  ;;  %p4440_p6 = scmp.lt.s32.totalorder (%p2386_p3), %s4434_s8, %s5478_s19 }
 0xa75   : > { %p4436_p0 = scmp.ne.s32.totalorder (%p2386_p3), %s4434_s8, %s4435_s12 }
 0xa77   : >> { %2531 = vmatpush.bf16.msra.mxu0 %v3434_v43  ;;  %p4437_p7 = pnand (%p2386_p3), %p4436_p0, %p5038_p9 }
 0xa78   : >> { %2544 = vmatpush.bf16.msra.mxu1 %v3438_v45 }
 0xa79   : > { %p4438_p11 = pneg (%p2386_p3), %p4437_p7 }
 0xa7b   : >> { %2532 = vmatpush.bf16.msra.mxu0 %v3426_v49 }
 0xa7c   : >> { %2545 = vmatpush.bf16.msra.mxu1 %v3430_v53 }
 0xa7f   : >> { %2533 = vmatpush.bf16.msra.mxu0 %v3418_v56 }
 0xa80   : >> { %2546 = vmatpush.bf16.msra.mxu1 %v3422_v57 }
 0xad4   : >> { %v2396_v20 = vpop.xlane.xlu0 %2395 }
 0xad5   : >> { %v2397_v4 = vmul.f32 %v2396_v20, %v5113_v15  ;;  %v3643_v20 = vld [vmem:[#allocation26 + $0x38] sm:$0xff] }
 0xad6   : >> { %2726 = vmatpush.bf16.msra.mxu2 %v3643_v20 }
 0xad7   : >> { %v5307_v6 = vsub.f32 %v5298_v14, %v2397_v4  ;;  %v3651_v4 = vld [vmem:[#allocation26 + $0x78] sm:$0xff] }
 0xad8   : >> { %2739 = vmatpush.bf16.msra.mxu3 %v3651_v4 }
 0xad9   : >> { %v2399_v7 = vmul.f32 %v5307_v6, %v5307_v6 }
 0xadb   : >> { %2400 = vadd.xlane.f32.xlu0 %v2399_v7  ;;  %v3642_v7 = vld [vmem:[#allocation26 + $0x30] sm:$0xff] }
 0xadc   : >> { %2727 = vmatpush.bf16.msra.mxu2 %v3642_v7  ;;  %2740 = vmatpush.bf16.msra.mxu3 %v3650_v12 }
 0xae0   : >> { %2728 = vmatpush.bf16.msra.mxu2 %v3641_v13  ;;  %2741 = vmatpush.bf16.msra.mxu3 %v3649_v16 }
 0xae4   : >> { %2742 = vmatpush.bf16.msra.mxu3 %v3648_v18 }
 0xae8   : >> { %2743 = vmatpush.bf16.msra.mxu3 %v3647_v22 }
 0xaec   : >> { %2744 = vmatpush.bf16.msra.mxu3 %v3646_v2 }
 0xaf0   : >> { %2745 = vmatpush.bf16.msra.mxu3 %v3645_v25 }
 0xaf4   : >> { %2746 = vmatpush.bf16.msra.mxu3 %v3644_v30 }
 0xb4e   : >> { %v2401_v58 = vpop.xlane.xlu0 %2400 }
 0xb4f   : >> { %v2402_v59 = vmul.f32 %v2401_v58, %v5113_v15 }
 0xb51   : >> { %v2403_v60 = vadd.f32 1e-05, %v2402_v59 }
 0xb53   : >> { %4013 = vrsqrt.f32 %v2403_v60  ;;  %vm2410_vm0 = vweird.f32 %v2403_v60 }
 0xb59   : >> { %v4014_v61 = vpop.eup %4013 }
 0xb5a   : >> { %v2405_v62 = vmul.f32 %v4014_v61, %v2403_v60  ;;  %vm2411_vm15 = vweird.f32 %v4014_v61 }
 0xb5b   : >> { %vm2412_vm1 = vmor %vm2410_vm0, %vm2411_vm15 }
 0xb5c   : >> { %v2406_v63 = vmul.f32 %v4014_v61, %v2405_v62 }
 0xb5e   : >> { %v2407_v0 = vmul.f32 0.5, %v2406_v63 }
 0xb60   : >> { %v2408_v1 = vsub.f32 1.5, %v2407_v0 }
 0xb62   : >> { %v2409_v3 = vmul.f32 %v4014_v61, %v2408_v1 }
 0xb64   : >> { %v2413_v17 = vsel %vm2412_vm1, %v4014_v61, %v2409_v3 }
 0xb65   : >> { %v2414_v8 = vmul.f32 %v2413_v17, %v5307_v6  ;;  %v3640_v6 = vld [vmem:[#allocation26 + $0x20] sm:$0xff] }
 0xb66   : >> { %2729 = vmatpush.bf16.msra.mxu2 %v3640_v6 }
 0xb67   : >> { %v2418_v10 = vmul.f32 %v4010_v5, %v2414_v8  ;;  %v4012_v5 = vld [vmem:[%s5475_s4] ss:$0 sm:$0xff]  ;;  %s4439_s4 = scalar_lea.hbm (%p2386_p3), %s5478_s19, 32 }
 0xb68   : > { %p4441_p8 = scmp.lt.s32.totalorder (%p2386_p3), %s4439_s4, %s4435_s12 }
 0xb69   : >> { %v2422_v11 = vadd.f32 %v4011_v9, %v2418_v10 }
 0xb6a   : >> { %2730 = vmatpush.bf16.msra.mxu2 %v3639_v21  ;;  %p4442_p10 = por (%p2386_p3), %p4441_p8, %p4440_p6 }
 0xb6b   : >> { %v2423_v19 = vpack.c.bf16 %v2422_v11, %v2422_v11 }
 0xb6c   : > { %p4443_p12 = pnand (%p2386_p3), %p4442_p10, %p4438_p11 }
 0xb6d   : >> { %2534 = vmatmul.bf16.vlgmr.msra.gmra.mxu0 %v2423_v19  ;;  %2547 = vmatmul.bf16.vlgmr.msra.gmra.mxu1 %v2423_v19 }
 0xb6e   : >> { %2731 = vmatpush.bf16.msra.mxu2 %v3638_v23 }
 0xb72   : >> { %2732 = vmatpush.bf16.msra.mxu2 %v3637_v24 }
 0xb76   : >> { %2733 = vmatpush.bf16.msra.mxu2 %v3636_v29 }
 0xbea   : >> { %v2535_v31 = vpop.f32.mrf.mxu0  ;;  %v2548_v32 = vpop.f32.mrf.mxu1 }
 0xbeb   : >> { %v2536_v33 = vadd.f32 %v2535_v31, %v2442_v27  ;;  %v2549_v34 = vadd.f32 %v2548_v32, %v2443_v28 }
 0xbed   : >> { %v3479_v35 = vmul.f32 -1.442695, %v2536_v33  ;;  %v3480_v36 = vmul.f32 -1.442695, %v2549_v34 }
 0xbef   : >> { %4015 = vpow2.f32 %v3479_v35 }
 0xbf0   : >> { %4017 = vpow2.f32 %v3480_v36 }
 0xbf2   : >> { %v2537_v37 = vpop.f32.mrf.mxu0  ;;  %v2550_v38 = vpop.f32.mrf.mxu1 }
 0xbf3   : > { %v4023_v37 = vld [vmem:[%s5476_s18] ss:$0 sm:$0xff] (%p2386_p3) }
 0xbf5   : >> { %v4016_v39 = vpop.eup %4015 }
 0xbf6   : >> { %v4018_v40 = vpop.eup %4017  ;;  %v2558_v41 = vadd.f32 1.0, %v4016_v39 }
 0xbf7   : >> { %v2559_v42 = vadd.f32 1.0, %v4018_v40  ;;  %v4024_v40 = vld [vmem:[%s5477_s2] ss:$0 sm:$0xff] (%p2386_p3) }
 0xbf8   : >> { %4019 = vrcp.f32 %v2558_v41  ;;  %v2571_v48 = vand.u32 2147483648, %v2558_v41  ;;  %v2569_v51 = vand.u32 2147483647, %v2558_v41  ;;  %vm2565_vm4 = vweird.f32 %v2558_v41 }
 0xbf9   : >> { %4021 = vrcp.f32 %v2559_v42  ;;  %v2586_v52 = vand.u32 2147483648, %v2559_v42  ;;  %v2584_v54 = vand.u32 2147483647, %v2559_v42  ;;  %vm2580_vm6 = vweird.f32 %v2559_v42 }
 0xbfa   : >> { %v2572_v56 = vor.u32 1.1754944e-38, %v2571_v48  ;;  %vm2570_vm7 = vcmp.eq.f32.partialorder %v2569_v51, 8.507059e+37 }
 0xbfb   : >> { %v2587_v59 = vor.u32 1.1754944e-38, %v2586_v52  ;;  %vm2585_vm9 = vcmp.eq.f32.partialorder %v2584_v54, 8.507059e+37 }
 0xbfe   : >> { %v4020_v43 = vpop.eup %4019 }
 0xbff   : >> { %v4022_v44 = vpop.eup %4021  ;;  %v2561_v45 = vmul.f32 %v4020_v43, %v2558_v41  ;;  %vm2566_vm2 = vweird.f32 %v4020_v43 }
 0xc00   : >> { %v2576_v46 = vmul.f32 %v4022_v44, %v2559_v42  ;;  %vm2581_vm3 = vweird.f32 %v4022_v44  ;;  %vm2567_vm5 = vmor %vm2565_vm4, %vm2566_vm2 }
 0xc01   : >> { %v2562_v47 = vsub.f32 1.0, %v2561_v45  ;;  %vm2582_vm8 = vmor %vm2580_vm6, %vm2581_vm3 }
 0xc02   : >> { %v2577_v49 = vsub.f32 1.0, %v2576_v46 }
 0xc03   : >> { %v2563_v50 = vmul.f32 %v4020_v43, %v2562_v47 }
 0xc04   : >> { %v2578_v53 = vmul.f32 %v4022_v44, %v2577_v49 }
 0xc05   : >> { %v2564_v55 = vadd.f32 %v4020_v43, %v2563_v50 }
 0xc06   : >> { %v2579_v57 = vadd.f32 %v4022_v44, %v2578_v53 }
 0xc07   : >> { %v2568_v58 = vsel %vm2567_vm5, %v4020_v43, %v2564_v55 }
 0xc08   : >> { %v2573_v60 = vsel %vm2570_vm7, %v2572_v56, %v2568_v58  ;;  %v2583_v61 = vsel %vm2582_vm8, %v4022_v44, %v2579_v57 }
 0xc09   : >> { %v2590_v62 = vmul.f32 %v2573_v60, %v2536_v33  ;;  %v2588_v63 = vsel %vm2585_vm9, %v2587_v59, %v2583_v61 }
 0xc0a   : >> { %v2591_v0 = vmul.f32 %v2588_v63, %v2549_v34 }
 0xc0b   : >> { %v2592_v1 = vpack.c.bf16 %v2590_v62, %v2590_v62 }
 0xc0c   : >> { %v2593_v3 = vpack.c.bf16 %v2591_v0, %v2591_v0 }
 0xc0d   : >> { %2734 = vmatmul.bf16.vlgmr.msra.gmra.mxu2 %v2592_v1 }
 0xc0e   : >> { %2747 = vmatmul.bf16.vlgmr.msra.gmra.mxu3 %v2593_v3 }
 0xc90   : >> { %v2735_v17 = vpop.f32.mrf.mxu2 }
 0xc91   : >> { %v2736_v8 = vadd.f32 %v4012_v5, %v2735_v17  ;;  %v2748_v9 = vpop.f32.mrf.mxu3 }
 0xc93   : >> { %v2749_v10 = vadd.f32 %v2748_v9, %v2736_v8 }
 0xc95   : >> { %v2752_v11 = vmul.f32 0.5, %v2749_v10  ;;  %2388 = sbr.rel (!%p2386_p3) target bundleno = 2650 (0xa5a), region = 346 }
 0xc97   : >> { %v2753_v19 = vadd.f32 %v2752_v11, %v5298_v14 }
 0xc98   : >> { %v2737_v20 = vpop.f32.mrf.mxu2 }
 0xc99   : >> { %2754 = vst [vmem:[%s5295_s23] sm:$0xff] %v2753_v19  ;;  %v2750_v4 = vpop.f32.mrf.mxu3  ;;  %s2824_s23 = sshll.u32 (%p2386_p3), %s5095_s6, 4  ;;  %s2825_s23 = int_to_ptr.vmem [resolvable:$true] %s2824_s23 }
 0xca0   : > { %v2755_v7 = vld [vmem:[#allocation2] sm:$0xff]  ;;  %v2756_v12 = vld [vmem:[#allocation2 + $0x8] sm:$0xff] }
 0xca1   : > { %2759 = vadd.xlane.f32.xlu0 %v2755_v7 }
 0xca9   : > { %2761 = vadd.xlane.f32.xlu0 %v2756_v12 }
 0xd14   : > { %v2760_v13 = vpop.xlane.xlu0 %2759 }
 0xd15   : > { %v2763_v16 = vmul.f32 %v2760_v13, %v5113_v15 }
 0xd17   : > { %v2765_v6 = vsub.f32 %v2755_v7, %v2763_v16 }
 0xd19   : > { %v2767_v18 = vmul.f32 %v2765_v6, %v2765_v6 }
 0xd1b   : > { %2769 = vadd.xlane.f32.xlu1 %v2767_v18 }
 0xd1c   : > { %v2762_v14 = vpop.xlane.xlu0 %2761 }
 0xd1d   : > { %v2764_v21 = vmul.f32 %v2762_v14, %v5113_v15 }
 0xd1f   : > { %v2766_v22 = vsub.f32 %v2756_v12, %v2764_v21 }
 0xd21   : > { %v2768_v23 = vmul.f32 %v2766_v22, %v2766_v22 }
 0xd23   : > { %2771 = vadd.xlane.f32.xlu1 %v2768_v23 }
 0xd8e   : > { %v2770_v2 = vpop.xlane.xlu1 %2769 }
 0xd8f   : > { %v2773_v24 = vmul.f32 %v2770_v2, %v5113_v15 }
 0xd91   : > { %v2775_v25 = vadd.f32 1e-05, %v2773_v24 }
 0xd93   : > { %4025 = vrsqrt.f32 %v2775_v25  ;;  %vm2783_vm11 = vweird.f32 %v2775_v25 }
 0xd96   : > { %v2772_v26 = vpop.xlane.xlu1 %2771 }
 0xd97   : > { %v2774_v27 = vmul.f32 %v2772_v26, %v5113_v15 }
 0xd99   : > { %v4026_v28 = vpop.eup %4025  ;;  %v2776_v29 = vadd.f32 1e-05, %v2774_v27 }
 0xd9a   : > { %v2778_v30 = vmul.f32 %v4026_v28, %v2775_v25  ;;  %vm2784_vm10 = vweird.f32 %v4026_v28 }
 0xd9b   : > { %4027 = vrsqrt.f32 %v2776_v29  ;;  %vm2785_vm12 = vmor %vm2783_vm11, %vm2784_vm10  ;;  %vm2793_vm14 = vweird.f32 %v2776_v29 }
 0xd9c   : > { %v2779_v31 = vmul.f32 %v4026_v28, %v2778_v30 }
 0xd9e   : > { %v2780_v32 = vmul.f32 0.5, %v2779_v31 }
 0xda0   : > { %v2781_v33 = vsub.f32 1.5, %v2780_v32 }
 0xda1   : > { %v4028_v34 = vpop.eup %4027 }
 0xda2   : > { %v2782_v35 = vmul.f32 %v4026_v28, %v2781_v33  ;;  %v2788_v36 = vmul.f32 %v4028_v34, %v2776_v29  ;;  %vm2794_vm13 = vweird.f32 %v4028_v34 }
 0xda3   : > { %vm2795_vm15 = vmor %vm2793_vm14, %vm2794_vm13 }
 0xda4   : > { %v2786_v38 = vsel %vm2785_vm12, %v4026_v28, %v2782_v35  ;;  %v2789_v15 = vmul.f32 %v4028_v34, %v2788_v36 }
 0xda5   : > { %v2797_v39 = vmul.f32 %v2786_v38, %v2765_v6 }
 0xda6   : > { %v2790_v41 = vmul.f32 0.5, %v2789_v15 }
 0xda7   : > { %v2802_v42 = vmul.f32 %v4023_v37, %v2797_v39 }
 0xda8   : > { %v2791_v43 = vsub.f32 1.5, %v2790_v41 }
 0xda9   : > { %v2807_v44 = vadd.f32 %v4024_v40, %v2802_v42 }
 0xdaa   : > { %v2792_v45 = vmul.f32 %v4028_v34, %v2791_v43 }
 0xdab   : > { %2809 = vst [vmem:[%s5095_s6] sm:$0xff] %v2807_v44 }
 0xdac   : > { %v2796_v46 = vsel %vm2795_vm15, %v4028_v34, %v2792_v45 }
 0xdad   : > { %v2798_v47 = vmul.f32 %v2796_v46, %v2766_v22 }
 0xdaf   : > { %v2803_v48 = vmul.f32 %v4023_v37, %v2798_v47 }
 0xdb1   : > { %v2808_v49 = vadd.f32 %v4024_v40, %v2803_v48 }
 0xdb3   : > { %2810 = vst [vmem:[%s5095_s6 + $0x8] sm:$0xff] %v2808_v49 }
 0xdb4   : > { %4446 = shalt.err (!%p4443_p12)
}
 0xdb5   : > { %s4643_s18 = smov 128   ;;  %s4644_s2 = smov 8  }
 0xdb6   : > { %3708 = dma.vmem_to_hbm [thread:$0]  (%p5038_p9), %s2825_s23, 256, %s2827_s1, %s2812_s16, %s4643_s18, %s4643_s18, %s4644_s2  }
 0xdb7 PF: > { %s2841_s0 = sand.u32 1, %s4537_s7   ;;  %p5479_p13 = scmp.ne.s32.totalorder %s5439_s9, 0 }
 0xdb8   : > { %p5480_p2 = scmp.ge.s32.totalorder %s4549_s15, 2  ;;  %s2842_s6 = scalar_lea.sflag [#allocation8], %s2841_s0 }
 0xdba   : > { %p3752_p5 = pnand %p5480_p2, %p5479_p13 }
 0xdbc   : > { %p3753_p1 = pneg %p3752_p5 }
 0xdbe   : > { %4532 = dma.done.wait (%p3753_p1), %s2842_s6, 256  }
 0xdbf   : > { %4534 = vsyncadd (%p3753_p1), %s2842_s6, 4294967040  ;;  %p86_p4 = scmp.ge.s32.totalorder %s5012_s28, 4   ;;  %s5481_s7 = smov %s4541_s10 }
 0xdc0   : > { %s5482_s10 = smov %s4545_s11  ;;  %s5483_s11 = smov %s5023_s30 }
 0xdc1   : > { %s5484_s15 = smov %s5012_s28  ;;  %88 = sbr.rel (!%p86_p4) target bundleno = 75 (0x4b), region = 357 }
 0xdc6   :  { %2848 = vsyncpa [#allocation7], 1 }
 0xdc7   :  { %2850 = vsyncpa [#allocation7 + $0x1], 1 }
 0xdc8   :  { %2851 = vsyncpa [#allocation10], 1 }
 0xdc9   :  { %2852 = vsyncpa [#allocation13], 1 }
 0xdca   :  { %2853 = vsyncpa [#allocation16], 1 }
 0xdcb   :  { %2854 = vsyncpa [#allocation19], 1 }
 0xdcc   :  { %2855 = vsyncpa [#allocation22], 1 }
 0xdcd   :  { %2856 = vsyncpa [#allocation25], 1 }
 0xdce   :  { %2857 = vsyncpa [#allocation8], 1 }
 0xdcf   :  { %2859 = vsyncpa [#allocation8 + $0x1], 1 }

</bundles_post_ra>
